<compile_context>
chip_gen: v6e
topology: v6e:2x2x1
jax: 0.10.0
libtpu: 0.0.40
codegen_flags: <defaults>
</compile_context>

<pallas_src>
import jax
import jax.numpy as jnp
from jax.experimental import pallas as pl
from jax.experimental.pallas import tpu as pltpu


# ----------------------------------------------------------------------------
# Fused AutoEncoder forward kernel.
#   emb_ref      : (T, B, E)  time-major embedded input sequence (f32)
#   enc_*/dec_*  : GRU params, weights stored pre-transposed in bf16
#                  (W_ih^T (E,3H), W_hh^T (H,3H)); biases (1,3H) f32;
#                  gate order (r, z, n) matching torch.nn.GRU
#   proj_w/b     : Linear(H -> V) stored as W^T (H, V) bf16, bias (1, V) f32
#   out_ref      : ((T-1)*B, V) f32 logits, time-major rows (t*B + b)
# ----------------------------------------------------------------------------
def _autoencoder_kernel(emb_ref,
                        enc_wih_ref, enc_whh_ref, enc_bih_ref, enc_bhh_ref,
                        dec_wih_ref, dec_whh_ref, dec_bih_ref, dec_bhh_ref,
                        proj_w_ref, proj_b_ref,
                        out_ref,
                        gx_enc_scr, gx_dec_scr, dec_h_scr):
    T, B, E = emb_ref.shape
    H = enc_whh_ref.shape[0]

    # -- hoisted, time-invariant input projections: one padded (T*B, E)@(E,3H)
    #    bf16 matmul per GRU (f32 accumulation), biases folded in. -------------
    emb_bf = emb_ref[...].reshape(T * B, E).astype(jnp.bfloat16)
    gx_enc = (jnp.dot(emb_bf, enc_wih_ref[...],
                      preferred_element_type=jnp.float32) + enc_bih_ref[...])
    gx_dec = (jnp.dot(emb_bf[:(T - 1) * B], dec_wih_ref[...],
                      preferred_element_type=jnp.float32) + dec_bih_ref[...])

    # Scatter the hoisted results into 3-D scratches with STATIC per-timestep
    # stores (once per call, off the serial path); the recurrences then read
    # tile-aligned leading-axis slices instead of masked pl.ds(t*B, B) loads.
    for t in range(T):
        gx_enc_scr[t] = gx_enc[t * B:(t + 1) * B]
    for t in range(T - 1):
        gx_dec_scr[t] = gx_dec[t * B:(t + 1) * B]

    def gru_cell(gx_t, h, whh_ref, bhh_ref):
        # gx_t already contains x@W_ih^T + b_ih for this timestep (all batches).
        gh = (jnp.dot(h.astype(jnp.bfloat16), whh_ref[...],
                      preferred_element_type=jnp.float32) + bhh_ref[...])
        r = jax.nn.sigmoid(gx_t[:, 0 * H:1 * H] + gh[:, 0 * H:1 * H])
        z = jax.nn.sigmoid(gx_t[:, 1 * H:2 * H] + gh[:, 1 * H:2 * H])
        n = jnp.tanh(gx_t[:, 2 * H:3 * H] + r * gh[:, 2 * H:3 * H])
        return (1.0 - z) * n + z * h

    # Full unroll only for short sequences; capped otherwise (vreg pressure).
    unroll = True if T <= 8 else 8

    # ---- encoder: sequential recurrence, keep only the final hidden state ----
    def enc_body(t, h):
        return gru_cell(gx_enc_scr[t], h, enc_whh_ref, enc_bhh_ref)

    h_enc = jax.lax.fori_loop(0, T, enc_body,
                              jnp.zeros((B, H), jnp.float32), unroll=unroll)

    # ---- decoder (teacher forcing): T-1 steps seeded with encoder hidden -----
    def dec_body(t, h):
        h_new = gru_cell(gx_dec_scr[t], h, dec_whh_ref, dec_bhh_ref)
        dec_h_scr[t] = h_new                  # clean leading-axis store
        return h_new

    jax.lax.fori_loop(0, T - 1, dec_body, h_enc, unroll=unroll)

    # ---- vocab projection: ONE matmul over all decoder hidden states ---------
    hs = dec_h_scr[...].reshape((T - 1) * B, H).astype(jnp.bfloat16)
    out_ref[...] = (jnp.dot(hs, proj_w_ref[...],
                            preferred_element_type=jnp.float32)
                    + proj_b_ref[...])


def autoencoder_pallas(emb_tbe, p):
    """emb_tbe: (T, B, E) time-major f32 embeddings -> logits ((T-1)*B, V)."""
    T, B, E = emb_tbe.shape
    H = p["enc_whh_t"].shape[0]
    V = p["proj_w_t"].shape[1]
    return pl.pallas_call(
        _autoencoder_kernel,
        out_shape=jax.ShapeDtypeStruct(((T - 1) * B, V), jnp.float32),
        scratch_shapes=[
            pltpu.VMEM((T, B, 3 * H), jnp.float32),        # encoder gx (hoisted)
            pltpu.VMEM((T - 1, B, 3 * H), jnp.float32),    # decoder gx (hoisted)
            pltpu.VMEM((T - 1, B, H), jnp.float32),        # decoder hidden states
        ],
        compiler_params=pltpu.CompilerParams(
            vmem_limit_bytes=32 * 1024 * 1024),
    )(emb_tbe,
      p["enc_wih_t"], p["enc_whh_t"], p["enc_bih"], p["enc_bhh"],
      p["dec_wih_t"], p["dec_whh_t"], p["dec_bih"], p["dec_bhh"],
      p["proj_w_t"], p["proj_b"])


# ----------------------------------------------------------------------------
# Parameters + forward wrapper mirroring the PyTorch module.
# ----------------------------------------------------------------------------
def init_params(key, vocab_size, emb_size, hidden_size):
    ks = jax.random.split(key, 10)
    s = 1.0 / jnp.sqrt(hidden_size)
    wdt = jnp.bfloat16   # weight storage dtype (matmul inputs); math stays f32

    def u(k, shape, dtype=jnp.float32):
        return jax.random.uniform(k, shape, jnp.float32, -s, s).astype(dtype)

    return {
        "embed": jax.random.normal(ks[0], (vocab_size, emb_size), jnp.float32) * 0.1,
        # encoder GRU (stored pre-transposed: W_ih^T (E,3H), W_hh^T (H,3H))
        "enc_wih_t": u(ks[1], (emb_size, 3 * hidden_size), wdt),
        "enc_whh_t": u(ks[2], (hidden_size, 3 * hidden_size), wdt),
        "enc_bih": u(ks[3], (1, 3 * hidden_size)),
        "enc_bhh": u(ks[4], (1, 3 * hidden_size)),
        # decoder GRU
        "dec_wih_t": u(ks[5], (emb_size, 3 * hidden_size), wdt),
        "dec_whh_t": u(ks[6], (hidden_size, 3 * hidden_size), wdt),
        "dec_bih": u(ks[7], (1, 3 * hidden_size)),
        "dec_bhh": u(ks[8], (1, 3 * hidden_size)),
        # proj Linear(hidden_size -> vocab_size), stored as W^T (H, V)
        "proj_w_t": u(ks[9], (hidden_size, vocab_size), wdt),
        "proj_b": jnp.zeros((1, vocab_size), jnp.float32),
    }


@jax.jit
def autoencoder_forward(params, inp):
    """inp: int32 [B, T].  Returns logits [B, T-1, V] (teacher forcing)."""
    B, T = inp.shape
    V = params["proj_w_t"].shape[1]
    # Embedding gather stays in plain JAX; indexing with inp.T makes the gather
    # emit the time-major (T, B, E) layout directly used by both GRUs.
    emb_tbe = jnp.take(params["embed"], inp.T, axis=0)        # (T, B, E) f32
    flat = autoencoder_pallas(emb_tbe, params)                # ((T-1)*B, V)
    # Kernel emits lane-dense time-major logits; tiny transpose to batch-major.
    return flat.reshape(T - 1, B, V).transpose(1, 0, 2)       # (B, T-1, V)


# ----------------------------------------------------------------------------
# Pure-JAX reference (same bf16-weight / f32-accumulation math) for a
# correctness cross-check.
# ----------------------------------------------------------------------------
def reference_forward(params, inp):
    B, T = inp.shape
    H = params["enc_whh_t"].shape[0]
    emb = jnp.take(params["embed"], inp, axis=0)              # (B, T, E) f32

    def bdot(x, w):
        return jnp.dot(x.astype(jnp.bfloat16), w,
                       preferred_element_type=jnp.float32)

    def gru(x_bte, h0, wih_t, whh_t, bih, bhh):
        def step(h, x_t):
            gx = bdot(x_t, wih_t) + bih
            gh = bdot(h, whh_t) + bhh
            r = jax.nn.sigmoid(gx[:, :H] + gh[:, :H])
            z = jax.nn.sigmoid(gx[:, H:2 * H] + gh[:, H:2 * H])
            n = jnp.tanh(gx[:, 2 * H:] + r * gh[:, 2 * H:])
            h_new = (1.0 - z) * n + z * h
            return h_new, h_new
        h_last, hs = jax.lax.scan(step, h0, jnp.transpose(x_bte, (1, 0, 2)))
        return h_last, hs                                     # hs: (T, B, H)

    h_enc, _ = gru(emb, jnp.zeros((B, H), jnp.float32),
                   params["enc_wih_t"], params["enc_whh_t"],
                   params["enc_bih"], params["enc_bhh"])
    _, dec_hs = gru(emb[:, :T - 1], h_enc,
                    params["dec_wih_t"], params["dec_whh_t"],
                    params["dec_bih"], params["dec_bhh"])
    dec_bth = jnp.transpose(dec_hs, (1, 0, 2))                # (B, T-1, H)
    return bdot(dec_bth, params["proj_w_t"]) + params["proj_b"]


if __name__ == "__main__":
    # Small, lane-friendly shapes consistent with AutoEncoder(vocab, emb, hidden)
    VOCAB, EMB, HIDDEN = 512, 128, 128
    B, T = 2, 8

    key = jax.random.PRNGKey(0)
    pkey, ikey = jax.random.split(key)
    params = init_params(pkey, VOCAB, EMB, HIDDEN)
    inp = jax.random.randint(ikey, (B, T), 0, VOCAB, dtype=jnp.int32)

    logits = autoencoder_forward(params, inp)
    logits = jax.block_until_ready(logits)

    assert logits.shape == (B, T - 1, VOCAB), logits.shape
    assert logits.dtype == jnp.float32
    assert bool(jnp.all(jnp.isfinite(logits)))

    ref = reference_forward(params, inp)
    max_err = float(jnp.max(jnp.abs(logits - ref)))
    assert bool(jnp.allclose(logits, ref, atol=5e-3, rtol=5e-3)), max_err

    print("KERNEL_OK")
</pallas_src>

<mosaic_0001>
module attributes {stable_mosaic.version = 11 : i64} {
  func.func @_autoencoder_kernel(%arg0: memref<8x2x128xf32, #tpu.memory_space<vmem>>, %arg1: memref<128x384xbf16, #tpu.memory_space<vmem>>, %arg2: memref<128x384xbf16, #tpu.memory_space<vmem>>, %arg3: memref<1x384xf32, #tpu.memory_space<vmem>>, %arg4: memref<1x384xf32, #tpu.memory_space<vmem>>, %arg5: memref<128x384xbf16, #tpu.memory_space<vmem>>, %arg6: memref<128x384xbf16, #tpu.memory_space<vmem>>, %arg7: memref<1x384xf32, #tpu.memory_space<vmem>>, %arg8: memref<1x384xf32, #tpu.memory_space<vmem>>, %arg9: memref<128x512xbf16, #tpu.memory_space<vmem>>, %arg10: memref<1x512xf32, #tpu.memory_space<vmem>>, %arg11: memref<14x512xf32, #tpu.memory_space<vmem>>, %arg12: memref<8x2x384xf32, #tpu.memory_space<vmem>>, %arg13: memref<7x2x384xf32, #tpu.memory_space<vmem>>, %arg14: memref<7x2x128xf32, #tpu.memory_space<vmem>>) attributes {dimension_semantics = [], scalar_prefetch = 0 : i64, scratch_operands = 3 : i64, tpu.core_type = #tpu.core_type<tc>} {
    %c0 = arith.constant 0 : index
    %c0_0 = arith.constant 0 : index
    %c0_1 = arith.constant 0 : index
    %0 = vector.load %arg0[%c0, %c0_0, %c0_1] : memref<8x2x128xf32, #tpu.memory_space<vmem>>, vector<8x2x128xf32>
    %1 = vector.shape_cast %0 : vector<8x2x128xf32> to vector<16x128xf32>
    %2 = arith.truncf %1 : vector<16x128xf32> to vector<16x128xbf16>
    %c0_2 = arith.constant 0 : index
    %c0_3 = arith.constant 0 : index
    %3 = vector.load %arg1[%c0_2, %c0_3] : memref<128x384xbf16, #tpu.memory_space<vmem>>, vector<128x384xbf16>
    %cst = arith.constant dense<0.000000e+00> : vector<16x384xf32>
    %4 = tpu.matmul %2, %3, %cst {dimension_numbers = #tpu.dot_dimension_numbers<[1], [0], [0], [1], [0, 0, 1, 1], [], []>} : vector<16x128xbf16>, vector<128x384xbf16>, vector<16x384xf32> -> vector<16x384xf32>
    %c0_4 = arith.constant 0 : index
    %c0_5 = arith.constant 0 : index
    %5 = vector.load %arg3[%c0_4, %c0_5] : memref<1x384xf32, #tpu.memory_space<vmem>>, vector<1x384xf32>
    %6 = vector.broadcast %5 : vector<1x384xf32> to vector<16x384xf32>
    %7 = arith.addf %4, %6 : vector<16x384xf32>
    %8 = vector.extract_strided_slice %2 {offsets = [0, 0], sizes = [14, 128], strides = [1, 1]} : vector<16x128xbf16> to vector<14x128xbf16>
    %c0_6 = arith.constant 0 : index
    %c0_7 = arith.constant 0 : index
    %9 = vector.load %arg5[%c0_6, %c0_7] : memref<128x384xbf16, #tpu.memory_space<vmem>>, vector<128x384xbf16>
    %cst_8 = arith.constant dense<0.000000e+00> : vector<14x384xf32>
    %10 = tpu.matmul %8, %9, %cst_8 {dimension_numbers = #tpu.dot_dimension_numbers<[1], [0], [0], [1], [0, 0, 1, 1], [], []>} : vector<14x128xbf16>, vector<128x384xbf16>, vector<14x384xf32> -> vector<14x384xf32>
    %c0_9 = arith.constant 0 : index
    %c0_10 = arith.constant 0 : index
    %11 = vector.load %arg7[%c0_9, %c0_10] : memref<1x384xf32, #tpu.memory_space<vmem>>, vector<1x384xf32>
    %12 = vector.broadcast %11 : vector<1x384xf32> to vector<14x384xf32>
    %13 = arith.addf %10, %12 : vector<14x384xf32>
    %14 = vector.extract_strided_slice %7 {offsets = [0, 0], sizes = [2, 384], strides = [1, 1]} : vector<16x384xf32> to vector<2x384xf32>
    %c0_11 = arith.constant 0 : index
    %c0_12 = arith.constant 0 : index
    %c0_13 = arith.constant 0 : index
    %15 = vector.load %arg12[%c0_11, %c0_12, %c0_13] : memref<8x2x384xf32, #tpu.memory_space<vmem>>, vector<1x2x384xf32>
    %16 = vector.shape_cast %15 : vector<1x2x384xf32> to vector<2x384xf32>
    %17 = vector.shape_cast %14 : vector<2x384xf32> to vector<1x2x384xf32>
    tpu.vector_store %arg12[%c0_11, %c0_12, %c0_13], %17 {strides = array<i32>} : memref<8x2x384xf32, #tpu.memory_space<vmem>>, vector<1x2x384xf32>,
    %18 = vector.extract_strided_slice %7 {offsets = [2, 0], sizes = [2, 384], strides = [1, 1]} : vector<16x384xf32> to vector<2x384xf32>
    %c1 = arith.constant 1 : index
    %c0_14 = arith.constant 0 : index
    %c0_15 = arith.constant 0 : index
    %19 = vector.load %arg12[%c1, %c0_14, %c0_15] : memref<8x2x384xf32, #tpu.memory_space<vmem>>, vector<1x2x384xf32>
    %20 = vector.shape_cast %19 : vector<1x2x384xf32> to vector<2x384xf32>
    %21 = vector.shape_cast %18 : vector<2x384xf32> to vector<1x2x384xf32>
    tpu.vector_store %arg12[%c1, %c0_14, %c0_15], %21 {strides = array<i32>} : memref<8x2x384xf32, #tpu.memory_space<vmem>>, vector<1x2x384xf32>,
    %22 = vector.extract_strided_slice %7 {offsets = [4, 0], sizes = [2, 384], strides = [1, 1]} : vector<16x384xf32> to vector<2x384xf32>
    %c2 = arith.constant 2 : index
    %c0_16 = arith.constant 0 : index
    %c0_17 = arith.constant 0 : index
    %23 = vector.load %arg12[%c2, %c0_16, %c0_17] : memref<8x2x384xf32, #tpu.memory_space<vmem>>, vector<1x2x384xf32>
    %24 = vector.shape_cast %23 : vector<1x2x384xf32> to vector<2x384xf32>
    %25 = vector.shape_cast %22 : vector<2x384xf32> to vector<1x2x384xf32>
    tpu.vector_store %arg12[%c2, %c0_16, %c0_17], %25 {strides = array<i32>} : memref<8x2x384xf32, #tpu.memory_space<vmem>>, vector<1x2x384xf32>,
    %26 = vector.extract_strided_slice %7 {offsets = [6, 0], sizes = [2, 384], strides = [1, 1]} : vector<16x384xf32> to vector<2x384xf32>
    %c3 = arith.constant 3 : index
    %c0_18 = arith.constant 0 : index
    %c0_19 = arith.constant 0 : index
    %27 = vector.load %arg12[%c3, %c0_18, %c0_19] : memref<8x2x384xf32, #tpu.memory_space<vmem>>, vector<1x2x384xf32>
    %28 = vector.shape_cast %27 : vector<1x2x384xf32> to vector<2x384xf32>
    %29 = vector.shape_cast %26 : vector<2x384xf32> to vector<1x2x384xf32>
    tpu.vector_store %arg12[%c3, %c0_18, %c0_19], %29 {strides = array<i32>} : memref<8x2x384xf32, #tpu.memory_space<vmem>>, vector<1x2x384xf32>,
    %30 = vector.extract_strided_slice %7 {offsets = [8, 0], sizes = [2, 384], strides = [1, 1]} : vector<16x384xf32> to vector<2x384xf32>
    %c4 = arith.constant 4 : index
    %c0_20 = arith.constant 0 : index
    %c0_21 = arith.constant 0 : index
    %31 = vector.load %arg12[%c4, %c0_20, %c0_21] : memref<8x2x384xf32, #tpu.memory_space<vmem>>, vector<1x2x384xf32>
    %32 = vector.shape_cast %31 : vector<1x2x384xf32> to vector<2x384xf32>
    %33 = vector.shape_cast %30 : vector<2x384xf32> to vector<1x2x384xf32>
    tpu.vector_store %arg12[%c4, %c0_20, %c0_21], %33 {strides = array<i32>} : memref<8x2x384xf32, #tpu.memory_space<vmem>>, vector<1x2x384xf32>,
    %34 = vector.extract_strided_slice %7 {offsets = [10, 0], sizes = [2, 384], strides = [1, 1]} : vector<16x384xf32> to vector<2x384xf32>
    %c5 = arith.constant 5 : index
    %c0_22 = arith.constant 0 : index
    %c0_23 = arith.constant 0 : index
    %35 = vector.load %arg12[%c5, %c0_22, %c0_23] : memref<8x2x384xf32, #tpu.memory_space<vmem>>, vector<1x2x384xf32>
    %36 = vector.shape_cast %35 : vector<1x2x384xf32> to vector<2x384xf32>
    %37 = vector.shape_cast %34 : vector<2x384xf32> to vector<1x2x384xf32>
    tpu.vector_store %arg12[%c5, %c0_22, %c0_23], %37 {strides = array<i32>} : memref<8x2x384xf32, #tpu.memory_space<vmem>>, vector<1x2x384xf32>,
    %38 = vector.extract_strided_slice %7 {offsets = [12, 0], sizes = [2, 384], strides = [1, 1]} : vector<16x384xf32> to vector<2x384xf32>
    %c6 = arith.constant 6 : index
    %c0_24 = arith.constant 0 : index
    %c0_25 = arith.constant 0 : index
    %39 = vector.load %arg12[%c6, %c0_24, %c0_25] : memref<8x2x384xf32, #tpu.memory_space<vmem>>, vector<1x2x384xf32>
    %40 = vector.shape_cast %39 : vector<1x2x384xf32> to vector<2x384xf32>
    %41 = vector.shape_cast %38 : vector<2x384xf32> to vector<1x2x384xf32>
    tpu.vector_store %arg12[%c6, %c0_24, %c0_25], %41 {strides = array<i32>} : memref<8x2x384xf32, #tpu.memory_space<vmem>>, vector<1x2x384xf32>,
    %42 = vector.extract_strided_slice %7 {offsets = [14, 0], sizes = [2, 384], strides = [1, 1]} : vector<16x384xf32> to vector<2x384xf32>
    %c7 = arith.constant 7 : index
    %c0_26 = arith.constant 0 : index
    %c0_27 = arith.constant 0 : index
    %43 = vector.load %arg12[%c7, %c0_26, %c0_27] : memref<8x2x384xf32, #tpu.memory_space<vmem>>, vector<1x2x384xf32>
    %44 = vector.shape_cast %43 : vector<1x2x384xf32> to vector<2x384xf32>
    %45 = vector.shape_cast %42 : vector<2x384xf32> to vector<1x2x384xf32>
    tpu.vector_store %arg12[%c7, %c0_26, %c0_27], %45 {strides = array<i32>} : memref<8x2x384xf32, #tpu.memory_space<vmem>>, vector<1x2x384xf32>,
    %46 = vector.extract_strided_slice %13 {offsets = [0, 0], sizes = [2, 384], strides = [1, 1]} : vector<14x384xf32> to vector<2x384xf32>
    %c0_28 = arith.constant 0 : index
    %c0_29 = arith.constant 0 : index
    %c0_30 = arith.constant 0 : index
    %47 = vector.load %arg13[%c0_28, %c0_29, %c0_30] : memref<7x2x384xf32, #tpu.memory_space<vmem>>, vector<1x2x384xf32>
    %48 = vector.shape_cast %47 : vector<1x2x384xf32> to vector<2x384xf32>
    %49 = vector.shape_cast %46 : vector<2x384xf32> to vector<1x2x384xf32>
    tpu.vector_store %arg13[%c0_28, %c0_29, %c0_30], %49 {strides = array<i32>} : memref<7x2x384xf32, #tpu.memory_space<vmem>>, vector<1x2x384xf32>,
    %50 = vector.extract_strided_slice %13 {offsets = [2, 0], sizes = [2, 384], strides = [1, 1]} : vector<14x384xf32> to vector<2x384xf32>
    %c1_31 = arith.constant 1 : index
    %c0_32 = arith.constant 0 : index
    %c0_33 = arith.constant 0 : index
    %51 = vector.load %arg13[%c1_31, %c0_32, %c0_33] : memref<7x2x384xf32, #tpu.memory_space<vmem>>, vector<1x2x384xf32>
    %52 = vector.shape_cast %51 : vector<1x2x384xf32> to vector<2x384xf32>
    %53 = vector.shape_cast %50 : vector<2x384xf32> to vector<1x2x384xf32>
    tpu.vector_store %arg13[%c1_31, %c0_32, %c0_33], %53 {strides = array<i32>} : memref<7x2x384xf32, #tpu.memory_space<vmem>>, vector<1x2x384xf32>,
    %54 = vector.extract_strided_slice %13 {offsets = [4, 0], sizes = [2, 384], strides = [1, 1]} : vector<14x384xf32> to vector<2x384xf32>
    %c2_34 = arith.constant 2 : index
    %c0_35 = arith.constant 0 : index
    %c0_36 = arith.constant 0 : index
    %55 = vector.load %arg13[%c2_34, %c0_35, %c0_36] : memref<7x2x384xf32, #tpu.memory_space<vmem>>, vector<1x2x384xf32>
    %56 = vector.shape_cast %55 : vector<1x2x384xf32> to vector<2x384xf32>
    %57 = vector.shape_cast %54 : vector<2x384xf32> to vector<1x2x384xf32>
    tpu.vector_store %arg13[%c2_34, %c0_35, %c0_36], %57 {strides = array<i32>} : memref<7x2x384xf32, #tpu.memory_space<vmem>>, vector<1x2x384xf32>,
    %58 = vector.extract_strided_slice %13 {offsets = [6, 0], sizes = [2, 384], strides = [1, 1]} : vector<14x384xf32> to vector<2x384xf32>
    %c3_37 = arith.constant 3 : index
    %c0_38 = arith.constant 0 : index
    %c0_39 = arith.constant 0 : index
    %59 = vector.load %arg13[%c3_37, %c0_38, %c0_39] : memref<7x2x384xf32, #tpu.memory_space<vmem>>, vector<1x2x384xf32>
    %60 = vector.shape_cast %59 : vector<1x2x384xf32> to vector<2x384xf32>
    %61 = vector.shape_cast %58 : vector<2x384xf32> to vector<1x2x384xf32>
    tpu.vector_store %arg13[%c3_37, %c0_38, %c0_39], %61 {strides = array<i32>} : memref<7x2x384xf32, #tpu.memory_space<vmem>>, vector<1x2x384xf32>,
    %62 = vector.extract_strided_slice %13 {offsets = [8, 0], sizes = [2, 384], strides = [1, 1]} : vector<14x384xf32> to vector<2x384xf32>
    %c4_40 = arith.constant 4 : index
    %c0_41 = arith.constant 0 : index
    %c0_42 = arith.constant 0 : index
    %63 = vector.load %arg13[%c4_40, %c0_41, %c0_42] : memref<7x2x384xf32, #tpu.memory_space<vmem>>, vector<1x2x384xf32>
    %64 = vector.shape_cast %63 : vector<1x2x384xf32> to vector<2x384xf32>
    %65 = vector.shape_cast %62 : vector<2x384xf32> to vector<1x2x384xf32>
    tpu.vector_store %arg13[%c4_40, %c0_41, %c0_42], %65 {strides = array<i32>} : memref<7x2x384xf32, #tpu.memory_space<vmem>>, vector<1x2x384xf32>,
    %66 = vector.extract_strided_slice %13 {offsets = [10, 0], sizes = [2, 384], strides = [1, 1]} : vector<14x384xf32> to vector<2x384xf32>
    %c5_43 = arith.constant 5 : index
    %c0_44 = arith.constant 0 : index
    %c0_45 = arith.constant 0 : index
    %67 = vector.load %arg13[%c5_43, %c0_44, %c0_45] : memref<7x2x384xf32, #tpu.memory_space<vmem>>, vector<1x2x384xf32>
    %68 = vector.shape_cast %67 : vector<1x2x384xf32> to vector<2x384xf32>
    %69 = vector.shape_cast %66 : vector<2x384xf32> to vector<1x2x384xf32>
    tpu.vector_store %arg13[%c5_43, %c0_44, %c0_45], %69 {strides = array<i32>} : memref<7x2x384xf32, #tpu.memory_space<vmem>>, vector<1x2x384xf32>,
    %70 = vector.extract_strided_slice %13 {offsets = [12, 0], sizes = [2, 384], strides = [1, 1]} : vector<14x384xf32> to vector<2x384xf32>
    %c6_46 = arith.constant 6 : index
    %c0_47 = arith.constant 0 : index
    %c0_48 = arith.constant 0 : index
    %71 = vector.load %arg13[%c6_46, %c0_47, %c0_48] : memref<7x2x384xf32, #tpu.memory_space<vmem>>, vector<1x2x384xf32>
    %72 = vector.shape_cast %71 : vector<1x2x384xf32> to vector<2x384xf32>
    %73 = vector.shape_cast %70 : vector<2x384xf32> to vector<1x2x384xf32>
    tpu.vector_store %arg13[%c6_46, %c0_47, %c0_48], %73 {strides = array<i32>} : memref<7x2x384xf32, #tpu.memory_space<vmem>>, vector<1x2x384xf32>,
    %cst_49 = arith.constant 0.000000e+00 : f32
    %74 = vector.broadcast %cst_49 : f32 to vector<2x128xf32>
    %c0_i32 = arith.constant 0 : i32
    %75 = arith.index_cast %c0_i32 : i32 to index
    %c0_50 = arith.constant 0 : index
    %c0_51 = arith.constant 0 : index
    %76 = vector.load %arg12[%75, %c0_50, %c0_51] : memref<8x2x384xf32, #tpu.memory_space<vmem>>, vector<1x2x384xf32>
    %77 = vector.shape_cast %76 : vector<1x2x384xf32> to vector<2x384xf32>
    %78 = arith.truncf %74 : vector<2x128xf32> to vector<2x128xbf16>
    %c0_52 = arith.constant 0 : index
    %c0_53 = arith.constant 0 : index
    %79 = vector.load %arg2[%c0_52, %c0_53] : memref<128x384xbf16, #tpu.memory_space<vmem>>, vector<128x384xbf16>
    %cst_54 = arith.constant dense<0.000000e+00> : vector<2x384xf32>
    %80 = tpu.matmul %78, %79, %cst_54 {dimension_numbers = #tpu.dot_dimension_numbers<[1], [0], [0], [1], [0, 0, 1, 1], [], []>} : vector<2x128xbf16>, vector<128x384xbf16>, vector<2x384xf32> -> vector<2x384xf32>
    %c0_55 = arith.constant 0 : index
    %c0_56 = arith.constant 0 : index
    %81 = vector.load %arg4[%c0_55, %c0_56] : memref<1x384xf32, #tpu.memory_space<vmem>>, vector<1x384xf32>
    %82 = vector.broadcast %81 : vector<1x384xf32> to vector<2x384xf32>
    %83 = arith.addf %80, %82 : vector<2x384xf32>
    %84 = vector.extract_strided_slice %77 {offsets = [0, 0], sizes = [2, 128], strides = [1, 1]} : vector<2x384xf32> to vector<2x128xf32>
    %85 = vector.extract_strided_slice %83 {offsets = [0, 0], sizes = [2, 128], strides = [1, 1]} : vector<2x384xf32> to vector<2x128xf32>
    %86 = arith.addf %84, %85 : vector<2x128xf32>
    %87 = arith.negf %86 : vector<2x128xf32>
    %88 = math.exp %87 : vector<2x128xf32>
    %cst_57 = arith.constant 1.000000e+00 : f32
    %89 = vector.broadcast %cst_57 : f32 to vector<2x128xf32>
    %90 = arith.addf %89, %88 : vector<2x128xf32>
    %91 = arith.divf %89, %90 : vector<2x128xf32>
    %92 = vector.extract_strided_slice %77 {offsets = [0, 128], sizes = [2, 128], strides = [1, 1]} : vector<2x384xf32> to vector<2x128xf32>
    %93 = vector.extract_strided_slice %83 {offsets = [0, 128], sizes = [2, 128], strides = [1, 1]} : vector<2x384xf32> to vector<2x128xf32>
    %94 = arith.addf %92, %93 : vector<2x128xf32>
    %95 = arith.negf %94 : vector<2x128xf32>
    %96 = math.exp %95 : vector<2x128xf32>
    %cst_58 = arith.constant 1.000000e+00 : f32
    %97 = vector.broadcast %cst_58 : f32 to vector<2x128xf32>
    %98 = arith.addf %97, %96 : vector<2x128xf32>
    %99 = arith.divf %97, %98 : vector<2x128xf32>
    %100 = vector.extract_strided_slice %77 {offsets = [0, 256], sizes = [2, 128], strides = [1, 1]} : vector<2x384xf32> to vector<2x128xf32>
    %101 = vector.extract_strided_slice %83 {offsets = [0, 256], sizes = [2, 128], strides = [1, 1]} : vector<2x384xf32> to vector<2x128xf32>
    %102 = arith.mulf %91, %101 : vector<2x128xf32>
    %103 = arith.addf %100, %102 : vector<2x128xf32>
    %104 = math.tanh %103 : vector<2x128xf32>
    %cst_59 = arith.constant 1.000000e+00 : f32
    %105 = vector.broadcast %cst_59 : f32 to vector<2x128xf32>
    %106 = arith.subf %105, %99 : vector<2x128xf32>
    %107 = arith.mulf %106, %104 : vector<2x128xf32>
    %108 = arith.mulf %99, %74 : vector<2x128xf32>
    %109 = arith.addf %107, %108 : vector<2x128xf32>
    %c1_i32 = arith.constant 1 : i32
    %110 = arith.index_cast %c1_i32 : i32 to index
    %c0_60 = arith.constant 0 : index
    %c0_61 = arith.constant 0 : index
    %111 = vector.load %arg12[%110, %c0_60, %c0_61] : memref<8x2x384xf32, #tpu.memory_space<vmem>>, vector<1x2x384xf32>
    %112 = vector.shape_cast %111 : vector<1x2x384xf32> to vector<2x384xf32>
    %113 = arith.truncf %109 : vector<2x128xf32> to vector<2x128xbf16>
    %c0_62 = arith.constant 0 : index
    %c0_63 = arith.constant 0 : index
    %114 = vector.load %arg2[%c0_62, %c0_63] : memref<128x384xbf16, #tpu.memory_space<vmem>>, vector<128x384xbf16>
    %cst_64 = arith.constant dense<0.000000e+00> : vector<2x384xf32>
    %115 = tpu.matmul %113, %114, %cst_64 {dimension_numbers = #tpu.dot_dimension_numbers<[1], [0], [0], [1], [0, 0, 1, 1], [], []>} : vector<2x128xbf16>, vector<128x384xbf16>, vector<2x384xf32> -> vector<2x384xf32>
    %c0_65 = arith.constant 0 : index
    %c0_66 = arith.constant 0 : index
    %116 = vector.load %arg4[%c0_65, %c0_66] : memref<1x384xf32, #tpu.memory_space<vmem>>, vector<1x384xf32>
    %117 = vector.broadcast %116 : vector<1x384xf32> to vector<2x384xf32>
    %118 = arith.addf %115, %117 : vector<2x384xf32>
    %119 = vector.extract_strided_slice %112 {offsets = [0, 0], sizes = [2, 128], strides = [1, 1]} : vector<2x384xf32> to vector<2x128xf32>
    %120 = vector.extract_strided_slice %118 {offsets = [0, 0], sizes = [2, 128], strides = [1, 1]} : vector<2x384xf32> to vector<2x128xf32>
    %121 = arith.addf %119, %120 : vector<2x128xf32>
    %122 = arith.negf %121 : vector<2x128xf32>
    %123 = math.exp %122 : vector<2x128xf32>
    %cst_67 = arith.constant 1.000000e+00 : f32
    %124 = vector.broadcast %cst_67 : f32 to vector<2x128xf32>
    %125 = arith.addf %124, %123 : vector<2x128xf32>
    %126 = arith.divf %124, %125 : vector<2x128xf32>
    %127 = vector.extract_strided_slice %112 {offsets = [0, 128], sizes = [2, 128], strides = [1, 1]} : vector<2x384xf32> to vector<2x128xf32>
    %128 = vector.extract_strided_slice %118 {offsets = [0, 128], sizes = [2, 128], strides = [1, 1]} : vector<2x384xf32> to vector<2x128xf32>
    %129 = arith.addf %127, %128 : vector<2x128xf32>
    %130 = arith.negf %129 : vector<2x128xf32>
    %131 = math.exp %130 : vector<2x128xf32>
    %cst_68 = arith.constant 1.000000e+00 : f32
    %132 = vector.broadcast %cst_68 : f32 to vector<2x128xf32>
    %133 = arith.addf %132, %131 : vector<2x128xf32>
    %134 = arith.divf %132, %133 : vector<2x128xf32>
    %135 = vector.extract_strided_slice %112 {offsets = [0, 256], sizes = [2, 128], strides = [1, 1]} : vector<2x384xf32> to vector<2x128xf32>
    %136 = vector.extract_strided_slice %118 {offsets = [0, 256], sizes = [2, 128], strides = [1, 1]} : vector<2x384xf32> to vector<2x128xf32>
    %137 = arith.mulf %126, %136 : vector<2x128xf32>
    %138 = arith.addf %135, %137 : vector<2x128xf32>
    %139 = math.tanh %138 : vector<2x128xf32>
    %cst_69 = arith.constant 1.000000e+00 : f32
    %140 = vector.broadcast %cst_69 : f32 to vector<2x128xf32>
    %141 = arith.subf %140, %134 : vector<2x128xf32>
    %142 = arith.mulf %141, %139 : vector<2x128xf32>
    %143 = arith.mulf %134, %109 : vector<2x128xf32>
    %144 = arith.addf %142, %143 : vector<2x128xf32>
    %c2_i32 = arith.constant 2 : i32
    %145 = arith.index_cast %c2_i32 : i32 to index
    %c0_70 = arith.constant 0 : index
    %c0_71 = arith.constant 0 : index
    %146 = vector.load %arg12[%145, %c0_70, %c0_71] : memref<8x2x384xf32, #tpu.memory_space<vmem>>, vector<1x2x384xf32>
    %147 = vector.shape_cast %146 : vector<1x2x384xf32> to vector<2x384xf32>
    %148 = arith.truncf %144 : vector<2x128xf32> to vector<2x128xbf16>
    %c0_72 = arith.constant 0 : index
    %c0_73 = arith.constant 0 : index
    %149 = vector.load %arg2[%c0_72, %c0_73] : memref<128x384xbf16, #tpu.memory_space<vmem>>, vector<128x384xbf16>
    %cst_74 = arith.constant dense<0.000000e+00> : vector<2x384xf32>
    %150 = tpu.matmul %148, %149, %cst_74 {dimension_numbers = #tpu.dot_dimension_numbers<[1], [0], [0], [1], [0, 0, 1, 1], [], []>} : vector<2x128xbf16>, vector<128x384xbf16>, vector<2x384xf32> -> vector<2x384xf32>
    %c0_75 = arith.constant 0 : index
    %c0_76 = arith.constant 0 : index
    %151 = vector.load %arg4[%c0_75, %c0_76] : memref<1x384xf32, #tpu.memory_space<vmem>>, vector<1x384xf32>
    %152 = vector.broadcast %151 : vector<1x384xf32> to vector<2x384xf32>
    %153 = arith.addf %150, %152 : vector<2x384xf32>
    %154 = vector.extract_strided_slice %147 {offsets = [0, 0], sizes = [2, 128], strides = [1, 1]} : vector<2x384xf32> to vector<2x128xf32>
    %155 = vector.extract_strided_slice %153 {offsets = [0, 0], sizes = [2, 128], strides = [1, 1]} : vector<2x384xf32> to vector<2x128xf32>
    %156 = arith.addf %154, %155 : vector<2x128xf32>
    %157 = arith.negf %156 : vector<2x128xf32>
    %158 = math.exp %157 : vector<2x128xf32>
    %cst_77 = arith.constant 1.000000e+00 : f32
    %159 = vector.broadcast %cst_77 : f32 to vector<2x128xf32>
    %160 = arith.addf %159, %158 : vector<2x128xf32>
    %161 = arith.divf %159, %160 : vector<2x128xf32>
    %162 = vector.extract_strided_slice %147 {offsets = [0, 128], sizes = [2, 128], strides = [1, 1]} : vector<2x384xf32> to vector<2x128xf32>
    %163 = vector.extract_strided_slice %153 {offsets = [0, 128], sizes = [2, 128], strides = [1, 1]} : vector<2x384xf32> to vector<2x128xf32>
    %164 = arith.addf %162, %163 : vector<2x128xf32>
    %165 = arith.negf %164 : vector<2x128xf32>
    %166 = math.exp %165 : vector<2x128xf32>
    %cst_78 = arith.constant 1.000000e+00 : f32
    %167 = vector.broadcast %cst_78 : f32 to vector<2x128xf32>
    %168 = arith.addf %167, %166 : vector<2x128xf32>
    %169 = arith.divf %167, %168 : vector<2x128xf32>
    %170 = vector.extract_strided_slice %147 {offsets = [0, 256], sizes = [2, 128], strides = [1, 1]} : vector<2x384xf32> to vector<2x128xf32>
    %171 = vector.extract_strided_slice %153 {offsets = [0, 256], sizes = [2, 128], strides = [1, 1]} : vector<2x384xf32> to vector<2x128xf32>
    %172 = arith.mulf %161, %171 : vector<2x128xf32>
    %173 = arith.addf %170, %172 : vector<2x128xf32>
    %174 = math.tanh %173 : vector<2x128xf32>
    %cst_79 = arith.constant 1.000000e+00 : f32
    %175 = vector.broadcast %cst_79 : f32 to vector<2x128xf32>
    %176 = arith.subf %175, %169 : vector<2x128xf32>
    %177 = arith.mulf %176, %174 : vector<2x128xf32>
    %178 = arith.mulf %169, %144 : vector<2x128xf32>
    %179 = arith.addf %177, %178 : vector<2x128xf32>
    %c3_i32 = arith.constant 3 : i32
    %180 = arith.index_cast %c3_i32 : i32 to index
    %c0_80 = arith.constant 0 : index
    %c0_81 = arith.constant 0 : index
    %181 = vector.load %arg12[%180, %c0_80, %c0_81] : memref<8x2x384xf32, #tpu.memory_space<vmem>>, vector<1x2x384xf32>
    %182 = vector.shape_cast %181 : vector<1x2x384xf32> to vector<2x384xf32>
    %183 = arith.truncf %179 : vector<2x128xf32> to vector<2x128xbf16>
    %c0_82 = arith.constant 0 : index
    %c0_83 = arith.constant 0 : index
    %184 = vector.load %arg2[%c0_82, %c0_83] : memref<128x384xbf16, #tpu.memory_space<vmem>>, vector<128x384xbf16>
    %cst_84 = arith.constant dense<0.000000e+00> : vector<2x384xf32>
    %185 = tpu.matmul %183, %184, %cst_84 {dimension_numbers = #tpu.dot_dimension_numbers<[1], [0], [0], [1], [0, 0, 1, 1], [], []>} : vector<2x128xbf16>, vector<128x384xbf16>, vector<2x384xf32> -> vector<2x384xf32>
    %c0_85 = arith.constant 0 : index
    %c0_86 = arith.constant 0 : index
    %186 = vector.load %arg4[%c0_85, %c0_86] : memref<1x384xf32, #tpu.memory_space<vmem>>, vector<1x384xf32>
    %187 = vector.broadcast %186 : vector<1x384xf32> to vector<2x384xf32>
    %188 = arith.addf %185, %187 : vector<2x384xf32>
    %189 = vector.extract_strided_slice %182 {offsets = [0, 0], sizes = [2, 128], strides = [1, 1]} : vector<2x384xf32> to vector<2x128xf32>
    %190 = vector.extract_strided_slice %188 {offsets = [0, 0], sizes = [2, 128], strides = [1, 1]} : vector<2x384xf32> to vector<2x128xf32>
    %191 = arith.addf %189, %190 : vector<2x128xf32>
    %192 = arith.negf %191 : vector<2x128xf32>
    %193 = math.exp %192 : vector<2x128xf32>
    %cst_87 = arith.constant 1.000000e+00 : f32
    %194 = vector.broadcast %cst_87 : f32 to vector<2x128xf32>
    %195 = arith.addf %194, %193 : vector<2x128xf32>
    %196 = arith.divf %194, %195 : vector<2x128xf32>
    %197 = vector.extract_strided_slice %182 {offsets = [0, 128], sizes = [2, 128], strides = [1, 1]} : vector<2x384xf32> to vector<2x128xf32>
    %198 = vector.extract_strided_slice %188 {offsets = [0, 128], sizes = [2, 128], strides = [1, 1]} : vector<2x384xf32> to vector<2x128xf32>
    %199 = arith.addf %197, %198 : vector<2x128xf32>
    %200 = arith.negf %199 : vector<2x128xf32>
    %201 = math.exp %200 : vector<2x128xf32>
    %cst_88 = arith.constant 1.000000e+00 : f32
    %202 = vector.broadcast %cst_88 : f32 to vector<2x128xf32>
    %203 = arith.addf %202, %201 : vector<2x128xf32>
    %204 = arith.divf %202, %203 : vector<2x128xf32>
    %205 = vector.extract_strided_slice %182 {offsets = [0, 256], sizes = [2, 128], strides = [1, 1]} : vector<2x384xf32> to vector<2x128xf32>
    %206 = vector.extract_strided_slice %188 {offsets = [0, 256], sizes = [2, 128], strides = [1, 1]} : vector<2x384xf32> to vector<2x128xf32>
    %207 = arith.mulf %196, %206 : vector<2x128xf32>
    %208 = arith.addf %205, %207 : vector<2x128xf32>
    %209 = math.tanh %208 : vector<2x128xf32>
    %cst_89 = arith.constant 1.000000e+00 : f32
    %210 = vector.broadcast %cst_89 : f32 to vector<2x128xf32>
    %211 = arith.subf %210, %204 : vector<2x128xf32>
    %212 = arith.mulf %211, %209 : vector<2x128xf32>
    %213 = arith.mulf %204, %179 : vector<2x128xf32>
    %214 = arith.addf %212, %213 : vector<2x128xf32>
    %c4_i32 = arith.constant 4 : i32
    %215 = arith.index_cast %c4_i32 : i32 to index
    %c0_90 = arith.constant 0 : index
    %c0_91 = arith.constant 0 : index
    %216 = vector.load %arg12[%215, %c0_90, %c0_91] : memref<8x2x384xf32, #tpu.memory_space<vmem>>, vector<1x2x384xf32>
    %217 = vector.shape_cast %216 : vector<1x2x384xf32> to vector<2x384xf32>
    %218 = arith.truncf %214 : vector<2x128xf32> to vector<2x128xbf16>
    %c0_92 = arith.constant 0 : index
    %c0_93 = arith.constant 0 : index
    %219 = vector.load %arg2[%c0_92, %c0_93] : memref<128x384xbf16, #tpu.memory_space<vmem>>, vector<128x384xbf16>
    %cst_94 = arith.constant dense<0.000000e+00> : vector<2x384xf32>
    %220 = tpu.matmul %218, %219, %cst_94 {dimension_numbers = #tpu.dot_dimension_numbers<[1], [0], [0], [1], [0, 0, 1, 1], [], []>} : vector<2x128xbf16>, vector<128x384xbf16>, vector<2x384xf32> -> vector<2x384xf32>
    %c0_95 = arith.constant 0 : index
    %c0_96 = arith.constant 0 : index
    %221 = vector.load %arg4[%c0_95, %c0_96] : memref<1x384xf32, #tpu.memory_space<vmem>>, vector<1x384xf32>
    %222 = vector.broadcast %221 : vector<1x384xf32> to vector<2x384xf32>
    %223 = arith.addf %220, %222 : vector<2x384xf32>
    %224 = vector.extract_strided_slice %217 {offsets = [0, 0], sizes = [2, 128], strides = [1, 1]} : vector<2x384xf32> to vector<2x128xf32>
    %225 = vector.extract_strided_slice %223 {offsets = [0, 0], sizes = [2, 128], strides = [1, 1]} : vector<2x384xf32> to vector<2x128xf32>
    %226 = arith.addf %224, %225 : vector<2x128xf32>
    %227 = arith.negf %226 : vector<2x128xf32>
    %228 = math.exp %227 : vector<2x128xf32>
    %cst_97 = arith.constant 1.000000e+00 : f32
    %229 = vector.broadcast %cst_97 : f32 to vector<2x128xf32>
    %230 = arith.addf %229, %228 : vector<2x128xf32>
    %231 = arith.divf %229, %230 : vector<2x128xf32>
    %232 = vector.extract_strided_slice %217 {offsets = [0, 128], sizes = [2, 128], strides = [1, 1]} : vector<2x384xf32> to vector<2x128xf32>
    %233 = vector.extract_strided_slice %223 {offsets = [0, 128], sizes = [2, 128], strides = [1, 1]} : vector<2x384xf32> to vector<2x128xf32>
    %234 = arith.addf %232, %233 : vector<2x128xf32>
    %235 = arith.negf %234 : vector<2x128xf32>
    %236 = math.exp %235 : vector<2x128xf32>
    %cst_98 = arith.constant 1.000000e+00 : f32
    %237 = vector.broadcast %cst_98 : f32 to vector<2x128xf32>
    %238 = arith.addf %237, %236 : vector<2x128xf32>
    %239 = arith.divf %237, %238 : vector<2x128xf32>
    %240 = vector.extract_strided_slice %217 {offsets = [0, 256], sizes = [2, 128], strides = [1, 1]} : vector<2x384xf32> to vector<2x128xf32>
    %241 = vector.extract_strided_slice %223 {offsets = [0, 256], sizes = [2, 128], strides = [1, 1]} : vector<2x384xf32> to vector<2x128xf32>
    %242 = arith.mulf %231, %241 : vector<2x128xf32>
    %243 = arith.addf %240, %242 : vector<2x128xf32>
    %244 = math.tanh %243 : vector<2x128xf32>
    %cst_99 = arith.constant 1.000000e+00 : f32
    %245 = vector.broadcast %cst_99 : f32 to vector<2x128xf32>
    %246 = arith.subf %245, %239 : vector<2x128xf32>
    %247 = arith.mulf %246, %244 : vector<2x128xf32>
    %248 = arith.mulf %239, %214 : vector<2x128xf32>
    %249 = arith.addf %247, %248 : vector<2x128xf32>
    %c5_i32 = arith.constant 5 : i32
    %250 = arith.index_cast %c5_i32 : i32 to index
    %c0_100 = arith.constant 0 : index
    %c0_101 = arith.constant 0 : index
    %251 = vector.load %arg12[%250, %c0_100, %c0_101] : memref<8x2x384xf32, #tpu.memory_space<vmem>>, vector<1x2x384xf32>
    %252 = vector.shape_cast %251 : vector<1x2x384xf32> to vector<2x384xf32>
    %253 = arith.truncf %249 : vector<2x128xf32> to vector<2x128xbf16>
    %c0_102 = arith.constant 0 : index
    %c0_103 = arith.constant 0 : index
    %254 = vector.load %arg2[%c0_102, %c0_103] : memref<128x384xbf16, #tpu.memory_space<vmem>>, vector<128x384xbf16>
    %cst_104 = arith.constant dense<0.000000e+00> : vector<2x384xf32>
    %255 = tpu.matmul %253, %254, %cst_104 {dimension_numbers = #tpu.dot_dimension_numbers<[1], [0], [0], [1], [0, 0, 1, 1], [], []>} : vector<2x128xbf16>, vector<128x384xbf16>, vector<2x384xf32> -> vector<2x384xf32>
    %c0_105 = arith.constant 0 : index
    %c0_106 = arith.constant 0 : index
    %256 = vector.load %arg4[%c0_105, %c0_106] : memref<1x384xf32, #tpu.memory_space<vmem>>, vector<1x384xf32>
    %257 = vector.broadcast %256 : vector<1x384xf32> to vector<2x384xf32>
    %258 = arith.addf %255, %257 : vector<2x384xf32>
    %259 = vector.extract_strided_slice %252 {offsets = [0, 0], sizes = [2, 128], strides = [1, 1]} : vector<2x384xf32> to vector<2x128xf32>
    %260 = vector.extract_strided_slice %258 {offsets = [0, 0], sizes = [2, 128], strides = [1, 1]} : vector<2x384xf32> to vector<2x128xf32>
    %261 = arith.addf %259, %260 : vector<2x128xf32>
    %262 = arith.negf %261 : vector<2x128xf32>
    %263 = math.exp %262 : vector<2x128xf32>
    %cst_107 = arith.constant 1.000000e+00 : f32
    %264 = vector.broadcast %cst_107 : f32 to vector<2x128xf32>
    %265 = arith.addf %264, %263 : vector<2x128xf32>
    %266 = arith.divf %264, %265 : vector<2x128xf32>
    %267 = vector.extract_strided_slice %252 {offsets = [0, 128], sizes = [2, 128], strides = [1, 1]} : vector<2x384xf32> to vector<2x128xf32>
    %268 = vector.extract_strided_slice %258 {offsets = [0, 128], sizes = [2, 128], strides = [1, 1]} : vector<2x384xf32> to vector<2x128xf32>
    %269 = arith.addf %267, %268 : vector<2x128xf32>
    %270 = arith.negf %269 : vector<2x128xf32>
    %271 = math.exp %270 : vector<2x128xf32>
    %cst_108 = arith.constant 1.000000e+00 : f32
    %272 = vector.broadcast %cst_108 : f32 to vector<2x128xf32>
    %273 = arith.addf %272, %271 : vector<2x128xf32>
    %274 = arith.divf %272, %273 : vector<2x128xf32>
    %275 = vector.extract_strided_slice %252 {offsets = [0, 256], sizes = [2, 128], strides = [1, 1]} : vector<2x384xf32> to vector<2x128xf32>
    %276 = vector.extract_strided_slice %258 {offsets = [0, 256], sizes = [2, 128], strides = [1, 1]} : vector<2x384xf32> to vector<2x128xf32>
    %277 = arith.mulf %266, %276 : vector<2x128xf32>
    %278 = arith.addf %275, %277 : vector<2x128xf32>
    %279 = math.tanh %278 : vector<2x128xf32>
    %cst_109 = arith.constant 1.000000e+00 : f32
    %280 = vector.broadcast %cst_109 : f32 to vector<2x128xf32>
    %281 = arith.subf %280, %274 : vector<2x128xf32>
    %282 = arith.mulf %281, %279 : vector<2x128xf32>
    %283 = arith.mulf %274, %249 : vector<2x128xf32>
    %284 = arith.addf %282, %283 : vector<2x128xf32>
    %c6_i32 = arith.constant 6 : i32
    %285 = arith.index_cast %c6_i32 : i32 to index
    %c0_110 = arith.constant 0 : index
    %c0_111 = arith.constant 0 : index
    %286 = vector.load %arg12[%285, %c0_110, %c0_111] : memref<8x2x384xf32, #tpu.memory_space<vmem>>, vector<1x2x384xf32>
    %287 = vector.shape_cast %286 : vector<1x2x384xf32> to vector<2x384xf32>
    %288 = arith.truncf %284 : vector<2x128xf32> to vector<2x128xbf16>
    %c0_112 = arith.constant 0 : index
    %c0_113 = arith.constant 0 : index
    %289 = vector.load %arg2[%c0_112, %c0_113] : memref<128x384xbf16, #tpu.memory_space<vmem>>, vector<128x384xbf16>
    %cst_114 = arith.constant dense<0.000000e+00> : vector<2x384xf32>
    %290 = tpu.matmul %288, %289, %cst_114 {dimension_numbers = #tpu.dot_dimension_numbers<[1], [0], [0], [1], [0, 0, 1, 1], [], []>} : vector<2x128xbf16>, vector<128x384xbf16>, vector<2x384xf32> -> vector<2x384xf32>
    %c0_115 = arith.constant 0 : index
    %c0_116 = arith.constant 0 : index
    %291 = vector.load %arg4[%c0_115, %c0_116] : memref<1x384xf32, #tpu.memory_space<vmem>>, vector<1x384xf32>
    %292 = vector.broadcast %291 : vector<1x384xf32> to vector<2x384xf32>
    %293 = arith.addf %290, %292 : vector<2x384xf32>
    %294 = vector.extract_strided_slice %287 {offsets = [0, 0], sizes = [2, 128], strides = [1, 1]} : vector<2x384xf32> to vector<2x128xf32>
    %295 = vector.extract_strided_slice %293 {offsets = [0, 0], sizes = [2, 128], strides = [1, 1]} : vector<2x384xf32> to vector<2x128xf32>
    %296 = arith.addf %294, %295 : vector<2x128xf32>
    %297 = arith.negf %296 : vector<2x128xf32>
    %298 = math.exp %297 : vector<2x128xf32>
    %cst_117 = arith.constant 1.000000e+00 : f32
    %299 = vector.broadcast %cst_117 : f32 to vector<2x128xf32>
    %300 = arith.addf %299, %298 : vector<2x128xf32>
    %301 = arith.divf %299, %300 : vector<2x128xf32>
    %302 = vector.extract_strided_slice %287 {offsets = [0, 128], sizes = [2, 128], strides = [1, 1]} : vector<2x384xf32> to vector<2x128xf32>
    %303 = vector.extract_strided_slice %293 {offsets = [0, 128], sizes = [2, 128], strides = [1, 1]} : vector<2x384xf32> to vector<2x128xf32>
    %304 = arith.addf %302, %303 : vector<2x128xf32>
    %305 = arith.negf %304 : vector<2x128xf32>
    %306 = math.exp %305 : vector<2x128xf32>
    %cst_118 = arith.constant 1.000000e+00 : f32
    %307 = vector.broadcast %cst_118 : f32 to vector<2x128xf32>
    %308 = arith.addf %307, %306 : vector<2x128xf32>
    %309 = arith.divf %307, %308 : vector<2x128xf32>
    %310 = vector.extract_strided_slice %287 {offsets = [0, 256], sizes = [2, 128], strides = [1, 1]} : vector<2x384xf32> to vector<2x128xf32>
    %311 = vector.extract_strided_slice %293 {offsets = [0, 256], sizes = [2, 128], strides = [1, 1]} : vector<2x384xf32> to vector<2x128xf32>
    %312 = arith.mulf %301, %311 : vector<2x128xf32>
    %313 = arith.addf %310, %312 : vector<2x128xf32>
    %314 = math.tanh %313 : vector<2x128xf32>
    %cst_119 = arith.constant 1.000000e+00 : f32
    %315 = vector.broadcast %cst_119 : f32 to vector<2x128xf32>
    %316 = arith.subf %315, %309 : vector<2x128xf32>
    %317 = arith.mulf %316, %314 : vector<2x128xf32>
    %318 = arith.mulf %309, %284 : vector<2x128xf32>
    %319 = arith.addf %317, %318 : vector<2x128xf32>
    %c7_i32 = arith.constant 7 : i32
    %320 = arith.index_cast %c7_i32 : i32 to index
    %c0_120 = arith.constant 0 : index
    %c0_121 = arith.constant 0 : index
    %321 = vector.load %arg12[%320, %c0_120, %c0_121] : memref<8x2x384xf32, #tpu.memory_space<vmem>>, vector<1x2x384xf32>
    %322 = vector.shape_cast %321 : vector<1x2x384xf32> to vector<2x384xf32>
    %323 = arith.truncf %319 : vector<2x128xf32> to vector<2x128xbf16>
    %c0_122 = arith.constant 0 : index
    %c0_123 = arith.constant 0 : index
    %324 = vector.load %arg2[%c0_122, %c0_123] : memref<128x384xbf16, #tpu.memory_space<vmem>>, vector<128x384xbf16>
    %cst_124 = arith.constant dense<0.000000e+00> : vector<2x384xf32>
    %325 = tpu.matmul %323, %324, %cst_124 {dimension_numbers = #tpu.dot_dimension_numbers<[1], [0], [0], [1], [0, 0, 1, 1], [], []>} : vector<2x128xbf16>, vector<128x384xbf16>, vector<2x384xf32> -> vector<2x384xf32>
    %c0_125 = arith.constant 0 : index
    %c0_126 = arith.constant 0 : index
    %326 = vector.load %arg4[%c0_125, %c0_126] : memref<1x384xf32, #tpu.memory_space<vmem>>, vector<1x384xf32>
    %327 = vector.broadcast %326 : vector<1x384xf32> to vector<2x384xf32>
    %328 = arith.addf %325, %327 : vector<2x384xf32>
    %329 = vector.extract_strided_slice %322 {offsets = [0, 0], sizes = [2, 128], strides = [1, 1]} : vector<2x384xf32> to vector<2x128xf32>
    %330 = vector.extract_strided_slice %328 {offsets = [0, 0], sizes = [2, 128], strides = [1, 1]} : vector<2x384xf32> to vector<2x128xf32>
    %331 = arith.addf %329, %330 : vector<2x128xf32>
    %332 = arith.negf %331 : vector<2x128xf32>
    %333 = math.exp %332 : vector<2x128xf32>
    %cst_127 = arith.constant 1.000000e+00 : f32
    %334 = vector.broadcast %cst_127 : f32 to vector<2x128xf32>
    %335 = arith.addf %334, %333 : vector<2x128xf32>
    %336 = arith.divf %334, %335 : vector<2x128xf32>
    %337 = vector.extract_strided_slice %322 {offsets = [0, 128], sizes = [2, 128], strides = [1, 1]} : vector<2x384xf32> to vector<2x128xf32>
    %338 = vector.extract_strided_slice %328 {offsets = [0, 128], sizes = [2, 128], strides = [1, 1]} : vector<2x384xf32> to vector<2x128xf32>
    %339 = arith.addf %337, %338 : vector<2x128xf32>
    %340 = arith.negf %339 : vector<2x128xf32>
    %341 = math.exp %340 : vector<2x128xf32>
    %cst_128 = arith.constant 1.000000e+00 : f32
    %342 = vector.broadcast %cst_128 : f32 to vector<2x128xf32>
    %343 = arith.addf %342, %341 : vector<2x128xf32>
    %344 = arith.divf %342, %343 : vector<2x128xf32>
    %345 = vector.extract_strided_slice %322 {offsets = [0, 256], sizes = [2, 128], strides = [1, 1]} : vector<2x384xf32> to vector<2x128xf32>
    %346 = vector.extract_strided_slice %328 {offsets = [0, 256], sizes = [2, 128], strides = [1, 1]} : vector<2x384xf32> to vector<2x128xf32>
    %347 = arith.mulf %336, %346 : vector<2x128xf32>
    %348 = arith.addf %345, %347 : vector<2x128xf32>
    %349 = math.tanh %348 : vector<2x128xf32>
    %cst_129 = arith.constant 1.000000e+00 : f32
    %350 = vector.broadcast %cst_129 : f32 to vector<2x128xf32>
    %351 = arith.subf %350, %344 : vector<2x128xf32>
    %352 = arith.mulf %351, %349 : vector<2x128xf32>
    %353 = arith.mulf %344, %319 : vector<2x128xf32>
    %354 = arith.addf %352, %353 : vector<2x128xf32>
    %c8_i32 = arith.constant 8 : i32
    %c0_i32_130 = arith.constant 0 : i32
    %355 = arith.index_cast %c0_i32_130 : i32 to index
    %c0_131 = arith.constant 0 : index
    %c0_132 = arith.constant 0 : index
    %356 = vector.load %arg13[%355, %c0_131, %c0_132] : memref<7x2x384xf32, #tpu.memory_space<vmem>>, vector<1x2x384xf32>
    %357 = vector.shape_cast %356 : vector<1x2x384xf32> to vector<2x384xf32>
    %358 = arith.truncf %354 : vector<2x128xf32> to vector<2x128xbf16>
    %c0_133 = arith.constant 0 : index
    %c0_134 = arith.constant 0 : index
    %359 = vector.load %arg6[%c0_133, %c0_134] : memref<128x384xbf16, #tpu.memory_space<vmem>>, vector<128x384xbf16>
    %cst_135 = arith.constant dense<0.000000e+00> : vector<2x384xf32>
    %360 = tpu.matmul %358, %359, %cst_135 {dimension_numbers = #tpu.dot_dimension_numbers<[1], [0], [0], [1], [0, 0, 1, 1], [], []>} : vector<2x128xbf16>, vector<128x384xbf16>, vector<2x384xf32> -> vector<2x384xf32>
    %c0_136 = arith.constant 0 : index
    %c0_137 = arith.constant 0 : index
    %361 = vector.load %arg8[%c0_136, %c0_137] : memref<1x384xf32, #tpu.memory_space<vmem>>, vector<1x384xf32>
    %362 = vector.broadcast %361 : vector<1x384xf32> to vector<2x384xf32>
    %363 = arith.addf %360, %362 : vector<2x384xf32>
    %364 = vector.extract_strided_slice %357 {offsets = [0, 0], sizes = [2, 128], strides = [1, 1]} : vector<2x384xf32> to vector<2x128xf32>
    %365 = vector.extract_strided_slice %363 {offsets = [0, 0], sizes = [2, 128], strides = [1, 1]} : vector<2x384xf32> to vector<2x128xf32>
    %366 = arith.addf %364, %365 : vector<2x128xf32>
    %367 = arith.negf %366 : vector<2x128xf32>
    %368 = math.exp %367 : vector<2x128xf32>
    %cst_138 = arith.constant 1.000000e+00 : f32
    %369 = vector.broadcast %cst_138 : f32 to vector<2x128xf32>
    %370 = arith.addf %369, %368 : vector<2x128xf32>
    %371 = arith.divf %369, %370 : vector<2x128xf32>
    %372 = vector.extract_strided_slice %357 {offsets = [0, 128], sizes = [2, 128], strides = [1, 1]} : vector<2x384xf32> to vector<2x128xf32>
    %373 = vector.extract_strided_slice %363 {offsets = [0, 128], sizes = [2, 128], strides = [1, 1]} : vector<2x384xf32> to vector<2x128xf32>
    %374 = arith.addf %372, %373 : vector<2x128xf32>
    %375 = arith.negf %374 : vector<2x128xf32>
    %376 = math.exp %375 : vector<2x128xf32>
    %cst_139 = arith.constant 1.000000e+00 : f32
    %377 = vector.broadcast %cst_139 : f32 to vector<2x128xf32>
    %378 = arith.addf %377, %376 : vector<2x128xf32>
    %379 = arith.divf %377, %378 : vector<2x128xf32>
    %380 = vector.extract_strided_slice %357 {offsets = [0, 256], sizes = [2, 128], strides = [1, 1]} : vector<2x384xf32> to vector<2x128xf32>
    %381 = vector.extract_strided_slice %363 {offsets = [0, 256], sizes = [2, 128], strides = [1, 1]} : vector<2x384xf32> to vector<2x128xf32>
    %382 = arith.mulf %371, %381 : vector<2x128xf32>
    %383 = arith.addf %380, %382 : vector<2x128xf32>
    %384 = math.tanh %383 : vector<2x128xf32>
    %cst_140 = arith.constant 1.000000e+00 : f32
    %385 = vector.broadcast %cst_140 : f32 to vector<2x128xf32>
    %386 = arith.subf %385, %379 : vector<2x128xf32>
    %387 = arith.mulf %386, %384 : vector<2x128xf32>
    %388 = arith.mulf %379, %354 : vector<2x128xf32>
    %389 = arith.addf %387, %388 : vector<2x128xf32>
    %390 = arith.index_cast %c0_i32_130 : i32 to index
    %c0_141 = arith.constant 0 : index
    %c0_142 = arith.constant 0 : index
    %391 = vector.load %arg14[%390, %c0_141, %c0_142] : memref<7x2x128xf32, #tpu.memory_space<vmem>>, vector<1x2x128xf32>
    %392 = vector.shape_cast %391 : vector<1x2x128xf32> to vector<2x128xf32>
    %393 = vector.shape_cast %389 : vector<2x128xf32> to vector<1x2x128xf32>
    tpu.vector_store %arg14[%390, %c0_141, %c0_142], %393 {strides = array<i32>} : memref<7x2x128xf32, #tpu.memory_space<vmem>>, vector<1x2x128xf32>,
    %c1_i32_143 = arith.constant 1 : i32
    %394 = arith.index_cast %c1_i32_143 : i32 to index
    %c0_144 = arith.constant 0 : index
    %c0_145 = arith.constant 0 : index
    %395 = vector.load %arg13[%394, %c0_144, %c0_145] : memref<7x2x384xf32, #tpu.memory_space<vmem>>, vector<1x2x384xf32>
    %396 = vector.shape_cast %395 : vector<1x2x384xf32> to vector<2x384xf32>
    %397 = arith.truncf %389 : vector<2x128xf32> to vector<2x128xbf16>
    %c0_146 = arith.constant 0 : index
    %c0_147 = arith.constant 0 : index
    %398 = vector.load %arg6[%c0_146, %c0_147] : memref<128x384xbf16, #tpu.memory_space<vmem>>, vector<128x384xbf16>
    %cst_148 = arith.constant dense<0.000000e+00> : vector<2x384xf32>
    %399 = tpu.matmul %397, %398, %cst_148 {dimension_numbers = #tpu.dot_dimension_numbers<[1], [0], [0], [1], [0, 0, 1, 1], [], []>} : vector<2x128xbf16>, vector<128x384xbf16>, vector<2x384xf32> -> vector<2x384xf32>
    %c0_149 = arith.constant 0 : index
    %c0_150 = arith.constant 0 : index
    %400 = vector.load %arg8[%c0_149, %c0_150] : memref<1x384xf32, #tpu.memory_space<vmem>>, vector<1x384xf32>
    %401 = vector.broadcast %400 : vector<1x384xf32> to vector<2x384xf32>
    %402 = arith.addf %399, %401 : vector<2x384xf32>
    %403 = vector.extract_strided_slice %396 {offsets = [0, 0], sizes = [2, 128], strides = [1, 1]} : vector<2x384xf32> to vector<2x128xf32>
    %404 = vector.extract_strided_slice %402 {offsets = [0, 0], sizes = [2, 128], strides = [1, 1]} : vector<2x384xf32> to vector<2x128xf32>
    %405 = arith.addf %403, %404 : vector<2x128xf32>
    %406 = arith.negf %405 : vector<2x128xf32>
    %407 = math.exp %406 : vector<2x128xf32>
    %cst_151 = arith.constant 1.000000e+00 : f32
    %408 = vector.broadcast %cst_151 : f32 to vector<2x128xf32>
    %409 = arith.addf %408, %407 : vector<2x128xf32>
    %410 = arith.divf %408, %409 : vector<2x128xf32>
    %411 = vector.extract_strided_slice %396 {offsets = [0, 128], sizes = [2, 128], strides = [1, 1]} : vector<2x384xf32> to vector<2x128xf32>
    %412 = vector.extract_strided_slice %402 {offsets = [0, 128], sizes = [2, 128], strides = [1, 1]} : vector<2x384xf32> to vector<2x128xf32>
    %413 = arith.addf %411, %412 : vector<2x128xf32>
    %414 = arith.negf %413 : vector<2x128xf32>
    %415 = math.exp %414 : vector<2x128xf32>
    %cst_152 = arith.constant 1.000000e+00 : f32
    %416 = vector.broadcast %cst_152 : f32 to vector<2x128xf32>
    %417 = arith.addf %416, %415 : vector<2x128xf32>
    %418 = arith.divf %416, %417 : vector<2x128xf32>
    %419 = vector.extract_strided_slice %396 {offsets = [0, 256], sizes = [2, 128], strides = [1, 1]} : vector<2x384xf32> to vector<2x128xf32>
    %420 = vector.extract_strided_slice %402 {offsets = [0, 256], sizes = [2, 128], strides = [1, 1]} : vector<2x384xf32> to vector<2x128xf32>
    %421 = arith.mulf %410, %420 : vector<2x128xf32>
    %422 = arith.addf %419, %421 : vector<2x128xf32>
    %423 = math.tanh %422 : vector<2x128xf32>
    %cst_153 = arith.constant 1.000000e+00 : f32
    %424 = vector.broadcast %cst_153 : f32 to vector<2x128xf32>
    %425 = arith.subf %424, %418 : vector<2x128xf32>
    %426 = arith.mulf %425, %423 : vector<2x128xf32>
    %427 = arith.mulf %418, %389 : vector<2x128xf32>
    %428 = arith.addf %426, %427 : vector<2x128xf32>
    %429 = arith.index_cast %c1_i32_143 : i32 to index
    %c0_154 = arith.constant 0 : index
    %c0_155 = arith.constant 0 : index
    %430 = vector.load %arg14[%429, %c0_154, %c0_155] : memref<7x2x128xf32, #tpu.memory_space<vmem>>, vector<1x2x128xf32>
    %431 = vector.shape_cast %430 : vector<1x2x128xf32> to vector<2x128xf32>
    %432 = vector.shape_cast %428 : vector<2x128xf32> to vector<1x2x128xf32>
    tpu.vector_store %arg14[%429, %c0_154, %c0_155], %432 {strides = array<i32>} : memref<7x2x128xf32, #tpu.memory_space<vmem>>, vector<1x2x128xf32>,
    %c2_i32_156 = arith.constant 2 : i32
    %433 = arith.index_cast %c2_i32_156 : i32 to index
    %c0_157 = arith.constant 0 : index
    %c0_158 = arith.constant 0 : index
    %434 = vector.load %arg13[%433, %c0_157, %c0_158] : memref<7x2x384xf32, #tpu.memory_space<vmem>>, vector<1x2x384xf32>
    %435 = vector.shape_cast %434 : vector<1x2x384xf32> to vector<2x384xf32>
    %436 = arith.truncf %428 : vector<2x128xf32> to vector<2x128xbf16>
    %c0_159 = arith.constant 0 : index
    %c0_160 = arith.constant 0 : index
    %437 = vector.load %arg6[%c0_159, %c0_160] : memref<128x384xbf16, #tpu.memory_space<vmem>>, vector<128x384xbf16>
    %cst_161 = arith.constant dense<0.000000e+00> : vector<2x384xf32>
    %438 = tpu.matmul %436, %437, %cst_161 {dimension_numbers = #tpu.dot_dimension_numbers<[1], [0], [0], [1], [0, 0, 1, 1], [], []>} : vector<2x128xbf16>, vector<128x384xbf16>, vector<2x384xf32> -> vector<2x384xf32>
    %c0_162 = arith.constant 0 : index
    %c0_163 = arith.constant 0 : index
    %439 = vector.load %arg8[%c0_162, %c0_163] : memref<1x384xf32, #tpu.memory_space<vmem>>, vector<1x384xf32>
    %440 = vector.broadcast %439 : vector<1x384xf32> to vector<2x384xf32>
    %441 = arith.addf %438, %440 : vector<2x384xf32>
    %442 = vector.extract_strided_slice %435 {offsets = [0, 0], sizes = [2, 128], strides = [1, 1]} : vector<2x384xf32> to vector<2x128xf32>
    %443 = vector.extract_strided_slice %441 {offsets = [0, 0], sizes = [2, 128], strides = [1, 1]} : vector<2x384xf32> to vector<2x128xf32>
    %444 = arith.addf %442, %443 : vector<2x128xf32>
    %445 = arith.negf %444 : vector<2x128xf32>
    %446 = math.exp %445 : vector<2x128xf32>
    %cst_164 = arith.constant 1.000000e+00 : f32
    %447 = vector.broadcast %cst_164 : f32 to vector<2x128xf32>
    %448 = arith.addf %447, %446 : vector<2x128xf32>
    %449 = arith.divf %447, %448 : vector<2x128xf32>
    %450 = vector.extract_strided_slice %435 {offsets = [0, 128], sizes = [2, 128], strides = [1, 1]} : vector<2x384xf32> to vector<2x128xf32>
    %451 = vector.extract_strided_slice %441 {offsets = [0, 128], sizes = [2, 128], strides = [1, 1]} : vector<2x384xf32> to vector<2x128xf32>
    %452 = arith.addf %450, %451 : vector<2x128xf32>
    %453 = arith.negf %452 : vector<2x128xf32>
    %454 = math.exp %453 : vector<2x128xf32>
    %cst_165 = arith.constant 1.000000e+00 : f32
    %455 = vector.broadcast %cst_165 : f32 to vector<2x128xf32>
    %456 = arith.addf %455, %454 : vector<2x128xf32>
    %457 = arith.divf %455, %456 : vector<2x128xf32>
    %458 = vector.extract_strided_slice %435 {offsets = [0, 256], sizes = [2, 128], strides = [1, 1]} : vector<2x384xf32> to vector<2x128xf32>
    %459 = vector.extract_strided_slice %441 {offsets = [0, 256], sizes = [2, 128], strides = [1, 1]} : vector<2x384xf32> to vector<2x128xf32>
    %460 = arith.mulf %449, %459 : vector<2x128xf32>
    %461 = arith.addf %458, %460 : vector<2x128xf32>
    %462 = math.tanh %461 : vector<2x128xf32>
    %cst_166 = arith.constant 1.000000e+00 : f32
    %463 = vector.broadcast %cst_166 : f32 to vector<2x128xf32>
    %464 = arith.subf %463, %457 : vector<2x128xf32>
    %465 = arith.mulf %464, %462 : vector<2x128xf32>
    %466 = arith.mulf %457, %428 : vector<2x128xf32>
    %467 = arith.addf %465, %466 : vector<2x128xf32>
    %468 = arith.index_cast %c2_i32_156 : i32 to index
    %c0_167 = arith.constant 0 : index
    %c0_168 = arith.constant 0 : index
    %469 = vector.load %arg14[%468, %c0_167, %c0_168] : memref<7x2x128xf32, #tpu.memory_space<vmem>>, vector<1x2x128xf32>
    %470 = vector.shape_cast %469 : vector<1x2x128xf32> to vector<2x128xf32>
    %471 = vector.shape_cast %467 : vector<2x128xf32> to vector<1x2x128xf32>
    tpu.vector_store %arg14[%468, %c0_167, %c0_168], %471 {strides = array<i32>} : memref<7x2x128xf32, #tpu.memory_space<vmem>>, vector<1x2x128xf32>,
    %c3_i32_169 = arith.constant 3 : i32
    %472 = arith.index_cast %c3_i32_169 : i32 to index
    %c0_170 = arith.constant 0 : index
    %c0_171 = arith.constant 0 : index
    %473 = vector.load %arg13[%472, %c0_170, %c0_171] : memref<7x2x384xf32, #tpu.memory_space<vmem>>, vector<1x2x384xf32>
    %474 = vector.shape_cast %473 : vector<1x2x384xf32> to vector<2x384xf32>
    %475 = arith.truncf %467 : vector<2x128xf32> to vector<2x128xbf16>
    %c0_172 = arith.constant 0 : index
    %c0_173 = arith.constant 0 : index
    %476 = vector.load %arg6[%c0_172, %c0_173] : memref<128x384xbf16, #tpu.memory_space<vmem>>, vector<128x384xbf16>
    %cst_174 = arith.constant dense<0.000000e+00> : vector<2x384xf32>
    %477 = tpu.matmul %475, %476, %cst_174 {dimension_numbers = #tpu.dot_dimension_numbers<[1], [0], [0], [1], [0, 0, 1, 1], [], []>} : vector<2x128xbf16>, vector<128x384xbf16>, vector<2x384xf32> -> vector<2x384xf32>
    %c0_175 = arith.constant 0 : index
    %c0_176 = arith.constant 0 : index
    %478 = vector.load %arg8[%c0_175, %c0_176] : memref<1x384xf32, #tpu.memory_space<vmem>>, vector<1x384xf32>
    %479 = vector.broadcast %478 : vector<1x384xf32> to vector<2x384xf32>
    %480 = arith.addf %477, %479 : vector<2x384xf32>
    %481 = vector.extract_strided_slice %474 {offsets = [0, 0], sizes = [2, 128], strides = [1, 1]} : vector<2x384xf32> to vector<2x128xf32>
    %482 = vector.extract_strided_slice %480 {offsets = [0, 0], sizes = [2, 128], strides = [1, 1]} : vector<2x384xf32> to vector<2x128xf32>
    %483 = arith.addf %481, %482 : vector<2x128xf32>
    %484 = arith.negf %483 : vector<2x128xf32>
    %485 = math.exp %484 : vector<2x128xf32>
    %cst_177 = arith.constant 1.000000e+00 : f32
    %486 = vector.broadcast %cst_177 : f32 to vector<2x128xf32>
    %487 = arith.addf %486, %485 : vector<2x128xf32>
    %488 = arith.divf %486, %487 : vector<2x128xf32>
    %489 = vector.extract_strided_slice %474 {offsets = [0, 128], sizes = [2, 128], strides = [1, 1]} : vector<2x384xf32> to vector<2x128xf32>
    %490 = vector.extract_strided_slice %480 {offsets = [0, 128], sizes = [2, 128], strides = [1, 1]} : vector<2x384xf32> to vector<2x128xf32>
    %491 = arith.addf %489, %490 : vector<2x128xf32>
    %492 = arith.negf %491 : vector<2x128xf32>
    %493 = math.exp %492 : vector<2x128xf32>
    %cst_178 = arith.constant 1.000000e+00 : f32
    %494 = vector.broadcast %cst_178 : f32 to vector<2x128xf32>
    %495 = arith.addf %494, %493 : vector<2x128xf32>
    %496 = arith.divf %494, %495 : vector<2x128xf32>
    %497 = vector.extract_strided_slice %474 {offsets = [0, 256], sizes = [2, 128], strides = [1, 1]} : vector<2x384xf32> to vector<2x128xf32>
    %498 = vector.extract_strided_slice %480 {offsets = [0, 256], sizes = [2, 128], strides = [1, 1]} : vector<2x384xf32> to vector<2x128xf32>
    %499 = arith.mulf %488, %498 : vector<2x128xf32>
    %500 = arith.addf %497, %499 : vector<2x128xf32>
    %501 = math.tanh %500 : vector<2x128xf32>
    %cst_179 = arith.constant 1.000000e+00 : f32
    %502 = vector.broadcast %cst_179 : f32 to vector<2x128xf32>
    %503 = arith.subf %502, %496 : vector<2x128xf32>
    %504 = arith.mulf %503, %501 : vector<2x128xf32>
    %505 = arith.mulf %496, %467 : vector<2x128xf32>
    %506 = arith.addf %504, %505 : vector<2x128xf32>
    %507 = arith.index_cast %c3_i32_169 : i32 to index
    %c0_180 = arith.constant 0 : index
    %c0_181 = arith.constant 0 : index
    %508 = vector.load %arg14[%507, %c0_180, %c0_181] : memref<7x2x128xf32, #tpu.memory_space<vmem>>, vector<1x2x128xf32>
    %509 = vector.shape_cast %508 : vector<1x2x128xf32> to vector<2x128xf32>
    %510 = vector.shape_cast %506 : vector<2x128xf32> to vector<1x2x128xf32>
    tpu.vector_store %arg14[%507, %c0_180, %c0_181], %510 {strides = array<i32>} : memref<7x2x128xf32, #tpu.memory_space<vmem>>, vector<1x2x128xf32>,
    %c4_i32_182 = arith.constant 4 : i32
    %511 = arith.index_cast %c4_i32_182 : i32 to index
    %c0_183 = arith.constant 0 : index
    %c0_184 = arith.constant 0 : index
    %512 = vector.load %arg13[%511, %c0_183, %c0_184] : memref<7x2x384xf32, #tpu.memory_space<vmem>>, vector<1x2x384xf32>
    %513 = vector.shape_cast %512 : vector<1x2x384xf32> to vector<2x384xf32>
    %514 = arith.truncf %506 : vector<2x128xf32> to vector<2x128xbf16>
    %c0_185 = arith.constant 0 : index
    %c0_186 = arith.constant 0 : index
    %515 = vector.load %arg6[%c0_185, %c0_186] : memref<128x384xbf16, #tpu.memory_space<vmem>>, vector<128x384xbf16>
    %cst_187 = arith.constant dense<0.000000e+00> : vector<2x384xf32>
    %516 = tpu.matmul %514, %515, %cst_187 {dimension_numbers = #tpu.dot_dimension_numbers<[1], [0], [0], [1], [0, 0, 1, 1], [], []>} : vector<2x128xbf16>, vector<128x384xbf16>, vector<2x384xf32> -> vector<2x384xf32>
    %c0_188 = arith.constant 0 : index
    %c0_189 = arith.constant 0 : index
    %517 = vector.load %arg8[%c0_188, %c0_189] : memref<1x384xf32, #tpu.memory_space<vmem>>, vector<1x384xf32>
    %518 = vector.broadcast %517 : vector<1x384xf32> to vector<2x384xf32>
    %519 = arith.addf %516, %518 : vector<2x384xf32>
    %520 = vector.extract_strided_slice %513 {offsets = [0, 0], sizes = [2, 128], strides = [1, 1]} : vector<2x384xf32> to vector<2x128xf32>
    %521 = vector.extract_strided_slice %519 {offsets = [0, 0], sizes = [2, 128], strides = [1, 1]} : vector<2x384xf32> to vector<2x128xf32>
    %522 = arith.addf %520, %521 : vector<2x128xf32>
    %523 = arith.negf %522 : vector<2x128xf32>
    %524 = math.exp %523 : vector<2x128xf32>
    %cst_190 = arith.constant 1.000000e+00 : f32
    %525 = vector.broadcast %cst_190 : f32 to vector<2x128xf32>
    %526 = arith.addf %525, %524 : vector<2x128xf32>
    %527 = arith.divf %525, %526 : vector<2x128xf32>
    %528 = vector.extract_strided_slice %513 {offsets = [0, 128], sizes = [2, 128], strides = [1, 1]} : vector<2x384xf32> to vector<2x128xf32>
    %529 = vector.extract_strided_slice %519 {offsets = [0, 128], sizes = [2, 128], strides = [1, 1]} : vector<2x384xf32> to vector<2x128xf32>
    %530 = arith.addf %528, %529 : vector<2x128xf32>
    %531 = arith.negf %530 : vector<2x128xf32>
    %532 = math.exp %531 : vector<2x128xf32>
    %cst_191 = arith.constant 1.000000e+00 : f32
    %533 = vector.broadcast %cst_191 : f32 to vector<2x128xf32>
    %534 = arith.addf %533, %532 : vector<2x128xf32>
    %535 = arith.divf %533, %534 : vector<2x128xf32>
    %536 = vector.extract_strided_slice %513 {offsets = [0, 256], sizes = [2, 128], strides = [1, 1]} : vector<2x384xf32> to vector<2x128xf32>
    %537 = vector.extract_strided_slice %519 {offsets = [0, 256], sizes = [2, 128], strides = [1, 1]} : vector<2x384xf32> to vector<2x128xf32>
    %538 = arith.mulf %527, %537 : vector<2x128xf32>
    %539 = arith.addf %536, %538 : vector<2x128xf32>
    %540 = math.tanh %539 : vector<2x128xf32>
    %cst_192 = arith.constant 1.000000e+00 : f32
    %541 = vector.broadcast %cst_192 : f32 to vector<2x128xf32>
    %542 = arith.subf %541, %535 : vector<2x128xf32>
    %543 = arith.mulf %542, %540 : vector<2x128xf32>
    %544 = arith.mulf %535, %506 : vector<2x128xf32>
    %545 = arith.addf %543, %544 : vector<2x128xf32>
    %546 = arith.index_cast %c4_i32_182 : i32 to index
    %c0_193 = arith.constant 0 : index
    %c0_194 = arith.constant 0 : index
    %547 = vector.load %arg14[%546, %c0_193, %c0_194] : memref<7x2x128xf32, #tpu.memory_space<vmem>>, vector<1x2x128xf32>
    %548 = vector.shape_cast %547 : vector<1x2x128xf32> to vector<2x128xf32>
    %549 = vector.shape_cast %545 : vector<2x128xf32> to vector<1x2x128xf32>
    tpu.vector_store %arg14[%546, %c0_193, %c0_194], %549 {strides = array<i32>} : memref<7x2x128xf32, #tpu.memory_space<vmem>>, vector<1x2x128xf32>,
    %c5_i32_195 = arith.constant 5 : i32
    %550 = arith.index_cast %c5_i32_195 : i32 to index
    %c0_196 = arith.constant 0 : index
    %c0_197 = arith.constant 0 : index
    %551 = vector.load %arg13[%550, %c0_196, %c0_197] : memref<7x2x384xf32, #tpu.memory_space<vmem>>, vector<1x2x384xf32>
    %552 = vector.shape_cast %551 : vector<1x2x384xf32> to vector<2x384xf32>
    %553 = arith.truncf %545 : vector<2x128xf32> to vector<2x128xbf16>
    %c0_198 = arith.constant 0 : index
    %c0_199 = arith.constant 0 : index
    %554 = vector.load %arg6[%c0_198, %c0_199] : memref<128x384xbf16, #tpu.memory_space<vmem>>, vector<128x384xbf16>
    %cst_200 = arith.constant dense<0.000000e+00> : vector<2x384xf32>
    %555 = tpu.matmul %553, %554, %cst_200 {dimension_numbers = #tpu.dot_dimension_numbers<[1], [0], [0], [1], [0, 0, 1, 1], [], []>} : vector<2x128xbf16>, vector<128x384xbf16>, vector<2x384xf32> -> vector<2x384xf32>
    %c0_201 = arith.constant 0 : index
    %c0_202 = arith.constant 0 : index
    %556 = vector.load %arg8[%c0_201, %c0_202] : memref<1x384xf32, #tpu.memory_space<vmem>>, vector<1x384xf32>
    %557 = vector.broadcast %556 : vector<1x384xf32> to vector<2x384xf32>
    %558 = arith.addf %555, %557 : vector<2x384xf32>
    %559 = vector.extract_strided_slice %552 {offsets = [0, 0], sizes = [2, 128], strides = [1, 1]} : vector<2x384xf32> to vector<2x128xf32>
    %560 = vector.extract_strided_slice %558 {offsets = [0, 0], sizes = [2, 128], strides = [1, 1]} : vector<2x384xf32> to vector<2x128xf32>
    %561 = arith.addf %559, %560 : vector<2x128xf32>
    %562 = arith.negf %561 : vector<2x128xf32>
    %563 = math.exp %562 : vector<2x128xf32>
    %cst_203 = arith.constant 1.000000e+00 : f32
    %564 = vector.broadcast %cst_203 : f32 to vector<2x128xf32>
    %565 = arith.addf %564, %563 : vector<2x128xf32>
    %566 = arith.divf %564, %565 : vector<2x128xf32>
    %567 = vector.extract_strided_slice %552 {offsets = [0, 128], sizes = [2, 128], strides = [1, 1]} : vector<2x384xf32> to vector<2x128xf32>
    %568 = vector.extract_strided_slice %558 {offsets = [0, 128], sizes = [2, 128], strides = [1, 1]} : vector<2x384xf32> to vector<2x128xf32>
    %569 = arith.addf %567, %568 : vector<2x128xf32>
    %570 = arith.negf %569 : vector<2x128xf32>
    %571 = math.exp %570 : vector<2x128xf32>
    %cst_204 = arith.constant 1.000000e+00 : f32
    %572 = vector.broadcast %cst_204 : f32 to vector<2x128xf32>
    %573 = arith.addf %572, %571 : vector<2x128xf32>
    %574 = arith.divf %572, %573 : vector<2x128xf32>
    %575 = vector.extract_strided_slice %552 {offsets = [0, 256], sizes = [2, 128], strides = [1, 1]} : vector<2x384xf32> to vector<2x128xf32>
    %576 = vector.extract_strided_slice %558 {offsets = [0, 256], sizes = [2, 128], strides = [1, 1]} : vector<2x384xf32> to vector<2x128xf32>
    %577 = arith.mulf %566, %576 : vector<2x128xf32>
    %578 = arith.addf %575, %577 : vector<2x128xf32>
    %579 = math.tanh %578 : vector<2x128xf32>
    %cst_205 = arith.constant 1.000000e+00 : f32
    %580 = vector.broadcast %cst_205 : f32 to vector<2x128xf32>
    %581 = arith.subf %580, %574 : vector<2x128xf32>
    %582 = arith.mulf %581, %579 : vector<2x128xf32>
    %583 = arith.mulf %574, %545 : vector<2x128xf32>
    %584 = arith.addf %582, %583 : vector<2x128xf32>
    %585 = arith.index_cast %c5_i32_195 : i32 to index
    %c0_206 = arith.constant 0 : index
    %c0_207 = arith.constant 0 : index
    %586 = vector.load %arg14[%585, %c0_206, %c0_207] : memref<7x2x128xf32, #tpu.memory_space<vmem>>, vector<1x2x128xf32>
    %587 = vector.shape_cast %586 : vector<1x2x128xf32> to vector<2x128xf32>
    %588 = vector.shape_cast %584 : vector<2x128xf32> to vector<1x2x128xf32>
    tpu.vector_store %arg14[%585, %c0_206, %c0_207], %588 {strides = array<i32>} : memref<7x2x128xf32, #tpu.memory_space<vmem>>, vector<1x2x128xf32>,
    %c6_i32_208 = arith.constant 6 : i32
    %589 = arith.index_cast %c6_i32_208 : i32 to index
    %c0_209 = arith.constant 0 : index
    %c0_210 = arith.constant 0 : index
    %590 = vector.load %arg13[%589, %c0_209, %c0_210] : memref<7x2x384xf32, #tpu.memory_space<vmem>>, vector<1x2x384xf32>
    %591 = vector.shape_cast %590 : vector<1x2x384xf32> to vector<2x384xf32>
    %592 = arith.truncf %584 : vector<2x128xf32> to vector<2x128xbf16>
    %c0_211 = arith.constant 0 : index
    %c0_212 = arith.constant 0 : index
    %593 = vector.load %arg6[%c0_211, %c0_212] : memref<128x384xbf16, #tpu.memory_space<vmem>>, vector<128x384xbf16>
    %cst_213 = arith.constant dense<0.000000e+00> : vector<2x384xf32>
    %594 = tpu.matmul %592, %593, %cst_213 {dimension_numbers = #tpu.dot_dimension_numbers<[1], [0], [0], [1], [0, 0, 1, 1], [], []>} : vector<2x128xbf16>, vector<128x384xbf16>, vector<2x384xf32> -> vector<2x384xf32>
    %c0_214 = arith.constant 0 : index
    %c0_215 = arith.constant 0 : index
    %595 = vector.load %arg8[%c0_214, %c0_215] : memref<1x384xf32, #tpu.memory_space<vmem>>, vector<1x384xf32>
    %596 = vector.broadcast %595 : vector<1x384xf32> to vector<2x384xf32>
    %597 = arith.addf %594, %596 : vector<2x384xf32>
    %598 = vector.extract_strided_slice %591 {offsets = [0, 0], sizes = [2, 128], strides = [1, 1]} : vector<2x384xf32> to vector<2x128xf32>
    %599 = vector.extract_strided_slice %597 {offsets = [0, 0], sizes = [2, 128], strides = [1, 1]} : vector<2x384xf32> to vector<2x128xf32>
    %600 = arith.addf %598, %599 : vector<2x128xf32>
    %601 = arith.negf %600 : vector<2x128xf32>
    %602 = math.exp %601 : vector<2x128xf32>
    %cst_216 = arith.constant 1.000000e+00 : f32
    %603 = vector.broadcast %cst_216 : f32 to vector<2x128xf32>
    %604 = arith.addf %603, %602 : vector<2x128xf32>
    %605 = arith.divf %603, %604 : vector<2x128xf32>
    %606 = vector.extract_strided_slice %591 {offsets = [0, 128], sizes = [2, 128], strides = [1, 1]} : vector<2x384xf32> to vector<2x128xf32>
    %607 = vector.extract_strided_slice %597 {offsets = [0, 128], sizes = [2, 128], strides = [1, 1]} : vector<2x384xf32> to vector<2x128xf32>
    %608 = arith.addf %606, %607 : vector<2x128xf32>
    %609 = arith.negf %608 : vector<2x128xf32>
    %610 = math.exp %609 : vector<2x128xf32>
    %cst_217 = arith.constant 1.000000e+00 : f32
    %611 = vector.broadcast %cst_217 : f32 to vector<2x128xf32>
    %612 = arith.addf %611, %610 : vector<2x128xf32>
    %613 = arith.divf %611, %612 : vector<2x128xf32>
    %614 = vector.extract_strided_slice %591 {offsets = [0, 256], sizes = [2, 128], strides = [1, 1]} : vector<2x384xf32> to vector<2x128xf32>
    %615 = vector.extract_strided_slice %597 {offsets = [0, 256], sizes = [2, 128], strides = [1, 1]} : vector<2x384xf32> to vector<2x128xf32>
    %616 = arith.mulf %605, %615 : vector<2x128xf32>
    %617 = arith.addf %614, %616 : vector<2x128xf32>
    %618 = math.tanh %617 : vector<2x128xf32>
    %cst_218 = arith.constant 1.000000e+00 : f32
    %619 = vector.broadcast %cst_218 : f32 to vector<2x128xf32>
    %620 = arith.subf %619, %613 : vector<2x128xf32>
    %621 = arith.mulf %620, %618 : vector<2x128xf32>
    %622 = arith.mulf %613, %584 : vector<2x128xf32>
    %623 = arith.addf %621, %622 : vector<2x128xf32>
    %624 = arith.index_cast %c6_i32_208 : i32 to index
    %c0_219 = arith.constant 0 : index
    %c0_220 = arith.constant 0 : index
    %625 = vector.load %arg14[%624, %c0_219, %c0_220] : memref<7x2x128xf32, #tpu.memory_space<vmem>>, vector<1x2x128xf32>
    %626 = vector.shape_cast %625 : vector<1x2x128xf32> to vector<2x128xf32>
    %627 = vector.shape_cast %623 : vector<2x128xf32> to vector<1x2x128xf32>
    tpu.vector_store %arg14[%624, %c0_219, %c0_220], %627 {strides = array<i32>} : memref<7x2x128xf32, #tpu.memory_space<vmem>>, vector<1x2x128xf32>,
    %c7_i32_221 = arith.constant 7 : i32
    %c0_222 = arith.constant 0 : index
    %c0_223 = arith.constant 0 : index
    %c0_224 = arith.constant 0 : index
    %628 = vector.load %arg14[%c0_222, %c0_223, %c0_224] : memref<7x2x128xf32, #tpu.memory_space<vmem>>, vector<7x2x128xf32>
    %629 = vector.shape_cast %628 : vector<7x2x128xf32> to vector<14x128xf32>
    %630 = arith.truncf %629 : vector<14x128xf32> to vector<14x128xbf16>
    %c0_225 = arith.constant 0 : index
    %c0_226 = arith.constant 0 : index
    %631 = vector.load %arg9[%c0_225, %c0_226] : memref<128x512xbf16, #tpu.memory_space<vmem>>, vector<128x512xbf16>
    %cst_227 = arith.constant dense<0.000000e+00> : vector<14x512xf32>
    %632 = tpu.matmul %630, %631, %cst_227 {dimension_numbers = #tpu.dot_dimension_numbers<[1], [0], [0], [1], [0, 0, 1, 1], [], []>} : vector<14x128xbf16>, vector<128x512xbf16>, vector<14x512xf32> -> vector<14x512xf32>
    %c0_228 = arith.constant 0 : index
    %c0_229 = arith.constant 0 : index
    %633 = vector.load %arg10[%c0_228, %c0_229] : memref<1x512xf32, #tpu.memory_space<vmem>>, vector<1x512xf32>
    %634 = vector.broadcast %633 : vector<1x512xf32> to vector<14x512xf32>
    %635 = arith.addf %632, %634 : vector<14x512xf32>
    %c0_230 = arith.constant 0 : index
    %c0_231 = arith.constant 0 : index
    %636 = vector.load %arg11[%c0_230, %c0_231] : memref<14x512xf32, #tpu.memory_space<vmem>>, vector<14x512xf32>
    tpu.vector_store %arg11[%c0_230, %c0_231], %635 {strides = array<i32>} : memref<14x512xf32, #tpu.memory_space<vmem>>, vector<14x512xf32>,
    return
  }
}

</mosaic_0001>

<bundles_post_ra>
// kernel: autoencoder_forward.1
= control target key start
LH: loop header
LB: loop body
LE: loop exit
PB: predicated region body
PF: predicated region fallthrough
CT: control target
= control target key end

     0   :  { %16 = vsyncpa [#allocation6], 0  ;;  %s6682_s0 = inlined_call_operand.vmem [shape: f32[8,2,128], index: 0, kind: input, shape index: {}]   ;;  %s6683_s1 = inlined_call_operand.vmem [shape: bf16[128,384], index: 1, kind: input, shape index: {}]   ;;  %s6684_s2 = inlined_call_operand.hbm [shape: bf16[128,384], index: 2, kind: input, shape index: {}]   ;;  %s6685_s3 = inlined_call_operand.vmem [shape: f32[1,384], index: 3, kind: input, shape index: {}]   ;;  %s6686_s4 = inlined_call_operand.vmem [shape: f32[1,384], index: 4, kind: input, shape index: {}]   ;;  %s6687_s5 = inlined_call_operand.hbm [shape: bf16[128,384], index: 5, kind: input, shape index: {}]   ;;  %s6688_s6 = inlined_call_operand.hbm [shape: bf16[128,384], index: 6, kind: input, shape index: {}]   ;;  %s6689_s7 = inlined_call_operand.vmem [shape: f32[1,384], index: 7, kind: input, shape index: {}]   ;;  %s6690_s8 = inlined_call_operand.vmem [shape: f32[1,384], index: 8, kind: input, shape index: {}]   ;;  %s6691_s9 = inlined_call_operand.hbm [shape: bf16[128,512], index: 9, kind: input, shape index: {}]   ;;  %s6692_s10 = inlined_call_operand.vmem [shape: f32[1,512], index: 10, kind: input, shape index: {}]   ;;  %s6693_s11 = inlined_call_operand.vmem [shape: f32[14,512], index: 11, kind: output, shape index: {}]  }
   0x1   :  { %17 = vsyncpa [#allocation8], 0 }
   0x2   :  { %18 = vsyncpa [#allocation11], 0  ;;  %s5607_s17 = smov [#allocation7]   ;;  %s5608_s19 = smov [#allocation5]  }
   0x3   :  { %s44_s18 = sshll.u32 %s5607_s17, 4  ;;  %s28_s20 = sshll.u32 %s5608_s19, 4  ;;  %s45_s18 = int_to_ptr.vmem [resolvable:$true] %s44_s18  ;;  %s29_s20 = int_to_ptr.vmem [resolvable:$true] %s28_s20 }
   0x4   :  { %s5529_s21 = scalar_lea.vmem %s45_s18, 3072  ;;  %p5534_p1 = scmp.lt.s32.totalorder %s45_s18, %s45_s18 }
   0x5   :  { %p5530_p0 = scmp.ne.s32.totalorder %s45_s18, %s5529_s21  ;;  %p5535_p2 = scmp.lt.s32.totalorder %s5529_s21, %s5529_s21 }
   0x7   :  { %p5536_p3 = por %p5535_p2, %p5534_p1 }
   0x9   :  { %p5537_p4 = pnand %p5536_p3, %p5530_p0 }
   0xb   :  { %5540 = shalt.err (!%p5537_p4)
}
   0xc   :  { %s5609_s22 = smov 192   ;;  %s5610_s23 = smov 12  }
   0xd   :  { %50 = dma.hbm_to_vmem [thread:$0]  %s6687_s5, 3072, %s45_s18, [#allocation8], %s5609_s22, %s5609_s22, %s5610_s23  }
   0xe   :  { %s5549_s26 = scalar_lea.vmem %s29_s20, 3072  ;;  %p5554_p6 = scmp.lt.s32.totalorder %s29_s20, %s29_s20 }
   0xf   :  { %p5550_p5 = scmp.ne.s32.totalorder %s29_s20, %s5549_s26  ;;  %p5555_p7 = scmp.lt.s32.totalorder %s5549_s26, %s5549_s26 }
  0x11   :  { %p5556_p8 = por %p5555_p7, %p5554_p6 }
  0x13   :  { %p5557_p9 = pnand %p5556_p8, %p5550_p5 }
  0x15   :  { %5560 = shalt.err (!%p5557_p9)
}
  0x16   :  { %34 = dma.hbm_to_vmem [thread:$0]  %s6684_s2, 3072, %s29_s20, [#allocation6], %s5609_s22, %s5609_s22, %s5610_s23  }
  0x17   :  { %s5611_s29 = smov [#allocation9]   ;;  %s5612_s12 = smov [#allocation10]  }
  0x18   :  { %s56_s30 = sshll.u32 %s5611_s29, 4  ;;  %s72_s13 = sshll.u32 %s5612_s12, 4  ;;  %s57_s30 = int_to_ptr.vmem [resolvable:$true] %s56_s30  ;;  %s73_s13 = int_to_ptr.vmem [resolvable:$true] %s72_s13 }
  0x19   :  { %s5569_s14 = scalar_lea.vmem %s57_s30, 3072  ;;  %p5574_p11 = scmp.lt.s32.totalorder %s57_s30, %s57_s30 }
  0x1a   :  { %p5570_p10 = scmp.ne.s32.totalorder %s57_s30, %s5569_s14  ;;  %p5575_p12 = scmp.lt.s32.totalorder %s5569_s14, %s5569_s14 }
  0x1c   :  { %p5576_p13 = por %p5575_p12, %p5574_p11 }
  0x1e   :  { %p5577_p0 = pnand %p5576_p13, %p5570_p10 }
  0x20   :  { %5580 = shalt.err (!%p5577_p0)
}
  0x21   :  { %62 = dma.hbm_to_vmem [thread:$0]  %s6688_s6, 3072, %s57_s30, [#allocation8], %s5609_s22, %s5609_s22, %s5610_s23  }
  0x22   :  { %s5589_s16 = scalar_lea.vmem %s73_s13, 4096  ;;  %p5594_p2 = scmp.lt.s32.totalorder %s73_s13, %s73_s13 }
  0x23   :  { %p5590_p1 = scmp.ne.s32.totalorder %s73_s13, %s5589_s16  ;;  %p5595_p3 = scmp.lt.s32.totalorder %s5589_s16, %s5589_s16 }
  0x25   :  { %p5596_p4 = por %p5595_p3, %p5594_p2 }
  0x27   :  { %p5597_p5 = pnand %p5596_p4, %p5590_p1 }
  0x29   :  { %5600 = shalt.err (!%p5597_p5)
}
  0x2a   :  { %s5613_s2 = smov 256   ;;  %s5614_s17 = smov 16  }
  0x2b   :  { %78 = dma.hbm_to_vmem [thread:$0]  %s6691_s9, 4096, %s73_s13, [#allocation11], %s5613_s2, %s5613_s2, %s5614_s17  }
  0x2c   :  { %5601 = dma.done.wait [#allocation6], 3072  }
  0x2d   :  { %5602 = vsyncadd [#allocation6], 4294964224 }
  0x2e   :  { %5603 = dma.done.wait [#allocation8], 6144  }
  0x2f   :  { %5604 = vsyncadd [#allocation8], 4294961152 }
  0x30   :  { %5605 = dma.done.wait [#allocation11], 4096  }
  0x31   :  { %5606 = vsyncadd [#allocation11], 4294963200  ;;  %v5615_v0 = vmov 0.0   ;;  %v5616_v1 = vmov 0   ;;  %vm5617_vm0 = vmmov 0   ;;  %v115_v14 = vlaneseq }
  0x32   :  { %4747 = vmatprep.subr.bf16.mxu1 %v5615_v0  ;;  %356 = vmatprep.mubr.bf16.mxu0 %v5616_v1  ;;  %v5099_v2 = vld [vmem:[%s6683_s1 + $0xac] ss:$12 sps:$4 sm:$0xff]   ;;  %v5101_v3 = vld [vmem:[%s6683_s1 + $0xa8] ss:$12 sps:$4 sm:$0xff]   ;;  %v5102_v4 = vld [vmem:[%s6683_s1 + $0xb0] ss:$12 sps:$4 sm:$0xff]  }
  0x33   :  { %4763 = vmatprep.mubr.msk.bf16.mxu1 %vm5617_vm0, %v5615_v0  ;;  %324 = vmatprep.subr.bf16.mxu0 %v5099_v2  ;;  %v5103_v5 = vld [vmem:[%s6683_s1 + $0x94] ss:$12 sps:$4 sm:$0xff]   ;;  %v5105_v6 = vld [vmem:[%s6683_s1 + $0x90] ss:$12 sps:$4 sm:$0xff]   ;;  %v5106_v7 = vld [vmem:[%s6683_s1 + $0x98] ss:$12 sps:$4 sm:$0xff]  }
  0x34   :  { %325 = vmatpush1.bf16.msra.mxu0 %v5101_v3  ;;  %4748 = vmatpush3.bf16.msra.mxu1 %v5102_v4  ;;  %v5107_v8 = vld [vmem:[%s6683_s1 + $0x7c] ss:$12 sps:$4 sm:$0xff]   ;;  %v5109_v9 = vld [vmem:[%s6683_s1 + $0x78] ss:$12 sps:$4 sm:$0xff]   ;;  %v5110_v10 = vld [vmem:[%s6683_s1 + $0x80] ss:$12 sps:$4 sm:$0xff]  }
  0x35   :  { %326 = vmatprep.subr.bf16.mxu0 %v5103_v5  ;;  %4749 = vmatprep.subr.bf16.mxu1 %v5615_v0  ;;  %v5111_v11 = vld [vmem:[%s6683_s1 + $0x64] ss:$12 sps:$4 sm:$0xff]   ;;  %v5618_v12 = vmov 1983009808   ;;  %v5113_v15 = vld [vmem:[%s6683_s1 + $0x60] ss:$12 sps:$4 sm:$0xff]  }
  0x36   :  { %v113_v13 = vunpack.c.l.s4 %v5618_v12  ;;  %v5114_v16 = vld [vmem:[%s6683_s1 + $0x68] ss:$12 sps:$4 sm:$0xff]   ;;  %v5115_v17 = vld [vmem:[%s6683_s1 + $0x4c] ss:$12 sps:$4 sm:$0xff]   ;;  %v5740_v20 = vshrl.u32 %v115_v14, 7 }
  0x37   :  { %v5117_v18 = vld [vmem:[%s6683_s1 + $0x48] ss:$12 sps:$4 sm:$0xff]   ;;  %v5118_v21 = vld [vmem:[%s6683_s1 + $0x50] ss:$12 sps:$4 sm:$0xff]   ;;  %v5122_v24 = vld [vmem:[%s6683_s1 + $0x38] ss:$12 sps:$4 sm:$0xff]  }
  0x38   :  { %327 = vmatpush1.bf16.msra.mxu0 %v5105_v6  ;;  %4750 = vmatpush3.bf16.msra.mxu1 %v5106_v7  ;;  %v114_v19 = vunpack.c.0.s8 %v113_v13  ;;  %v5119_v22 = vld [vmem:[%s6683_s1 + $0x34] ss:$12 sps:$4 sm:$0xff]   ;;  %v5121_v23 = vld [vmem:[%s6683_s1 + $0x30] ss:$12 sps:$4 sm:$0xff]   ;;  %v96_v29 = vld [vmem:[%s6682_s0 + $0x4] sm:$0x3] }
  0x39   :  { %328 = vmatprep.subr.bf16.mxu0 %v5107_v8  ;;  %4751 = vmatprep.subr.bf16.mxu1 %v5615_v0  ;;  %v5123_v25 = vld [vmem:[%s6683_s1 + $0x1c] ss:$12 sps:$4 sm:$0xff]   ;;  %v94_v26 = vld [vmem:[%s6682_s0] sm:$0x3]  ;;  %v95_v28 = vld [vmem:[%s6682_s0 + $0x2] sm:$0x3] }
  0x3a   :  { %v5762_v27 = vsub.s32 %v114_v19, %v5740_v20  ;;  %v97_v30 = vld [vmem:[%s6682_s0 + $0x6] sm:$0x3]  ;;  %v98_v31 = vld [vmem:[%s6682_s0 + $0x8] sm:$0x3]  ;;  %v99_v32 = vld [vmem:[%s6682_s0 + $0xa] sm:$0x3]  ;;  %v110_v34 = vcombine.low %v94_v26, %v95_v28 }
  0x3b   :  { %v100_v33 = vld [vmem:[%s6682_s0 + $0xc] sm:$0x3]  ;;  %v111_v35 = vcombine.low %v96_v29, %v97_v30  ;;  %v101_v36 = vld [vmem:[%s6682_s0 + $0xe] sm:$0x3]  ;;  %v127_v37 = vcombine.low %v98_v31, %v99_v32  ;;  %v5125_v41 = vld [vmem:[%s6683_s1 + $0x18] ss:$12 sps:$4 sm:$0xff]  }
  0x3c   :  { %329 = vmatpush1.bf16.msra.mxu0 %v5109_v9  ;;  %4752 = vmatpush3.bf16.msra.mxu1 %v5110_v10  ;;  %v118_v38 = vrot.slane %v110_v34, %v5762_v27  ;;  %v128_v40 = vcombine.low %v100_v33, %v101_v36  ;;  %v5126_v43 = vld [vmem:[%s6683_s1 + $0x20] ss:$12 sps:$4 sm:$0xff]   ;;  %v5127_v44 = vld [vmem:[%s6683_s1 + $0x4] ss:$12 sps:$4 sm:$0xff]   ;;  %v5130_v49 = vld [vmem:[%s6683_s1 + $0x8] ss:$12 sps:$4 sm:$0xff]  }
  0x3d   :  { %330 = vmatprep.subr.bf16.mxu0 %v5111_v11  ;;  %4753 = vmatprep.subr.bf16.mxu1 %v5615_v0  ;;  %v125_v39 = vrot.slane %v111_v35, %v5762_v27  ;;  %v135_v42 = vrot.slane %v127_v37, %v5762_v27  ;;  %v5129_v46 = vld [vmem:[%s6683_s1] ss:$12 sps:$4 sm:$0xff]   ;;  %v5131_v52 = vld [vmem:[#allocation7 + $0xa8] ss:$12 sps:$4 sm:$0xff]   ;;  %v5134_v53 = vld [vmem:[#allocation7 + $0xb0] ss:$12 sps:$4 sm:$0xff]  }
  0x3e   :  { %v142_v45 = vrot.slane %v128_v40, %v5762_v27  ;;  %v5133_v50 = vld [vmem:[#allocation7 + $0xac] ss:$12 sps:$4 sm:$0xff]   ;;  %v5137_v54 = vld [vmem:[#allocation7 + $0x94] ss:$12 sps:$4 sm:$0xff]   ;;  %v5135_v55 = vld [vmem:[#allocation7 + $0x90] ss:$12 sps:$4 sm:$0xff]  }
  0x3f   :  { %v126_v47 = vcombine.low %v118_v38, %v125_v39  ;;  %v5138_v56 = vld [vmem:[#allocation7 + $0x98] ss:$12 sps:$4 sm:$0xff]   ;;  %v5141_v57 = vld [vmem:[#allocation7 + $0x7c] ss:$12 sps:$4 sm:$0xff]   ;;  %v5142_v59 = vld [vmem:[#allocation7 + $0x80] ss:$12 sps:$4 sm:$0xff]  }
  0x40   :  { %331 = vmatpush1.bf16.msra.mxu0 %v5113_v15  ;;  %4754 = vmatpush3.bf16.msra.mxu1 %v5114_v16  ;;  %v143_v48 = vcombine.low %v135_v42, %v142_v45  ;;  %v5139_v58 = vld [vmem:[#allocation7 + $0x78] ss:$12 sps:$4 sm:$0xff]   ;;  %v5143_v61 = vld [vmem:[#allocation7 + $0x60] ss:$12 sps:$4 sm:$0xff]   ;;  %v5146_v62 = vld [vmem:[#allocation7 + $0x68] ss:$12 sps:$4 sm:$0xff]  }
  0x41   :  { %332 = vmatprep.subr.bf16.mxu0 %v5115_v17  ;;  %4755 = vmatprep.subr.bf16.mxu1 %v5615_v0  ;;  %v5145_v60 = vld [vmem:[#allocation7 + $0x64] ss:$12 sps:$4 sm:$0xff]   ;;  %v5149_v63 = vld [vmem:[#allocation7 + $0x4c] ss:$12 sps:$4 sm:$0xff]   ;;  %v5147_v2 = vld [vmem:[#allocation7 + $0x48] ss:$12 sps:$4 sm:$0xff]  }
  0x42   :  { %v5807_v51 = vpack.c.bf16 %v143_v48, %v126_v47  ;;  %v5150_v3 = vld [vmem:[#allocation7 + $0x50] ss:$12 sps:$4 sm:$0xff]   ;;  %v5153_v4 = vld [vmem:[#allocation7 + $0x34] ss:$12 sps:$4 sm:$0xff]   ;;  %v5154_v6 = vld [vmem:[#allocation7 + $0x38] ss:$12 sps:$4 sm:$0xff]  }
  0x43   :  { %v5151_v5 = vld [vmem:[#allocation7 + $0x30] ss:$12 sps:$4 sm:$0xff]   ;;  %v5155_v8 = vld [vmem:[#allocation7 + $0x18] ss:$12 sps:$4 sm:$0xff]   ;;  %v5158_v9 = vld [vmem:[#allocation7 + $0x20] ss:$12 sps:$4 sm:$0xff]  }
  0x44   :  { %333 = vmatpush1.bf16.msra.mxu0 %v5117_v18  ;;  %4756 = vmatpush3.bf16.msra.mxu1 %v5118_v21  ;;  %v5157_v7 = vld [vmem:[#allocation7 + $0x1c] ss:$12 sps:$4 sm:$0xff]   ;;  %v5161_v10 = vld [vmem:[#allocation7 + $0x4] ss:$12 sps:$4 sm:$0xff]   ;;  %v5159_v11 = vld [vmem:[#allocation7] ss:$12 sps:$4 sm:$0xff]  }
  0x45   :  { %334 = vmatprep.subr.bf16.mxu0 %v5119_v22  ;;  %4757 = vmatprep.subr.bf16.mxu1 %v5615_v0  ;;  %v5162_v12 = vld [vmem:[#allocation7 + $0x8] ss:$12 sps:$4 sm:$0xff]   ;;  %v5821_v13 = vld [vmem:[#allocation5 + $0xac] ss:$12 sps:$4 sm:$0xff]   ;;  %v5828_v16 = vld [vmem:[#allocation5 + $0xb0] ss:$12 sps:$4 sm:$0xff]  }
  0x46   :  { %v5824_v14 = vld [vmem:[#allocation5 + $0xa8] ss:$12 sps:$4 sm:$0xff]   ;;  %v5831_v17 = vld [vmem:[#allocation5 + $0x90] ss:$12 sps:$4 sm:$0xff]   ;;  %v5837_v19 = vld [vmem:[#allocation5 + $0x98] ss:$12 sps:$4 sm:$0xff]  }
  0x47   :  { %v5826_v15 = vld [vmem:[#allocation5 + $0x94] ss:$12 sps:$4 sm:$0xff]   ;;  %v5835_v18 = vld [vmem:[#allocation5 + $0x7c] ss:$12 sps:$4 sm:$0xff]   ;;  %v5843_v21 = vld [vmem:[#allocation5 + $0x78] ss:$12 sps:$4 sm:$0xff]  }
  0x48   :  { %335 = vmatpush1.bf16.msra.mxu0 %v5121_v23  ;;  %4758 = vmatpush3.bf16.msra.mxu1 %v5122_v24  ;;  %v5847_v22 = vld [vmem:[#allocation5 + $0x64] ss:$12 sps:$4 sm:$0xff]   ;;  %v5849_v23 = vld [vmem:[#allocation5 + $0x80] ss:$12 sps:$4 sm:$0xff]   ;;  %v5861_v26 = vld [vmem:[#allocation5 + $0x68] ss:$12 sps:$4 sm:$0xff]  }
  0x49   :  { %336 = vmatprep.subr.bf16.mxu0 %v5123_v25  ;;  %4759 = vmatprep.subr.bf16.mxu1 %v5615_v0  ;;  %v5856_v24 = vld [vmem:[#allocation5 + $0x60] ss:$12 sps:$4 sm:$0xff]   ;;  %v5866_v28 = vld [vmem:[#allocation5 + $0x48] ss:$12 sps:$4 sm:$0xff]   ;;  %v5871_v30 = vld [vmem:[#allocation5 + $0x50] ss:$12 sps:$4 sm:$0xff]  }
  0x4a   :  { %v5859_v25 = vld [vmem:[#allocation5 + $0x4c] ss:$12 sps:$4 sm:$0xff]   ;;  %v5869_v29 = vld [vmem:[#allocation5 + $0x34] ss:$12 sps:$4 sm:$0xff]   ;;  %v5876_v31 = vld [vmem:[#allocation5 + $0x30] ss:$12 sps:$4 sm:$0xff]  }
  0x4b   :  { %v5879_v32 = vld [vmem:[#allocation5 + $0x1c] ss:$12 sps:$4 sm:$0xff]   ;;  %v5881_v33 = vld [vmem:[#allocation5 + $0x38] ss:$12 sps:$4 sm:$0xff]   ;;  %v5891_v36 = vld [vmem:[#allocation5 + $0x20] ss:$12 sps:$4 sm:$0xff]  }
  0x4c   :  { %337 = vmatpush1.bf16.msra.mxu0 %v5125_v41  ;;  %4760 = vmatpush3.bf16.msra.mxu1 %v5126_v43  ;;  %v5886_v34 = vld [vmem:[#allocation5 + $0x18] ss:$12 sps:$4 sm:$0xff]   ;;  %v5896_v37 = vld [vmem:[#allocation5] ss:$12 sps:$4 sm:$0xff]   ;;  %v5899_v38 = vld [vmem:[#allocation5 + $0x8] ss:$12 sps:$4 sm:$0xff]  }
  0x4d   :  { %338 = vmatprep.subr.bf16.mxu0 %v5127_v44  ;;  %4761 = vmatprep.subr.bf16.mxu1 %v5615_v0  ;;  %v5889_v35 = vld [vmem:[#allocation5 + $0x4] ss:$12 sps:$4 sm:$0xff]   ;;  %v5947_v39 = vsub.s32 0, %v5740_v20  ;;  %v179_v40 = vld [vmem:[%s6685_s3] sm:$0x7]  ;;  %v5953_v41 = vsub.s32 2, %v5740_v20 }
  0x4e   :  { %v5956_v42 = vsub.s32 1, %v5740_v20 }
  0x4f   :  { %v184_v43 = vrot.slane %v179_v40, %v5947_v39  ;;  %v192_v44 = vrot.slane %v179_v40, %v5953_v41 }
  0x50   :  { %339 = vmatpush1.bf16.msra.mxu0 %v5129_v46  ;;  %4762 = vmatpush3.bf16.msra.mxu1 %v5130_v49  ;;  %v188_v45 = vrot.slane %v179_v40, %v5956_v42 }
  0x51   :  { %585 = vmatprep.subr.bf16.mxu0 %v5133_v50  ;;  %4767 = vmatprep.subr.bf16.mxu1 %v5615_v0 }
  0x53   :  { %357 = vmatmul.mubr.bf16.vlgmr.msra.gmra.mxu0 %v5807_v51  ;;  %4764 = vmatmul.mubr.bf16.vlgmr.msra.gmra.mxu1 %v5807_v51 }
  0x54   :  { %586 = vmatpush1.bf16.msra.mxu0 %v5131_v52  ;;  %4768 = vmatpush3.bf16.msra.mxu1 %v5134_v53 }
  0x55   :  { %587 = vmatprep.subr.bf16.mxu0 %v5137_v54  ;;  %4769 = vmatprep.subr.bf16.mxu1 %v5615_v0 }
  0x56   :  { %617 = vmatprep.mubr.bf16.mxu0 %v5616_v1  ;;  %4783 = vmatprep.mubr.msk.bf16.mxu1 %vm5617_vm0, %v5615_v0 }
  0x58   :  { %588 = vmatpush1.bf16.msra.mxu0 %v5135_v55  ;;  %4770 = vmatpush3.bf16.msra.mxu1 %v5138_v56 }
  0x59   :  { %589 = vmatprep.subr.bf16.mxu0 %v5141_v57  ;;  %4771 = vmatprep.subr.bf16.mxu1 %v5615_v0 }
  0x5c   :  { %590 = vmatpush1.bf16.msra.mxu0 %v5139_v58  ;;  %4772 = vmatpush3.bf16.msra.mxu1 %v5142_v59 }
  0x5d   :  { %591 = vmatprep.subr.bf16.mxu0 %v5145_v60  ;;  %4773 = vmatprep.subr.bf16.mxu1 %v5615_v0 }
  0x60   :  { %592 = vmatpush1.bf16.msra.mxu0 %v5143_v61  ;;  %4774 = vmatpush3.bf16.msra.mxu1 %v5146_v62 }
  0x61   :  { %593 = vmatprep.subr.bf16.mxu0 %v5149_v63  ;;  %4775 = vmatprep.subr.bf16.mxu1 %v5615_v0 }
  0x64   :  { %594 = vmatpush1.bf16.msra.mxu0 %v5147_v2  ;;  %4776 = vmatpush3.bf16.msra.mxu1 %v5150_v3 }
  0x65   :  { %595 = vmatprep.subr.bf16.mxu0 %v5153_v4  ;;  %4777 = vmatprep.subr.bf16.mxu1 %v5615_v0 }
  0x68   :  { %596 = vmatpush1.bf16.msra.mxu0 %v5151_v5  ;;  %4778 = vmatpush3.bf16.msra.mxu1 %v5154_v6 }
  0x69   :  { %597 = vmatprep.subr.bf16.mxu0 %v5157_v7  ;;  %4779 = vmatprep.subr.bf16.mxu1 %v5615_v0 }
  0x6c   :  { %598 = vmatpush1.bf16.msra.mxu0 %v5155_v8  ;;  %4780 = vmatpush3.bf16.msra.mxu1 %v5158_v9 }
  0x6d   :  { %599 = vmatprep.subr.bf16.mxu0 %v5161_v10  ;;  %4781 = vmatprep.subr.bf16.mxu1 %v5615_v0 }
  0x70   :  { %600 = vmatpush1.bf16.msra.mxu0 %v5159_v11  ;;  %4782 = vmatpush3.bf16.msra.mxu1 %v5162_v12 }
  0x71   :  { %1041 = vmatprep.subr.bf16.mxu0 %v5821_v13  ;;  %4787 = vmatprep.subr.bf16.mxu1 %v5615_v0 }
  0x73   :  { %618 = vmatmul.mubr.bf16.vlgmr.msra.gmra.mxu0 %v5807_v51  ;;  %4784 = vmatmul.mubr.bf16.vlgmr.msra.gmra.mxu1 %v5807_v51 }
  0x74   :  { %1042 = vmatpush1.bf16.msra.mxu0 %v5824_v14  ;;  %4788 = vmatpush3.bf16.msra.mxu1 %v5828_v16 }
  0x75   :  { %1043 = vmatprep.subr.bf16.mxu0 %v5826_v15  ;;  %1073 = vmatprep.mubr.bf16.mxu0 %v5616_v1 }
  0x76   :  { %4789 = vmatprep.subr.bf16.mxu1 %v5615_v0  ;;  %4803 = vmatprep.mubr.msk.bf16.mxu1 %vm5617_vm0, %v5615_v0 }
  0x78   :  { %1044 = vmatpush1.bf16.msra.mxu0 %v5831_v17  ;;  %4790 = vmatpush3.bf16.msra.mxu1 %v5837_v19 }
  0x79   :  { %1045 = vmatprep.subr.bf16.mxu0 %v5835_v18  ;;  %4791 = vmatprep.subr.bf16.mxu1 %v5615_v0 }
  0x7c   :  { %1046 = vmatpush1.bf16.msra.mxu0 %v5843_v21  ;;  %4792 = vmatpush3.bf16.msra.mxu1 %v5849_v23 }
  0x7d   :  { %1047 = vmatprep.subr.bf16.mxu0 %v5847_v22  ;;  %4793 = vmatprep.subr.bf16.mxu1 %v5615_v0 }
  0x80   :  { %1048 = vmatpush1.bf16.msra.mxu0 %v5856_v24  ;;  %4794 = vmatpush3.bf16.msra.mxu1 %v5861_v26 }
  0x81   :  { %1049 = vmatprep.subr.bf16.mxu0 %v5859_v25  ;;  %4795 = vmatprep.subr.bf16.mxu1 %v5615_v0 }
  0x84   :  { %1050 = vmatpush1.bf16.msra.mxu0 %v5866_v28  ;;  %4796 = vmatpush3.bf16.msra.mxu1 %v5871_v30 }
  0x85   :  { %1051 = vmatprep.subr.bf16.mxu0 %v5869_v29  ;;  %4797 = vmatprep.subr.bf16.mxu1 %v5615_v0 }
  0x88   :  { %1052 = vmatpush1.bf16.msra.mxu0 %v5876_v31  ;;  %4798 = vmatpush3.bf16.msra.mxu1 %v5881_v33 }
  0x89   :  { %1053 = vmatprep.subr.bf16.mxu0 %v5879_v32  ;;  %4799 = vmatprep.subr.bf16.mxu1 %v5615_v0 }
  0x8c   :  { %1054 = vmatpush1.bf16.msra.mxu0 %v5886_v34  ;;  %4800 = vmatpush3.bf16.msra.mxu1 %v5891_v36 }
  0x8d   :  { %1055 = vmatprep.subr.bf16.mxu0 %v5889_v35  ;;  %4801 = vmatprep.subr.bf16.mxu1 %v5615_v0 }
  0x90   :  { %1056 = vmatpush1.bf16.msra.mxu0 %v5896_v37  ;;  %4802 = vmatpush3.bf16.msra.mxu1 %v5899_v38 }
  0x91   :  { %1150 = vmatprep.subr.bf16.mxu0 %v5821_v13  ;;  %4807 = vmatprep.subr.bf16.mxu1 %v5615_v0 }
  0x93   :  { %1074 = vmatmul.mubr.bf16.vlgmr.msra.gmra.mxu0 %v5616_v1  ;;  %4804 = vmatmul.mubr.bf16.vlgmr.msra.gmra.mxu1 %v5616_v1 }
  0x94   :  { %1151 = vmatpush1.bf16.msra.mxu0 %v5824_v14  ;;  %4808 = vmatpush3.bf16.msra.mxu1 %v5828_v16 }
  0x95   :  { %1152 = vmatprep.subr.bf16.mxu0 %v5826_v15  ;;  %4809 = vmatprep.subr.bf16.mxu1 %v5615_v0 }
  0x96   :  { %1182 = vmatprep.mubr.bf16.mxu0 %v5616_v1  ;;  %4823 = vmatprep.mubr.msk.bf16.mxu1 %vm5617_vm0, %v5615_v0 }
  0x98   :  { %1153 = vmatpush1.bf16.msra.mxu0 %v5831_v17  ;;  %4810 = vmatpush3.bf16.msra.mxu1 %v5837_v19 }
  0x99   :  { %1154 = vmatprep.subr.bf16.mxu0 %v5835_v18  ;;  %4811 = vmatprep.subr.bf16.mxu1 %v5615_v0 }
  0x9c   :  { %1155 = vmatpush1.bf16.msra.mxu0 %v5843_v21  ;;  %4812 = vmatpush3.bf16.msra.mxu1 %v5849_v23 }
  0x9d   :  { %1156 = vmatprep.subr.bf16.mxu0 %v5847_v22  ;;  %4813 = vmatprep.subr.bf16.mxu1 %v5615_v0 }
  0xa0   :  { %1157 = vmatpush1.bf16.msra.mxu0 %v5856_v24  ;;  %4814 = vmatpush3.bf16.msra.mxu1 %v5861_v26 }
  0xa1   :  { %1158 = vmatprep.subr.bf16.mxu0 %v5859_v25  ;;  %4815 = vmatprep.subr.bf16.mxu1 %v5615_v0 }
  0xa4   :  { %1159 = vmatpush1.bf16.msra.mxu0 %v5866_v28  ;;  %4816 = vmatpush3.bf16.msra.mxu1 %v5871_v30 }
  0xa5   :  { %1160 = vmatprep.subr.bf16.mxu0 %v5869_v29  ;;  %4817 = vmatprep.subr.bf16.mxu1 %v5615_v0 }
  0xa8   :  { %1161 = vmatpush1.bf16.msra.mxu0 %v5876_v31  ;;  %4818 = vmatpush3.bf16.msra.mxu1 %v5881_v33 }
  0xa9   :  { %1162 = vmatprep.subr.bf16.mxu0 %v5879_v32  ;;  %4819 = vmatprep.subr.bf16.mxu1 %v5615_v0 }
  0xac   :  { %1163 = vmatpush1.bf16.msra.mxu0 %v5886_v34  ;;  %4820 = vmatpush3.bf16.msra.mxu1 %v5891_v36 }
  0xad   :  { %1164 = vmatprep.subr.bf16.mxu0 %v5889_v35  ;;  %4821 = vmatprep.subr.bf16.mxu1 %v5615_v0 }
  0xb0   :  { %1165 = vmatpush1.bf16.msra.mxu0 %v5896_v37  ;;  %4822 = vmatpush3.bf16.msra.mxu1 %v5899_v38 }
  0xb1   :  { %1259 = vmatprep.subr.bf16.mxu0 %v5821_v13  ;;  %4827 = vmatprep.subr.bf16.mxu1 %v5615_v0 }
 0x113   :  { %v358_v46 = vpop.f32.mrf.mxu0  ;;  %v401_v48 = vpop.f32.mrf.mxu1 }
 0x114   :  { %v359_v47 = vadd.f32 %v358_v46, %v184_v43  ;;  %v402_v50 = vadd.f32 %v401_v48, %v192_v44 }
 0x115   :  { %v360_v49 = vpop.f32.mrf.mxu0  ;;  %v4765_v52 = vpop.f32.mrf.mxu1 }
 0x116   :  { %v361_v51 = vadd.f32 %v360_v49, %v188_v45  ;;  %v695_v53 = vcombine.high %v402_v50, %v402_v50  ;;  %v686_v57 = vrot.slane %v402_v50, %v5762_v27  ;;  %v440_v49 = vld [vmem:[%s6689_s7] sm:$0x7] }
 0x117   :  { %v362_v54 = vpop.f32.mrf.mxu0  ;;  %v404_v58 = vpop.f32.mrf.mxu1  ;;  %v445_v50 = vrot.slane %v440_v49, %v5947_v39  ;;  %v449_v52 = vrot.slane %v440_v49, %v5956_v42 }
 0x118   :  { %v672_v55 = vcombine.low %v359_v47, %v361_v51  ;;  %v694_v56 = vcombine.high %v359_v47, %v361_v51  ;;  %v709_v59 = vrot.slane %v695_v53, %v5762_v27  ;;  %v405_v61 = vadd.f32 %v404_v58, %v192_v44 }
 0x119   :  { %v364_v60 = vpop.f32.mrf.mxu0  ;;  %v4766_v3 = vpop.f32.mrf.mxu1  ;;  %v363_v4 = vadd.f32 %v362_v54, %v184_v43  ;;  %v453_v51 = vrot.slane %v440_v49, %v5953_v41 }
 0x11a   :  { %v679_v62 = vrot.slane %v672_v55, %v5762_v27  ;;  %v702_v63 = vrot.slane %v694_v56, %v5762_v27  ;;  %v365_v2 = vadd.f32 %v364_v60, %v188_v45  ;;  %v745_v5 = vcombine.high %v405_v61, %v405_v61 }
 0x11b   :  { %v735_v12 = vrot.slane %v405_v61, %v5762_v27 }
 0x11c   :  { %v687_v6 = vcombine.low %v679_v62, %v686_v57  ;;  %v690_v7 = vcombine.high %v679_v62, %v686_v57  ;;  %v710_v8 = vcombine.low %v702_v63, %v709_v59  ;;  %v714_v9 = vcombine.high %v702_v63, %v709_v59 }
 0x11d   :  { %v721_v10 = vcombine.low %v363_v4, %v365_v2  ;;  %v744_v11 = vcombine.high %v363_v4, %v365_v2  ;;  %v759_v40 = vrot.slane %v745_v5, %v5762_v27 }
 0x11e   :  { %689 = vst [vmem:[#allocation2] sm:$0x3f] %v687_v6  ;;  %693 = vst [vmem:[#allocation2 + $0x6] sm:$0x3f] %v690_v7 }
 0x11f   :  { %713 = vst [vmem:[#allocation2 + $0xc] sm:$0x3f] %v710_v8  ;;  %717 = vst [vmem:[#allocation2 + $0x12] sm:$0x3f] %v714_v9  ;;  %v728_v44 = vrot.slane %v721_v10, %v5762_v27  ;;  %v752_v45 = vrot.slane %v744_v11, %v5762_v27 }
 0x121   :  { %v736_v43 = vcombine.low %v728_v44, %v735_v12  ;;  %v740_v46 = vcombine.high %v728_v44, %v735_v12  ;;  %v760_v47 = vcombine.low %v752_v45, %v759_v40  ;;  %v764_v48 = vcombine.high %v752_v45, %v759_v40 }
 0x123   :  { %739 = vst [vmem:[#allocation2 + $0x18] sm:$0x3f] %v736_v43  ;;  %743 = vst [vmem:[#allocation2 + $0x1e] sm:$0x3f] %v740_v46 }
 0x124   :  { %763 = vst [vmem:[#allocation2 + $0x24] sm:$0x3f] %v760_v47  ;;  %767 = vst [vmem:[#allocation2 + $0x2a] sm:$0x3f] %v764_v48 }
 0x133   :  { %v619_v53 = vpop.f32.mrf.mxu0  ;;  %v662_v55 = vpop.f32.mrf.mxu1 }
 0x134   :  { %v620_v54 = vadd.f32 %v619_v53, %v445_v50  ;;  %v663_v57 = vadd.f32 %v662_v55, %v453_v51  ;;  %v896_v55 = vld [vmem:[%s6686_s4] sm:$0x7] }
 0x135   :  { %v621_v56 = vpop.f32.mrf.mxu0  ;;  %v4785_v59 = vpop.f32.mrf.mxu1 }
 0x136   :  { %v622_v58 = vadd.f32 %v621_v56, %v449_v52  ;;  %v794_v60 = vcombine.high %v663_v57, %v663_v57  ;;  %v785_v2 = vrot.slane %v663_v57, %v5762_v27  ;;  %v5987_v56 = vrot.slane %v896_v55, %v5947_v39 }
 0x137   :  { %v623_v61 = vpop.f32.mrf.mxu0  ;;  %v665_v3 = vpop.f32.mrf.mxu1  ;;  %v5991_v59 = vrot.slane %v896_v55, %v5956_v42 }
 0x138   :  { %v771_v62 = vcombine.low %v620_v54, %v622_v58  ;;  %v793_v63 = vcombine.high %v620_v54, %v622_v58  ;;  %v808_v4 = vrot.slane %v794_v60, %v5762_v27  ;;  %v666_v6 = vadd.f32 %v665_v3, %v453_v51 }
 0x139   :  { %v625_v5 = vpop.f32.mrf.mxu0  ;;  %v4786_v10 = vpop.f32.mrf.mxu1  ;;  %v624_v11 = vadd.f32 %v623_v61, %v445_v50  ;;  %v863_v61 = vld [vmem:[#allocation2] sm:$0x3f] }
 0x13a   :  { %v778_v7 = vrot.slane %v771_v62, %v5762_v27  ;;  %v801_v8 = vrot.slane %v793_v63, %v5762_v27  ;;  %v626_v9 = vadd.f32 %v625_v5, %v449_v52  ;;  %v844_v12 = vcombine.high %v666_v6, %v666_v6 }
 0x13b   :  { %v834_v48 = vrot.slane %v666_v6, %v5762_v27 }
 0x13c   :  { %v786_v40 = vcombine.low %v778_v7, %v785_v2  ;;  %v789_v44 = vcombine.high %v778_v7, %v785_v2  ;;  %v809_v45 = vcombine.low %v801_v8, %v808_v4  ;;  %v813_v43 = vcombine.high %v801_v8, %v808_v4 }
 0x13d   :  { %v820_v46 = vcombine.low %v624_v11, %v626_v9  ;;  %v843_v47 = vcombine.high %v624_v11, %v626_v9  ;;  %v858_v49 = vrot.slane %v844_v12, %v5762_v27  ;;  %v1130_v8 = vrot.slane %v863_v61, 2 }
 0x13e   :  { %788 = vst [vmem:[#allocation3] sm:$0x3f] %v786_v40  ;;  %792 = vst [vmem:[#allocation3 + $0x6] sm:$0x3f] %v789_v44  ;;  %v5995_v44 = vrot.slane %v896_v55, %v5953_v41 }
 0x13f   :  { %812 = vst [vmem:[#allocation3 + $0xc] sm:$0x3f] %v809_v45  ;;  %816 = vst [vmem:[#allocation3 + $0x12] sm:$0x3f] %v813_v43  ;;  %v827_v51 = vrot.slane %v820_v46, %v5762_v27  ;;  %v851_v52 = vrot.slane %v843_v47, %v5762_v27 }
 0x141   :  { %v835_v50 = vcombine.low %v827_v51, %v834_v48  ;;  %v839_v53 = vcombine.high %v827_v51, %v834_v48  ;;  %v859_v54 = vcombine.low %v851_v52, %v858_v49  ;;  %v1140_v49 = vrot.slane %v863_v61, 4 }
 0x143   :  { %838 = vst [vmem:[#allocation3 + $0x18] sm:$0x3f] %v835_v50  ;;  %842 = vst [vmem:[#allocation3 + $0x1e] sm:$0x3f] %v839_v53 }
 0x144   :  { %862 = vst [vmem:[#allocation3 + $0x24] sm:$0x3f] %v859_v54 }
 0x153   :  { %v1075_v57 = vpop.f32.mrf.mxu0  ;;  %v1116_v60 = vpop.f32.mrf.mxu1 }
 0x154   :  { %v1076_v58 = vadd.f32 %v1075_v57, %v5987_v56  ;;  %v1117_v46 = vadd.f32 %v1116_v60, %v5995_v44 }
 0x155   :  { %v1077_v62 = vpop.f32.mrf.mxu0  ;;  %v4805_v2 = vpop.f32.mrf.mxu1 }
 0x156   :  { %v1122_v63 = vadd.f32 %v1076_v58, %v863_v61  ;;  %v1078_v5 = vadd.f32 %v1077_v62, %v5991_v59 }
 0x157   :  { %v1079_v3 = vpop.f32.mrf.mxu0  ;;  %v1119_v6 = vpop.f32.mrf.mxu1 }
 0x158   :  { %v4363_v4 = vmul.f32 -1.442695, %v1122_v63  ;;  %v1132_v10 = vadd.f32 %v1130_v8, %v1078_v5  ;;  %v1148_v63 = vld [vmem:[#allocation2 + $0x6] sm:$0x3f] }
 0x159   :  { %v1080_v7 = vpop.f32.mrf.mxu0  ;;  %v4806_v9 = vpop.f32.mrf.mxu1 }
 0x15a   :  { %5347 = vpow2.f32 %v4363_v4  ;;  %v4364_v11 = vmul.f32 -1.442695, %v1132_v10 }
 0x15c   :  { %5349 = vpow2.f32 %v4364_v11  ;;  %v1239_v11 = vrot.slane %v1148_v63, 2 }
 0x167   :  { %v5348_v12 = vpop.eup %5347 }
 0x168   :  { %v1126_v40 = vadd.f32 1.0, %v5348_v12 }
 0x169   :  { %v5350_v45 = vpop.eup %5349 }
 0x16a   :  { %5351 = vrcp.f32 %v1126_v40  ;;  %v1136_v43 = vadd.f32 1.0, %v5350_v45 }
 0x16c   :  { %5353 = vrcp.f32 %v1136_v43 }
 0x177   :  { %v5352_v47 = vpop.eup %5351 }
 0x178   :  { %v1139_v48 = vmul.f32 %v5352_v47, %v1117_v46 }
 0x179   :  { %v5354_v52 = vpop.eup %5353 }
 0x17a   :  { %v1142_v51 = vadd.f32 %v1140_v49, %v1139_v48  ;;  %v1144_v50 = vsub.f32 1.0, %v5354_v52  ;;  %v1146_v57 = vmul.f32 0.0, %v5354_v52 }
 0x17c   :  { %5355 = vtanh.f32 %v1142_v51  ;;  %v1249_v51 = vrot.slane %v1148_v63, 4 }
 0x189   :  { %v5356_v53 = vpop.eup %5355 }
 0x18a   :  { %v1145_v54 = vmul.f32 %v5356_v53, %v1144_v50 }
 0x18c   :  { %v5998_v58 = vadd.f32 %v1146_v57, %v1145_v54 }
 0x18e   :  { %v1149_v55 = vpack.c.bf16 %v5998_v58, %v5998_v58 }
 0x190   :  { %1183 = vmatmul.mubr.bf16.vlgmr.msra.gmra.mxu0 %v1149_v55  ;;  %4824 = vmatmul.mubr.bf16.vlgmr.msra.gmra.mxu1 %v1149_v55 }
 0x191   :  { %1260 = vmatpush1.bf16.msra.mxu0 %v5824_v14  ;;  %4828 = vmatpush3.bf16.msra.mxu1 %v5828_v16 }
 0x192   :  { %1261 = vmatprep.subr.bf16.mxu0 %v5826_v15  ;;  %4829 = vmatprep.subr.bf16.mxu1 %v5615_v0 }
 0x193   :  { %1291 = vmatprep.mubr.bf16.mxu0 %v5616_v1  ;;  %4843 = vmatprep.mubr.msk.bf16.mxu1 %vm5617_vm0, %v5615_v0 }
 0x195   :  { %1262 = vmatpush1.bf16.msra.mxu0 %v5831_v17  ;;  %4830 = vmatpush3.bf16.msra.mxu1 %v5837_v19 }
 0x196   :  { %1263 = vmatprep.subr.bf16.mxu0 %v5835_v18  ;;  %4831 = vmatprep.subr.bf16.mxu1 %v5615_v0 }
 0x199   :  { %1264 = vmatpush1.bf16.msra.mxu0 %v5843_v21  ;;  %4832 = vmatpush3.bf16.msra.mxu1 %v5849_v23 }
 0x19a   :  { %1265 = vmatprep.subr.bf16.mxu0 %v5847_v22  ;;  %4833 = vmatprep.subr.bf16.mxu1 %v5615_v0 }
 0x19d   :  { %1266 = vmatpush1.bf16.msra.mxu0 %v5856_v24  ;;  %4834 = vmatpush3.bf16.msra.mxu1 %v5861_v26 }
 0x19e   :  { %1267 = vmatprep.subr.bf16.mxu0 %v5859_v25  ;;  %4835 = vmatprep.subr.bf16.mxu1 %v5615_v0 }
 0x1a1   :  { %1268 = vmatpush1.bf16.msra.mxu0 %v5866_v28  ;;  %4836 = vmatpush3.bf16.msra.mxu1 %v5871_v30 }
 0x1a2   :  { %1269 = vmatprep.subr.bf16.mxu0 %v5869_v29  ;;  %4837 = vmatprep.subr.bf16.mxu1 %v5615_v0 }
 0x1a5   :  { %1270 = vmatpush1.bf16.msra.mxu0 %v5876_v31  ;;  %4838 = vmatpush3.bf16.msra.mxu1 %v5881_v33 }
 0x1a6   :  { %1271 = vmatprep.subr.bf16.mxu0 %v5879_v32  ;;  %4839 = vmatprep.subr.bf16.mxu1 %v5615_v0 }
 0x1a9   :  { %1272 = vmatpush1.bf16.msra.mxu0 %v5886_v34  ;;  %4840 = vmatpush3.bf16.msra.mxu1 %v5891_v36 }
 0x1aa   :  { %1273 = vmatprep.subr.bf16.mxu0 %v5889_v35  ;;  %4841 = vmatprep.subr.bf16.mxu1 %v5615_v0 }
 0x1ad   :  { %1274 = vmatpush1.bf16.msra.mxu0 %v5896_v37  ;;  %4842 = vmatpush3.bf16.msra.mxu1 %v5899_v38 }
 0x1ae   :  { %1368 = vmatprep.subr.bf16.mxu0 %v5821_v13  ;;  %4847 = vmatprep.subr.bf16.mxu1 %v5615_v0 }
 0x250   :  { %v1184_v60 = vpop.f32.mrf.mxu0  ;;  %v1225_v61 = vpop.f32.mrf.mxu1 }
 0x251   :  { %v1185_v62 = vadd.f32 %v1184_v60, %v5987_v56  ;;  %v1226_v47 = vadd.f32 %v1225_v61, %v5995_v44 }
 0x252   :  { %v1186_v2 = vpop.f32.mrf.mxu0  ;;  %v4825_v3 = vpop.f32.mrf.mxu1 }
 0x253   :  { %v1231_v4 = vadd.f32 %v1185_v62, %v1148_v63  ;;  %v1187_v8 = vadd.f32 %v1186_v2, %v5991_v59 }
 0x254   :  { %v1188_v5 = vpop.f32.mrf.mxu0  ;;  %v1228_v6 = vpop.f32.mrf.mxu1 }
 0x255   :  { %v4365_v7 = vmul.f32 -1.442695, %v1231_v4  ;;  %v1241_v13 = vadd.f32 %v1239_v11, %v1187_v8 }
 0x256   :  { %v1189_v9 = vpop.f32.mrf.mxu0  ;;  %v4826_v10 = vpop.f32.mrf.mxu1 }
 0x257   :  { %5357 = vpow2.f32 %v4365_v7  ;;  %v4366_v12 = vmul.f32 -1.442695, %v1241_v13 }
 0x259   :  { %5359 = vpow2.f32 %v4366_v12 }
 0x264   :  { %v5358_v40 = vpop.eup %5357 }
 0x265   :  { %v1235_v45 = vadd.f32 1.0, %v5358_v40 }
 0x266   :  { %v5360_v43 = vpop.eup %5359 }
 0x267   :  { %5361 = vrcp.f32 %v1235_v45  ;;  %v1245_v46 = vadd.f32 1.0, %v5360_v43 }
 0x269   :  { %5363 = vrcp.f32 %v1245_v46 }
 0x274   :  { %v5362_v48 = vpop.eup %5361 }
 0x275   :  { %v1248_v49 = vmul.f32 %v5362_v48, %v1226_v47 }
 0x276   :  { %v5364_v50 = vpop.eup %5363 }
 0x277   :  { %v1251_v52 = vadd.f32 %v1249_v51, %v1248_v49  ;;  %v1253_v53 = vsub.f32 1.0, %v5364_v50  ;;  %v1255_v55 = vmul.f32 %v5364_v50, %v5998_v58  ;;  %v6090_v50 = vld [vmem:[#allocation5 + $0xa8] ss:$12 sps:$4 sm:$0xff]  }
 0x279   :  { %5365 = vtanh.f32 %v1251_v52 }
 0x286   :  { %v5366_v54 = vpop.eup %5365 }
 0x287   :  { %v1254_v57 = vmul.f32 %v5366_v54, %v1253_v53  ;;  %v6093_v53 = vld [vmem:[#allocation5 + $0xb0] ss:$12 sps:$4 sm:$0xff]   ;;  %v6096_v54 = vld [vmem:[#allocation5 + $0x94] ss:$12 sps:$4 sm:$0xff]  }
 0x289   :  { %v6041_v60 = vadd.f32 %v1255_v55, %v1254_v57  ;;  %v6103_v57 = vld [vmem:[#allocation5 + $0x90] ss:$12 sps:$4 sm:$0xff]   ;;  %v6106_v55 = vld [vmem:[#allocation5 + $0x98] ss:$12 sps:$4 sm:$0xff]  }
 0x28b   :  { %v1258_v62 = vpack.c.bf16 %v6041_v60, %v6041_v60 }
 0x28d   :  { %1292 = vmatmul.mubr.bf16.vlgmr.msra.gmra.mxu0 %v1258_v62  ;;  %4844 = vmatmul.mubr.bf16.vlgmr.msra.gmra.mxu1 %v1258_v62  ;;  %v6113_v62 = vld [vmem:[#allocation5 + $0x78] ss:$12 sps:$4 sm:$0xff]  }
 0x28e   :  { %1369 = vmatpush1.bf16.msra.mxu0 %v5824_v14  ;;  %4848 = vmatpush3.bf16.msra.mxu1 %v5828_v16  ;;  %v6078_v14 = vld [vmem:[#allocation5 + $0xac] ss:$12 sps:$4 sm:$0xff]  }
 0x28f   :  { %1370 = vmatprep.subr.bf16.mxu0 %v5826_v15  ;;  %4849 = vmatprep.subr.bf16.mxu1 %v5615_v0 }
 0x290   :  { %1400 = vmatprep.mubr.bf16.mxu0 %v5616_v1  ;;  %4863 = vmatprep.mubr.msk.bf16.mxu1 %vm5617_vm0, %v5615_v0 }
 0x292   :  { %1371 = vmatpush1.bf16.msra.mxu0 %v5831_v17  ;;  %4850 = vmatpush3.bf16.msra.mxu1 %v5837_v19 }
 0x293   :  { %1372 = vmatprep.subr.bf16.mxu0 %v5835_v18  ;;  %4851 = vmatprep.subr.bf16.mxu1 %v5615_v0  ;;  %v1257_v18 = vld [vmem:[#allocation2 + $0xc] sm:$0x3f] }
 0x294   :  { %v1348_v4 = vrot.slane %v1257_v18, 2  ;;  %v1358_v40 = vrot.slane %v1257_v18, 4 }
 0x296   :  { %1373 = vmatpush1.bf16.msra.mxu0 %v5843_v21  ;;  %4852 = vmatpush3.bf16.msra.mxu1 %v5849_v23 }
 0x297   :  { %1374 = vmatprep.subr.bf16.mxu0 %v5847_v22  ;;  %4853 = vmatprep.subr.bf16.mxu1 %v5615_v0 }
 0x29a   :  { %1375 = vmatpush1.bf16.msra.mxu0 %v5856_v24  ;;  %4854 = vmatpush3.bf16.msra.mxu1 %v5861_v26 }
 0x29b   :  { %1376 = vmatprep.subr.bf16.mxu0 %v5859_v25  ;;  %4855 = vmatprep.subr.bf16.mxu1 %v5615_v0 }
 0x29e   :  { %1377 = vmatpush1.bf16.msra.mxu0 %v5866_v28  ;;  %4856 = vmatpush3.bf16.msra.mxu1 %v5871_v30 }
 0x29f   :  { %1378 = vmatprep.subr.bf16.mxu0 %v5869_v29  ;;  %4857 = vmatprep.subr.bf16.mxu1 %v5615_v0 }
 0x2a2   :  { %1379 = vmatpush1.bf16.msra.mxu0 %v5876_v31  ;;  %4858 = vmatpush3.bf16.msra.mxu1 %v5881_v33 }
 0x2a3   :  { %1380 = vmatprep.subr.bf16.mxu0 %v5879_v32  ;;  %4859 = vmatprep.subr.bf16.mxu1 %v5615_v0 }
 0x2a6   :  { %1381 = vmatpush1.bf16.msra.mxu0 %v5886_v34  ;;  %4860 = vmatpush3.bf16.msra.mxu1 %v5891_v36 }
 0x2a7   :  { %1382 = vmatprep.subr.bf16.mxu0 %v5889_v35  ;;  %4861 = vmatprep.subr.bf16.mxu1 %v5615_v0 }
 0x2aa   :  { %1383 = vmatpush1.bf16.msra.mxu0 %v5896_v37  ;;  %4862 = vmatpush3.bf16.msra.mxu1 %v5899_v38 }
 0x2ab   :  { %1477 = vmatprep.subr.bf16.mxu0 %v6078_v14  ;;  %4867 = vmatprep.subr.bf16.mxu1 %v5615_v0 }
 0x34d   :  { %v1293_v15 = vpop.f32.mrf.mxu0  ;;  %v1334_v16 = vpop.f32.mrf.mxu1 }
 0x34e   :  { %v1294_v17 = vadd.f32 %v1293_v15, %v5987_v56  ;;  %v1335_v11 = vadd.f32 %v1334_v16, %v5995_v44  ;;  %v6116_v15 = vld [vmem:[#allocation5 + $0x80] ss:$12 sps:$4 sm:$0xff]   ;;  %v6119_v16 = vld [vmem:[#allocation5 + $0x64] ss:$12 sps:$4 sm:$0xff]  }
 0x34f   :  { %v1295_v19 = vpop.f32.mrf.mxu0  ;;  %v4845_v21 = vpop.f32.mrf.mxu1 }
 0x350   :  { %v1340_v22 = vadd.f32 %v1294_v17, %v1257_v18  ;;  %v1296_v63 = vadd.f32 %v1295_v19, %v5991_v59 }
 0x351   :  { %v1297_v23 = vpop.f32.mrf.mxu0  ;;  %v1337_v58 = vpop.f32.mrf.mxu1 }
 0x352   :  { %v4367_v61 = vmul.f32 -1.442695, %v1340_v22  ;;  %v1350_v5 = vadd.f32 %v1348_v4, %v1296_v63 }
 0x353   :  { %v1298_v2 = vpop.f32.mrf.mxu0  ;;  %v4846_v3 = vpop.f32.mrf.mxu1 }
 0x354   :  { %5367 = vpow2.f32 %v4367_v61  ;;  %v4368_v6 = vmul.f32 -1.442695, %v1350_v5 }
 0x356   :  { %5369 = vpow2.f32 %v4368_v6 }
 0x361   :  { %v5368_v7 = vpop.eup %5367 }
 0x362   :  { %v1344_v8 = vadd.f32 1.0, %v5368_v7 }
 0x363   :  { %v5370_v9 = vpop.eup %5369 }
 0x364   :  { %5371 = vrcp.f32 %v1344_v8  ;;  %v1354_v10 = vadd.f32 1.0, %v5370_v9 }
 0x366   :  { %5373 = vrcp.f32 %v1354_v10 }
 0x371   :  { %v5372_v13 = vpop.eup %5371 }
 0x372   :  { %v1357_v12 = vmul.f32 %v5372_v13, %v1335_v11  ;;  %v6166_v11 = vld [vmem:[#allocation5 + $0x60] ss:$12 sps:$4 sm:$0xff]   ;;  %v6169_v13 = vld [vmem:[#allocation5 + $0x68] ss:$12 sps:$4 sm:$0xff]  }
 0x373   :  { %v5374_v43 = vpop.eup %5373 }
 0x374   :  { %v1360_v45 = vadd.f32 %v1358_v40, %v1357_v12  ;;  %v1362_v46 = vsub.f32 1.0, %v5374_v43  ;;  %v1364_v49 = vmul.f32 %v5374_v43, %v6041_v60  ;;  %v6109_v60 = vld [vmem:[#allocation5 + $0x7c] ss:$12 sps:$4 sm:$0xff]   ;;  %v6172_v12 = vld [vmem:[#allocation5 + $0x4c] ss:$12 sps:$4 sm:$0xff]  }
 0x375   :  { %v6176_v40 = vld [vmem:[#allocation5 + $0x48] ss:$12 sps:$4 sm:$0xff]  }
 0x376   :  { %5375 = vtanh.f32 %v1360_v45  ;;  %v6179_v45 = vld [vmem:[#allocation5 + $0x50] ss:$12 sps:$4 sm:$0xff]   ;;  %v6182_v43 = vld [vmem:[#allocation5 + $0x34] ss:$12 sps:$4 sm:$0xff]  }
 0x383   :  { %v5376_v47 = vpop.eup %5375 }
 0x384   :  { %v1363_v48 = vmul.f32 %v5376_v47, %v1362_v46  ;;  %v6186_v46 = vld [vmem:[#allocation5 + $0x30] ss:$12 sps:$4 sm:$0xff]   ;;  %v6189_v47 = vld [vmem:[#allocation5 + $0x38] ss:$12 sps:$4 sm:$0xff]  }
 0x386   :  { %v6086_v51 = vadd.f32 %v1364_v49, %v1363_v48  ;;  %v6192_v48 = vld [vmem:[#allocation5 + $0x1c] ss:$12 sps:$4 sm:$0xff]   ;;  %v6196_v49 = vld [vmem:[#allocation5 + $0x18] ss:$12 sps:$4 sm:$0xff]  }
 0x388   :  { %v1367_v52 = vpack.c.bf16 %v6086_v51, %v6086_v51 }
 0x38a   :  { %1401 = vmatmul.mubr.bf16.vlgmr.msra.gmra.mxu0 %v1367_v52  ;;  %4864 = vmatmul.mubr.bf16.vlgmr.msra.gmra.mxu1 %v1367_v52  ;;  %v6202_v52 = vld [vmem:[#allocation5 + $0x4] ss:$12 sps:$4 sm:$0xff]  }
 0x38b   :  { %1478 = vmatpush1.bf16.msra.mxu0 %v6090_v50  ;;  %4868 = vmatpush3.bf16.msra.mxu1 %v6093_v53 }
 0x38c   :  { %1479 = vmatprep.subr.bf16.mxu0 %v6096_v54  ;;  %4869 = vmatprep.subr.bf16.mxu1 %v5615_v0 }
 0x38d   :  { %1509 = vmatprep.mubr.bf16.mxu0 %v5616_v1  ;;  %4883 = vmatprep.mubr.msk.bf16.mxu1 %vm5617_vm0, %v5615_v0 }
 0x38f   :  { %1480 = vmatpush1.bf16.msra.mxu0 %v6103_v57  ;;  %4870 = vmatpush3.bf16.msra.mxu1 %v6106_v55 }
 0x390   :  { %1481 = vmatprep.subr.bf16.mxu0 %v6109_v60  ;;  %4871 = vmatprep.subr.bf16.mxu1 %v5615_v0 }
 0x393   :  { %1482 = vmatpush1.bf16.msra.mxu0 %v6113_v62  ;;  %4872 = vmatpush3.bf16.msra.mxu1 %v6116_v15 }
 0x394   :  { %1483 = vmatprep.subr.bf16.mxu0 %v6119_v16  ;;  %4873 = vmatprep.subr.bf16.mxu1 %v5615_v0 }
 0x397   :  { %1484 = vmatpush1.bf16.msra.mxu0 %v5856_v24  ;;  %4874 = vmatpush3.bf16.msra.mxu1 %v5861_v26 }
 0x398   :  { %1485 = vmatprep.subr.bf16.mxu0 %v5859_v25  ;;  %4875 = vmatprep.subr.bf16.mxu1 %v5615_v0 }
 0x39b   :  { %1486 = vmatpush1.bf16.msra.mxu0 %v5866_v28  ;;  %4876 = vmatpush3.bf16.msra.mxu1 %v5871_v30  ;;  %v1366_v28 = vld [vmem:[#allocation2 + $0x12] sm:$0x3f] }
 0x39c   :  { %1487 = vmatprep.subr.bf16.mxu0 %v5869_v29  ;;  %4877 = vmatprep.subr.bf16.mxu1 %v5615_v0  ;;  %v1467_v2 = vrot.slane %v1366_v28, 4 }
 0x39f   :  { %1488 = vmatpush1.bf16.msra.mxu0 %v5876_v31  ;;  %4878 = vmatpush3.bf16.msra.mxu1 %v5881_v33 }
 0x3a0   :  { %1489 = vmatprep.subr.bf16.mxu0 %v5879_v32  ;;  %4879 = vmatprep.subr.bf16.mxu1 %v5615_v0 }
 0x3a3   :  { %1490 = vmatpush1.bf16.msra.mxu0 %v5886_v34  ;;  %4880 = vmatpush3.bf16.msra.mxu1 %v5891_v36 }
 0x3a4   :  { %1491 = vmatprep.subr.bf16.mxu0 %v5889_v35  ;;  %4881 = vmatprep.subr.bf16.mxu1 %v5615_v0 }
 0x3a7   :  { %1492 = vmatpush1.bf16.msra.mxu0 %v5896_v37  ;;  %4882 = vmatpush3.bf16.msra.mxu1 %v5899_v38  ;;  %v1457_v38 = vrot.slane %v1366_v28, 2 }
 0x3a8   :  { %1586 = vmatprep.subr.bf16.mxu0 %v6078_v14  ;;  %4887 = vmatprep.subr.bf16.mxu1 %v5615_v0 }
 0x44a   :  { %v1402_v24 = vpop.f32.mrf.mxu0  ;;  %v1443_v25 = vpop.f32.mrf.mxu1 }
 0x44b   :  { %v1403_v26 = vadd.f32 %v1402_v24, %v5987_v56  ;;  %v1444_v58 = vadd.f32 %v1443_v25, %v5995_v44  ;;  %v6206_v24 = vld [vmem:[#allocation5] ss:$12 sps:$4 sm:$0xff]   ;;  %v6209_v25 = vld [vmem:[#allocation5 + $0x8] ss:$12 sps:$4 sm:$0xff]  }
 0x44c   :  { %v1404_v29 = vpop.f32.mrf.mxu0  ;;  %v4865_v30 = vpop.f32.mrf.mxu1 }
 0x44d   :  { %v1449_v31 = vadd.f32 %v1403_v26, %v1366_v28  ;;  %v1405_v35 = vadd.f32 %v1404_v29, %v5991_v59  ;;  %v1475_v30 = vld [vmem:[#allocation2 + $0x18] sm:$0x3f] }
 0x44e   :  { %v1406_v32 = vpop.f32.mrf.mxu0  ;;  %v1446_v33 = vpop.f32.mrf.mxu1 }
 0x44f   :  { %v4369_v34 = vmul.f32 -1.442695, %v1449_v31  ;;  %v1459_v17 = vadd.f32 %v1457_v38, %v1405_v35 }
 0x450   :  { %v1407_v36 = vpop.f32.mrf.mxu0  ;;  %v4866_v37 = vpop.f32.mrf.mxu1 }
 0x451   :  { %5377 = vpow2.f32 %v4369_v34  ;;  %v4370_v18 = vmul.f32 -1.442695, %v1459_v17 }
 0x453   :  { %5379 = vpow2.f32 %v4370_v18  ;;  %v1566_v18 = vrot.slane %v1475_v30, 2 }
 0x45e   :  { %v5378_v19 = vpop.eup %5377 }
 0x45f   :  { %v1453_v21 = vadd.f32 1.0, %v5378_v19 }
 0x460   :  { %v5380_v22 = vpop.eup %5379 }
 0x461   :  { %5381 = vrcp.f32 %v1453_v21  ;;  %v1463_v23 = vadd.f32 1.0, %v5380_v22 }
 0x463   :  { %5383 = vrcp.f32 %v1463_v23 }
 0x46e   :  { %v5382_v61 = vpop.eup %5381 }
 0x46f   :  { %v1466_v63 = vmul.f32 %v5382_v61, %v1444_v58 }
 0x470   :  { %v5384_v4 = vpop.eup %5383 }
 0x471   :  { %v1469_v3 = vadd.f32 %v1467_v2, %v1466_v63  ;;  %v1471_v5 = vsub.f32 1.0, %v5384_v4  ;;  %v1473_v8 = vmul.f32 %v5384_v4, %v6086_v51  ;;  %v6199_v51 = vld [vmem:[#allocation5 + $0x20] ss:$12 sps:$4 sm:$0xff]   ;;  %v1576_v4 = vrot.slane %v1475_v30, 4 }
 0x473   :  { %5385 = vtanh.f32 %v1469_v3 }
 0x480   :  { %v5386_v6 = vpop.eup %5385 }
 0x481   :  { %v1472_v7 = vmul.f32 %v5386_v6, %v1471_v5 }
 0x483   :  { %v6147_v9 = vadd.f32 %v1473_v8, %v1472_v7 }
 0x485   :  { %v1476_v10 = vpack.c.bf16 %v6147_v9, %v6147_v9 }
 0x487   :  { %1510 = vmatmul.mubr.bf16.vlgmr.msra.gmra.mxu0 %v1476_v10  ;;  %4884 = vmatmul.mubr.bf16.vlgmr.msra.gmra.mxu1 %v1476_v10 }
 0x488   :  { %1587 = vmatpush1.bf16.msra.mxu0 %v6090_v50  ;;  %4888 = vmatpush3.bf16.msra.mxu1 %v6093_v53 }
 0x489   :  { %1588 = vmatprep.subr.bf16.mxu0 %v6096_v54  ;;  %4889 = vmatprep.subr.bf16.mxu1 %v5615_v0 }
 0x48a   :  { %1618 = vmatprep.mubr.bf16.mxu0 %v5616_v1  ;;  %4903 = vmatprep.mubr.msk.bf16.mxu1 %vm5617_vm0, %v5615_v0 }
 0x48c   :  { %1589 = vmatpush1.bf16.msra.mxu0 %v6103_v57  ;;  %4890 = vmatpush3.bf16.msra.mxu1 %v6106_v55 }
 0x48d   :  { %1590 = vmatprep.subr.bf16.mxu0 %v6109_v60  ;;  %4891 = vmatprep.subr.bf16.mxu1 %v5615_v0 }
 0x490   :  { %1591 = vmatpush1.bf16.msra.mxu0 %v6113_v62  ;;  %4892 = vmatpush3.bf16.msra.mxu1 %v6116_v15 }
 0x491   :  { %1592 = vmatprep.subr.bf16.mxu0 %v6119_v16  ;;  %4893 = vmatprep.subr.bf16.mxu1 %v5615_v0 }
 0x494   :  { %1593 = vmatpush1.bf16.msra.mxu0 %v6166_v11  ;;  %4894 = vmatpush3.bf16.msra.mxu1 %v6169_v13 }
 0x495   :  { %1594 = vmatprep.subr.bf16.mxu0 %v6172_v12  ;;  %4895 = vmatprep.subr.bf16.mxu1 %v5615_v0 }
 0x498   :  { %1595 = vmatpush1.bf16.msra.mxu0 %v6176_v40  ;;  %4896 = vmatpush3.bf16.msra.mxu1 %v6179_v45 }
 0x499   :  { %1596 = vmatprep.subr.bf16.mxu0 %v6182_v43  ;;  %4897 = vmatprep.subr.bf16.mxu1 %v5615_v0 }
 0x49c   :  { %1597 = vmatpush1.bf16.msra.mxu0 %v6186_v46  ;;  %4898 = vmatpush3.bf16.msra.mxu1 %v6189_v47 }
 0x49d   :  { %1598 = vmatprep.subr.bf16.mxu0 %v6192_v48  ;;  %4899 = vmatprep.subr.bf16.mxu1 %v5615_v0 }
 0x4a0   :  { %1599 = vmatpush1.bf16.msra.mxu0 %v6196_v49  ;;  %4900 = vmatpush3.bf16.msra.mxu1 %v6199_v51 }
 0x4a1   :  { %1600 = vmatprep.subr.bf16.mxu0 %v6202_v52  ;;  %4901 = vmatprep.subr.bf16.mxu1 %v5615_v0 }
 0x4a4   :  { %1601 = vmatpush1.bf16.msra.mxu0 %v6206_v24  ;;  %4902 = vmatpush3.bf16.msra.mxu1 %v6209_v25 }
 0x4a5   :  { %1695 = vmatprep.subr.bf16.mxu0 %v6078_v14  ;;  %4907 = vmatprep.subr.bf16.mxu1 %v5615_v0 }
 0x547   :  { %v1511_v26 = vpop.f32.mrf.mxu0  ;;  %v1552_v28 = vpop.f32.mrf.mxu1 }
 0x548   :  { %v1512_v29 = vadd.f32 %v1511_v26, %v5987_v56  ;;  %v1553_v63 = vadd.f32 %v1552_v28, %v5995_v44 }
 0x549   :  { %v1513_v31 = vpop.f32.mrf.mxu0  ;;  %v4885_v32 = vpop.f32.mrf.mxu1 }
 0x54a   :  { %v1558_v33 = vadd.f32 %v1512_v29, %v1475_v30  ;;  %v1514_v37 = vadd.f32 %v1513_v31, %v5991_v59  ;;  %v1584_v32 = vld [vmem:[#allocation2 + $0x1e] sm:$0x3f] }
 0x54b   :  { %v1515_v34 = vpop.f32.mrf.mxu0  ;;  %v1555_v35 = vpop.f32.mrf.mxu1 }
 0x54c   :  { %v4371_v36 = vmul.f32 -1.442695, %v1558_v33  ;;  %v1568_v19 = vadd.f32 %v1566_v18, %v1514_v37 }
 0x54d   :  { %v1516_v38 = vpop.f32.mrf.mxu0  ;;  %v4886_v17 = vpop.f32.mrf.mxu1 }
 0x54e   :  { %5387 = vpow2.f32 %v4371_v36  ;;  %v4372_v21 = vmul.f32 -1.442695, %v1568_v19 }
 0x550   :  { %5389 = vpow2.f32 %v4372_v21  ;;  %v1675_v21 = vrot.slane %v1584_v32, 2 }
 0x55b   :  { %v5388_v22 = vpop.eup %5387 }
 0x55c   :  { %v1562_v23 = vadd.f32 1.0, %v5388_v22 }
 0x55d   :  { %v5390_v58 = vpop.eup %5389 }
 0x55e   :  { %5391 = vrcp.f32 %v1562_v23  ;;  %v1572_v61 = vadd.f32 1.0, %v5390_v58 }
 0x560   :  { %5393 = vrcp.f32 %v1572_v61 }
 0x56b   :  { %v5392_v2 = vpop.eup %5391 }
 0x56c   :  { %v1575_v3 = vmul.f32 %v5392_v2, %v1553_v63 }
 0x56d   :  { %v5394_v6 = vpop.eup %5393 }
 0x56e   :  { %v1578_v5 = vadd.f32 %v1576_v4, %v1575_v3  ;;  %v1580_v7 = vsub.f32 1.0, %v5394_v6  ;;  %v1582_v26 = vmul.f32 %v5394_v6, %v6147_v9 }
 0x570   :  { %5395 = vtanh.f32 %v1578_v5  ;;  %v1685_v5 = vrot.slane %v1584_v32, 4 }
 0x57d   :  { %v5396_v8 = vpop.eup %5395 }
 0x57e   :  { %v1581_v10 = vmul.f32 %v5396_v8, %v1580_v7 }
 0x580   :  { %v6218_v29 = vadd.f32 %v1582_v26, %v1581_v10 }
 0x582   :  { %v1585_v31 = vpack.c.bf16 %v6218_v29, %v6218_v29 }
 0x584   :  { %1619 = vmatmul.mubr.bf16.vlgmr.msra.gmra.mxu0 %v1585_v31  ;;  %4904 = vmatmul.mubr.bf16.vlgmr.msra.gmra.mxu1 %v1585_v31 }
 0x585   :  { %1696 = vmatpush1.bf16.msra.mxu0 %v6090_v50  ;;  %4908 = vmatpush3.bf16.msra.mxu1 %v6093_v53 }
 0x586   :  { %1697 = vmatprep.subr.bf16.mxu0 %v6096_v54  ;;  %4909 = vmatprep.subr.bf16.mxu1 %v5615_v0 }
 0x587   :  { %1727 = vmatprep.mubr.bf16.mxu0 %v5616_v1  ;;  %4923 = vmatprep.mubr.msk.bf16.mxu1 %vm5617_vm0, %v5615_v0 }
 0x589   :  { %1698 = vmatpush1.bf16.msra.mxu0 %v6103_v57  ;;  %4910 = vmatpush3.bf16.msra.mxu1 %v6106_v55 }
 0x58a   :  { %1699 = vmatprep.subr.bf16.mxu0 %v6109_v60  ;;  %4911 = vmatprep.subr.bf16.mxu1 %v5615_v0 }
 0x58d   :  { %1700 = vmatpush1.bf16.msra.mxu0 %v6113_v62  ;;  %4912 = vmatpush3.bf16.msra.mxu1 %v6116_v15 }
 0x58e   :  { %1701 = vmatprep.subr.bf16.mxu0 %v6119_v16  ;;  %4913 = vmatprep.subr.bf16.mxu1 %v5615_v0 }
 0x591   :  { %1702 = vmatpush1.bf16.msra.mxu0 %v6166_v11  ;;  %4914 = vmatpush3.bf16.msra.mxu1 %v6169_v13 }
 0x592   :  { %1703 = vmatprep.subr.bf16.mxu0 %v6172_v12  ;;  %4915 = vmatprep.subr.bf16.mxu1 %v5615_v0 }
 0x595   :  { %1704 = vmatpush1.bf16.msra.mxu0 %v6176_v40  ;;  %4916 = vmatpush3.bf16.msra.mxu1 %v6179_v45 }
 0x596   :  { %1705 = vmatprep.subr.bf16.mxu0 %v6182_v43  ;;  %4917 = vmatprep.subr.bf16.mxu1 %v5615_v0 }
 0x599   :  { %1706 = vmatpush1.bf16.msra.mxu0 %v6186_v46  ;;  %4918 = vmatpush3.bf16.msra.mxu1 %v6189_v47 }
 0x59a   :  { %1707 = vmatprep.subr.bf16.mxu0 %v6192_v48  ;;  %4919 = vmatprep.subr.bf16.mxu1 %v5615_v0 }
 0x59d   :  { %1708 = vmatpush1.bf16.msra.mxu0 %v6196_v49  ;;  %4920 = vmatpush3.bf16.msra.mxu1 %v6199_v51 }
 0x59e   :  { %1709 = vmatprep.subr.bf16.mxu0 %v6202_v52  ;;  %4921 = vmatprep.subr.bf16.mxu1 %v5615_v0 }
 0x5a1   :  { %1710 = vmatpush1.bf16.msra.mxu0 %v6206_v24  ;;  %4922 = vmatpush3.bf16.msra.mxu1 %v6209_v25 }
 0x5a2   :  { %1804 = vmatprep.subr.bf16.mxu0 %v6078_v14  ;;  %4927 = vmatprep.subr.bf16.mxu1 %v5615_v0 }
 0x644   :  { %v1620_v9 = vpop.f32.mrf.mxu0  ;;  %v1661_v28 = vpop.f32.mrf.mxu1 }
 0x645   :  { %v1621_v30 = vadd.f32 %v1620_v9, %v5987_v56  ;;  %v1662_v2 = vadd.f32 %v1661_v28, %v5995_v44 }
 0x646   :  { %v1622_v33 = vpop.f32.mrf.mxu0  ;;  %v4905_v34 = vpop.f32.mrf.mxu1 }
 0x647   :  { %v1667_v35 = vadd.f32 %v1621_v30, %v1584_v32  ;;  %v1623_v17 = vadd.f32 %v1622_v33, %v5991_v59 }
 0x648   :  { %v1624_v36 = vpop.f32.mrf.mxu0  ;;  %v1664_v37 = vpop.f32.mrf.mxu1 }
 0x649   :  { %v4373_v38 = vmul.f32 -1.442695, %v1667_v35  ;;  %v1677_v14 = vadd.f32 %v1675_v21, %v1623_v17  ;;  %v6310_v17 = vld [vmem:[#allocation9 + $0xac] ss:$12 sps:$4 sm:$0xff]   ;;  %v6316_v21 = vld [vmem:[#allocation9 + $0x94] ss:$12 sps:$4 sm:$0xff]  }
 0x64a   :  { %v1625_v18 = vpop.f32.mrf.mxu0  ;;  %v4906_v19 = vpop.f32.mrf.mxu1 }
 0x64b   :  { %5397 = vpow2.f32 %v4373_v38  ;;  %v4374_v22 = vmul.f32 -1.442695, %v1677_v14  ;;  %v6312_v18 = vld [vmem:[#allocation9 + $0xa8] ss:$12 sps:$4 sm:$0xff]   ;;  %v5198_v19 = vld [vmem:[#allocation9 + $0xb0] ss:$12 sps:$4 sm:$0xff]  }
 0x64c   :  { %v6319_v14 = vld [vmem:[#allocation9 + $0x90] ss:$12 sps:$4 sm:$0xff]  }
 0x64d   :  { %5399 = vpow2.f32 %v4374_v22  ;;  %v5202_v22 = vld [vmem:[#allocation9 + $0x98] ss:$12 sps:$4 sm:$0xff]  }
 0x658   :  { %v5398_v23 = vpop.eup %5397 }
 0x659   :  { %v1671_v58 = vadd.f32 1.0, %v5398_v23  ;;  %v6323_v23 = vld [vmem:[#allocation9 + $0x7c] ss:$12 sps:$4 sm:$0xff]  }
 0x65a   :  { %v5400_v61 = vpop.eup %5399 }
 0x65b   :  { %5401 = vrcp.f32 %v1671_v58  ;;  %v1681_v63 = vadd.f32 1.0, %v5400_v61  ;;  %v6326_v58 = vld [vmem:[#allocation9 + $0x78] ss:$12 sps:$4 sm:$0xff]   ;;  %v5206_v61 = vld [vmem:[#allocation9 + $0x80] ss:$12 sps:$4 sm:$0xff]  }
 0x65d   :  { %5403 = vrcp.f32 %v1681_v63  ;;  %v6330_v63 = vld [vmem:[#allocation9 + $0x60] ss:$12 sps:$4 sm:$0xff]  }
 0x668   :  { %v5402_v3 = vpop.eup %5401 }
 0x669   :  { %v1684_v4 = vmul.f32 %v5402_v3, %v1662_v2  ;;  %v6332_v2 = vld [vmem:[#allocation9 + $0x64] ss:$12 sps:$4 sm:$0xff]   ;;  %v5210_v3 = vld [vmem:[#allocation9 + $0x68] ss:$12 sps:$4 sm:$0xff]  }
 0x66a   :  { %v5404_v7 = vpop.eup %5403 }
 0x66b   :  { %v1687_v6 = vadd.f32 %v1685_v5, %v1684_v4  ;;  %v1689_v8 = vsub.f32 1.0, %v5404_v7  ;;  %v1691_v31 = vmul.f32 %v5404_v7, %v6218_v29  ;;  %v6335_v4 = vld [vmem:[#allocation9 + $0x4c] ss:$12 sps:$4 sm:$0xff]   ;;  %v6339_v5 = vld [vmem:[#allocation9 + $0x48] ss:$12 sps:$4 sm:$0xff]  }
 0x66c   :  { %v6343_v7 = vld [vmem:[#allocation9 + $0x34] ss:$12 sps:$4 sm:$0xff]  }
 0x66d   :  { %5405 = vtanh.f32 %v1687_v6  ;;  %v5214_v6 = vld [vmem:[#allocation9 + $0x50] ss:$12 sps:$4 sm:$0xff]  }
 0x67a   :  { %v5406_v10 = vpop.eup %5405 }
 0x67b   :  { %v1690_v26 = vmul.f32 %v5406_v10, %v1689_v8  ;;  %v6346_v8 = vld [vmem:[#allocation9 + $0x30] ss:$12 sps:$4 sm:$0xff]   ;;  %v5218_v10 = vld [vmem:[#allocation9 + $0x38] ss:$12 sps:$4 sm:$0xff]  }
 0x67d   :  { %v6261_v9 = vadd.f32 %v1691_v31, %v1690_v26  ;;  %v6350_v26 = vld [vmem:[#allocation9 + $0x1c] ss:$12 sps:$4 sm:$0xff]   ;;  %v6353_v31 = vld [vmem:[#allocation9 + $0x18] ss:$12 sps:$4 sm:$0xff]  }
 0x67f   :  { %v1694_v30 = vpack.c.bf16 %v6261_v9, %v6261_v9 }
 0x681   :  { %1728 = vmatmul.mubr.bf16.vlgmr.msra.gmra.mxu0 %v1694_v30  ;;  %4924 = vmatmul.mubr.bf16.vlgmr.msra.gmra.mxu1 %v1694_v30  ;;  %v6357_v30 = vld [vmem:[#allocation9 + $0x4] ss:$12 sps:$4 sm:$0xff]  }
 0x682   :  { %1805 = vmatpush1.bf16.msra.mxu0 %v6090_v50  ;;  %4928 = vmatpush3.bf16.msra.mxu1 %v6093_v53 }
 0x683   :  { %1806 = vmatprep.subr.bf16.mxu0 %v6096_v54  ;;  %4929 = vmatprep.subr.bf16.mxu1 %v5615_v0 }
 0x684   :  { %1836 = vmatprep.mubr.bf16.mxu0 %v5616_v1  ;;  %4943 = vmatprep.mubr.msk.bf16.mxu1 %vm5617_vm0, %v5615_v0 }
 0x686   :  { %1807 = vmatpush1.bf16.msra.mxu0 %v6103_v57  ;;  %4930 = vmatpush3.bf16.msra.mxu1 %v6106_v55  ;;  %v1693_v57 = vld [vmem:[#allocation2 + $0x24] sm:$0x3f] }
 0x687   :  { %1808 = vmatprep.subr.bf16.mxu0 %v6109_v60  ;;  %4931 = vmatprep.subr.bf16.mxu1 %v5615_v0  ;;  %v1794_v29 = vrot.slane %v1693_v57, 4 }
 0x68a   :  { %1809 = vmatpush1.bf16.msra.mxu0 %v6113_v62  ;;  %4932 = vmatpush3.bf16.msra.mxu1 %v6116_v15 }
 0x68b   :  { %1810 = vmatprep.subr.bf16.mxu0 %v6119_v16  ;;  %4933 = vmatprep.subr.bf16.mxu1 %v5615_v0 }
 0x68e   :  { %1811 = vmatpush1.bf16.msra.mxu0 %v6166_v11  ;;  %4934 = vmatpush3.bf16.msra.mxu1 %v6169_v13 }
 0x68f   :  { %1812 = vmatprep.subr.bf16.mxu0 %v6172_v12  ;;  %4935 = vmatprep.subr.bf16.mxu1 %v5615_v0 }
 0x692   :  { %1813 = vmatpush1.bf16.msra.mxu0 %v6176_v40  ;;  %4936 = vmatpush3.bf16.msra.mxu1 %v6179_v45  ;;  %v1784_v45 = vrot.slane %v1693_v57, 2 }
 0x693   :  { %1814 = vmatprep.subr.bf16.mxu0 %v6182_v43  ;;  %4937 = vmatprep.subr.bf16.mxu1 %v5615_v0 }
 0x696   :  { %1815 = vmatpush1.bf16.msra.mxu0 %v6186_v46  ;;  %4938 = vmatpush3.bf16.msra.mxu1 %v6189_v47 }
 0x697   :  { %1816 = vmatprep.subr.bf16.mxu0 %v6192_v48  ;;  %4939 = vmatprep.subr.bf16.mxu1 %v5615_v0 }
 0x69a   :  { %1817 = vmatpush1.bf16.msra.mxu0 %v6196_v49  ;;  %4940 = vmatpush3.bf16.msra.mxu1 %v6199_v51 }
 0x69b   :  { %1818 = vmatprep.subr.bf16.mxu0 %v6202_v52  ;;  %4941 = vmatprep.subr.bf16.mxu1 %v5615_v0 }
 0x69e   :  { %1819 = vmatpush1.bf16.msra.mxu0 %v6206_v24  ;;  %4942 = vmatpush3.bf16.msra.mxu1 %v6209_v25 }
 0x69f   :  { %4947 = vmatprep.subr.bf16.mxu1 %v5615_v0  ;;  %2090 = vmatprep.subr.bf16.mxu0 %v6310_v17 }
 0x741   :  { %v1729_v50 = vpop.f32.mrf.mxu0  ;;  %v1770_v53 = vpop.f32.mrf.mxu1 }
 0x742   :  { %v1730_v54 = vadd.f32 %v1729_v50, %v5987_v56  ;;  %v1771_v52 = vadd.f32 %v1770_v53, %v5995_v44  ;;  %v6360_v50 = vld [vmem:[#allocation9] ss:$12 sps:$4 sm:$0xff]   ;;  %v5226_v53 = vld [vmem:[#allocation9 + $0x8] ss:$12 sps:$4 sm:$0xff]  }
 0x743   :  { %v1731_v55 = vpop.f32.mrf.mxu0  ;;  %v4925_v60 = vpop.f32.mrf.mxu1 }
 0x744   :  { %v1776_v62 = vadd.f32 %v1730_v54, %v1693_v57  ;;  %v1732_v13 = vadd.f32 %v1731_v55, %v5991_v59  ;;  %v1802_v60 = vld [vmem:[#allocation2 + $0x2a] sm:$0x3f] }
 0x745   :  { %v1733_v15 = vpop.f32.mrf.mxu0  ;;  %v1773_v16 = vpop.f32.mrf.mxu1 }
 0x746   :  { %v4375_v11 = vmul.f32 -1.442695, %v1776_v62  ;;  %v1786_v43 = vadd.f32 %v1784_v45, %v1732_v13 }
 0x747   :  { %v1734_v12 = vpop.f32.mrf.mxu0  ;;  %v4926_v40 = vpop.f32.mrf.mxu1 }
 0x748   :  { %5407 = vpow2.f32 %v4375_v11  ;;  %v4376_v46 = vmul.f32 -1.442695, %v1786_v43 }
 0x74a   :  { %5409 = vpow2.f32 %v4376_v46  ;;  %v1893_v46 = vrot.slane %v1802_v60, 2 }
 0x755   :  { %v5408_v47 = vpop.eup %5407 }
 0x756   :  { %v1780_v48 = vadd.f32 1.0, %v5408_v47 }
 0x757   :  { %v5410_v49 = vpop.eup %5409 }
 0x758   :  { %5411 = vrcp.f32 %v1780_v48  ;;  %v1790_v51 = vadd.f32 1.0, %v5410_v49 }
 0x75a   :  { %5413 = vrcp.f32 %v1790_v51 }
 0x765   :  { %v5412_v24 = vpop.eup %5411 }
 0x766   :  { %v1793_v25 = vmul.f32 %v5412_v24, %v1771_v52 }
 0x767   :  { %v5414_v32 = vpop.eup %5413 }
 0x768   :  { %v1796_v28 = vadd.f32 %v1794_v29, %v1793_v25  ;;  %v1798_v33 = vsub.f32 1.0, %v5414_v32  ;;  %v1800_v36 = vmul.f32 %v5414_v32, %v6261_v9  ;;  %v5222_v9 = vld [vmem:[#allocation9 + $0x20] ss:$12 sps:$4 sm:$0xff]  }
 0x76a   :  { %5415 = vtanh.f32 %v1796_v28  ;;  %v1903_v28 = vrot.slane %v1802_v60, 4 }
 0x777   :  { %v5416_v34 = vpop.eup %5415 }
 0x778   :  { %v1799_v35 = vmul.f32 %v5416_v34, %v1798_v33 }
 0x77a   :  { %v6303_v37 = vadd.f32 %v1800_v36, %v1799_v35 }
 0x77c   :  { %v1803_v38 = vpack.c.bf16 %v6303_v37, %v6303_v37 }
 0x77e   :  { %1837 = vmatmul.mubr.bf16.vlgmr.msra.gmra.mxu0 %v1803_v38  ;;  %4944 = vmatmul.mubr.bf16.vlgmr.msra.gmra.mxu1 %v1803_v38 }
 0x77f   :  { %2122 = vmatprep.mubr.bf16.mxu0 %v5616_v1  ;;  %4963 = vmatprep.mubr.msk.bf16.mxu1 %vm5617_vm0, %v5615_v0 }
 0x780   :  { %2091 = vmatpush1.bf16.msra.mxu0 %v6312_v18  ;;  %4948 = vmatpush3.bf16.msra.mxu1 %v5198_v19 }
 0x781   :  { %4949 = vmatprep.subr.bf16.mxu1 %v5615_v0  ;;  %2092 = vmatprep.subr.bf16.mxu0 %v6316_v21 }
 0x784   :  { %2093 = vmatpush1.bf16.msra.mxu0 %v6319_v14  ;;  %4950 = vmatpush3.bf16.msra.mxu1 %v5202_v22  ;;  %v5229_v22 = vld [vmem:[#allocation9 + $0x80] ss:$12 sps:$4 sm:$0xff]  }
 0x785   :  { %4951 = vmatprep.subr.bf16.mxu1 %v5615_v0  ;;  %2094 = vmatprep.subr.bf16.mxu0 %v6323_v23 }
 0x788   :  { %2095 = vmatpush1.bf16.msra.mxu0 %v6326_v58  ;;  %4952 = vmatpush3.bf16.msra.mxu1 %v5206_v61  ;;  %v5230_v61 = vld [vmem:[#allocation9 + $0x68] ss:$12 sps:$4 sm:$0xff]  }
 0x789   :  { %4953 = vmatprep.subr.bf16.mxu1 %v5615_v0  ;;  %2096 = vmatprep.subr.bf16.mxu0 %v6332_v2 }
 0x78c   :  { %2097 = vmatpush1.bf16.msra.mxu0 %v6330_v63  ;;  %4954 = vmatpush3.bf16.msra.mxu1 %v5210_v3  ;;  %v5231_v3 = vld [vmem:[#allocation9 + $0x50] ss:$12 sps:$4 sm:$0xff]  }
 0x78d   :  { %2098 = vmatprep.subr.bf16.mxu0 %v6335_v4  ;;  %4955 = vmatprep.subr.bf16.mxu1 %v5615_v0 }
 0x790   :  { %2099 = vmatpush1.bf16.msra.mxu0 %v6339_v5  ;;  %4956 = vmatpush3.bf16.msra.mxu1 %v5214_v6  ;;  %v5232_v6 = vld [vmem:[#allocation9 + $0x38] ss:$12 sps:$4 sm:$0xff]  }
 0x791   :  { %2100 = vmatprep.subr.bf16.mxu0 %v6343_v7  ;;  %4957 = vmatprep.subr.bf16.mxu1 %v5615_v0 }
 0x794   :  { %2101 = vmatpush1.bf16.msra.mxu0 %v6346_v8  ;;  %4958 = vmatpush3.bf16.msra.mxu1 %v5218_v10  ;;  %v5233_v10 = vld [vmem:[#allocation9 + $0x20] ss:$12 sps:$4 sm:$0xff]  }
 0x795   :  { %2102 = vmatprep.subr.bf16.mxu0 %v6350_v26  ;;  %4959 = vmatprep.subr.bf16.mxu1 %v5615_v0 }
 0x798   :  { %2103 = vmatpush1.bf16.msra.mxu0 %v6353_v31  ;;  %4960 = vmatpush3.bf16.msra.mxu1 %v5222_v9  ;;  %v5234_v9 = vld [vmem:[#allocation9 + $0x8] ss:$12 sps:$4 sm:$0xff]  }
 0x799   :  { %2104 = vmatprep.subr.bf16.mxu0 %v6357_v30  ;;  %4961 = vmatprep.subr.bf16.mxu1 %v5615_v0 }
 0x79c   :  { %2105 = vmatpush1.bf16.msra.mxu0 %v6360_v50  ;;  %4962 = vmatpush3.bf16.msra.mxu1 %v5226_v53  ;;  %v1945_v53 = vld [vmem:[%s6690_s8] sm:$0x7] }
 0x79d   :  { %2377 = vmatprep.subr.bf16.mxu0 %v6310_v17  ;;  %4967 = vmatprep.subr.bf16.mxu1 %v5615_v0 }
 0x83e   :  { %v1838_v54 = vpop.f32.mrf.mxu0  ;;  %v1879_v57 = vpop.f32.mrf.mxu1 }
 0x83f   :  { %v1839_v55 = vadd.f32 %v1838_v54, %v5987_v56  ;;  %v1880_v24 = vadd.f32 %v1879_v57, %v5995_v44  ;;  %v5227_v44 = vld [vmem:[#allocation9 + $0xb0] ss:$12 sps:$4 sm:$0xff]   ;;  %v1950_v54 = vrot.slane %v1945_v53, %v5947_v39 }
 0x840   :  { %v1840_v62 = vpop.f32.mrf.mxu0  ;;  %v4945_v15 = vpop.f32.mrf.mxu1 }
 0x841   :  { %v1885_v16 = vadd.f32 %v1839_v55, %v1802_v60  ;;  %v1841_v40 = vadd.f32 %v1840_v62, %v5991_v59  ;;  %v1954_v62 = vrot.slane %v1945_v53, %v5956_v42  ;;  %v1911_v15 = vld [vmem:[#allocation3] sm:$0x3f] }
 0x842   :  { %v1842_v11 = vpop.f32.mrf.mxu0  ;;  %v1882_v13 = vpop.f32.mrf.mxu1 }
 0x843   :  { %v4377_v12 = vmul.f32 -1.442695, %v1885_v16  ;;  %v1895_v47 = vadd.f32 %v1893_v46, %v1841_v40 }
 0x844   :  { %v1843_v45 = vpop.f32.mrf.mxu0  ;;  %v4946_v43 = vpop.f32.mrf.mxu1 }
 0x845   :  { %5417 = vpow2.f32 %v4377_v12  ;;  %v4378_v48 = vmul.f32 -1.442695, %v1895_v47 }
 0x847   :  { %5419 = vpow2.f32 %v4378_v48  ;;  %v2179_v48 = vrot.slane %v1911_v15, 2 }
 0x852   :  { %v5418_v49 = vpop.eup %5417 }
 0x853   :  { %v1889_v51 = vadd.f32 1.0, %v5418_v49 }
 0x854   :  { %v5420_v56 = vpop.eup %5419 }
 0x855   :  { %5421 = vrcp.f32 %v1889_v51  ;;  %v1899_v52 = vadd.f32 1.0, %v5420_v56 }
 0x857   :  { %5423 = vrcp.f32 %v1899_v52 }
 0x862   :  { %v5422_v25 = vpop.eup %5421 }
 0x863   :  { %v1902_v29 = vmul.f32 %v5422_v25, %v1880_v24  ;;  %v1958_v25 = vrot.slane %v1945_v53, %v5953_v41  ;;  %v5240_v53 = vld [vmem:[#allocation9 + $0x38] ss:$12 sps:$4 sm:$0xff]  }
 0x864   :  { %v5424_v59 = vpop.eup %5423 }
 0x865   :  { %v1905_v32 = vadd.f32 %v1903_v28, %v1902_v29  ;;  %v1907_v33 = vsub.f32 1.0, %v5424_v59  ;;  %v1909_v36 = vmul.f32 %v5424_v59, %v6303_v37  ;;  %v5228_v37 = vld [vmem:[#allocation9 + $0x98] ss:$12 sps:$4 sm:$0xff]  }
 0x867   :  { %5425 = vtanh.f32 %v1905_v32 }
 0x874   :  { %v5426_v34 = vpop.eup %5425 }
 0x875   :  { %v1908_v35 = vmul.f32 %v5426_v34, %v1907_v33  ;;  %v2189_v33 = vrot.slane %v1911_v15, 4 }
 0x877   :  { %v6371_v38 = vadd.f32 %v1909_v36, %v1908_v35 }
 0x879   :  { %v1912_v19 = vpack.c.bf16 %v6371_v38, %v6371_v38 }
 0x87b   :  { %2123 = vmatmul.mubr.bf16.vlgmr.msra.gmra.mxu0 %v1912_v19  ;;  %4964 = vmatmul.mubr.bf16.vlgmr.msra.gmra.mxu1 %v1912_v19 }
 0x87c   :  { %2378 = vmatpush1.bf16.msra.mxu0 %v6312_v18  ;;  %2409 = vmatprep.mubr.bf16.mxu0 %v5616_v1 }
 0x87d   :  { %2379 = vmatprep.subr.bf16.mxu0 %v6316_v21  ;;  %4983 = vmatprep.mubr.msk.bf16.mxu1 %vm5617_vm0, %v5615_v0 }
 0x87e   :  { %4968 = vmatpush3.bf16.msra.mxu1 %v5227_v44 }
 0x87f   :  { %4969 = vmatprep.subr.bf16.mxu1 %v5615_v0 }
 0x880   :  { %2380 = vmatpush1.bf16.msra.mxu0 %v6319_v14 }
 0x881   :  { %2381 = vmatprep.subr.bf16.mxu0 %v6323_v23 }
 0x882   :  { %4970 = vmatpush3.bf16.msra.mxu1 %v5228_v37 }
 0x883   :  { %4971 = vmatprep.subr.bf16.mxu1 %v5615_v0 }
 0x884   :  { %2382 = vmatpush1.bf16.msra.mxu0 %v6326_v58 }
 0x885   :  { %2383 = vmatprep.subr.bf16.mxu0 %v6332_v2 }
 0x886   :  { %4972 = vmatpush3.bf16.msra.mxu1 %v5229_v22 }
 0x887   :  { %4973 = vmatprep.subr.bf16.mxu1 %v5615_v0 }
 0x888   :  { %2384 = vmatpush1.bf16.msra.mxu0 %v6330_v63 }
 0x889   :  { %2385 = vmatprep.subr.bf16.mxu0 %v6335_v4 }
 0x88a   :  { %4974 = vmatpush3.bf16.msra.mxu1 %v5230_v61 }
 0x88b   :  { %4975 = vmatprep.subr.bf16.mxu1 %v5615_v0 }
 0x88c   :  { %2386 = vmatpush1.bf16.msra.mxu0 %v6339_v5 }
 0x88d   :  { %2387 = vmatprep.subr.bf16.mxu0 %v6343_v7 }
 0x88e   :  { %4976 = vmatpush3.bf16.msra.mxu1 %v5231_v3  ;;  %v5236_v3 = vld [vmem:[#allocation9 + $0x98] ss:$12 sps:$4 sm:$0xff]  }
 0x88f   :  { %4977 = vmatprep.subr.bf16.mxu1 %v5615_v0 }
 0x890   :  { %2388 = vmatpush1.bf16.msra.mxu0 %v6346_v8 }
 0x891   :  { %2389 = vmatprep.subr.bf16.mxu0 %v6350_v26 }
 0x892   :  { %4978 = vmatpush3.bf16.msra.mxu1 %v5232_v6  ;;  %v5237_v6 = vld [vmem:[#allocation9 + $0x80] ss:$12 sps:$4 sm:$0xff]  }
 0x893   :  { %4979 = vmatprep.subr.bf16.mxu1 %v5615_v0 }
 0x894   :  { %2390 = vmatpush1.bf16.msra.mxu0 %v6353_v31 }
 0x895   :  { %2391 = vmatprep.subr.bf16.mxu0 %v6357_v30 }
 0x896   :  { %4980 = vmatpush3.bf16.msra.mxu1 %v5233_v10  ;;  %v5238_v10 = vld [vmem:[#allocation9 + $0x68] ss:$12 sps:$4 sm:$0xff]  }
 0x897   :  { %4981 = vmatprep.subr.bf16.mxu1 %v5615_v0 }
 0x898   :  { %2392 = vmatpush1.bf16.msra.mxu0 %v6360_v50 }
 0x899   :  { %2665 = vmatprep.subr.bf16.mxu0 %v6310_v17 }
 0x89a   :  { %4982 = vmatpush3.bf16.msra.mxu1 %v5234_v9  ;;  %v5239_v9 = vld [vmem:[#allocation9 + $0x50] ss:$12 sps:$4 sm:$0xff]  }
 0x89b   :  { %4987 = vmatprep.subr.bf16.mxu1 %v5615_v0 }
 0x93b   :  { %v2124_v57 = vpop.f32.mrf.mxu0  ;;  %v2165_v55 = vpop.f32.mrf.mxu1 }
 0x93c   :  { %v2125_v60 = vadd.f32 %v2124_v57, %v1950_v54  ;;  %v2166_v28 = vadd.f32 %v2165_v55, %v1958_v25  ;;  %v5242_v54 = vld [vmem:[#allocation9 + $0x8] ss:$12 sps:$4 sm:$0xff]   ;;  %v2232_v57 = vld [vmem:[%s6690_s8] sm:$0x7] }
 0x93d   :  { %v2126_v16 = vpop.f32.mrf.mxu0  ;;  %v4965_v11 = vpop.f32.mrf.mxu1  ;;  %v2237_v55 = vrot.slane %v2232_v57, %v5947_v39 }
 0x93e   :  { %v2171_v13 = vadd.f32 %v2125_v60, %v1911_v15  ;;  %v2127_v43 = vadd.f32 %v2126_v16, %v1954_v62  ;;  %v2241_v16 = vrot.slane %v2232_v57, %v5956_v42  ;;  %v2198_v11 = vld [vmem:[#allocation3 + $0x6] sm:$0x3f] }
 0x93f   :  { %v2128_v12 = vpop.f32.mrf.mxu0  ;;  %v2168_v40 = vpop.f32.mrf.mxu1 }
 0x940   :  { %v4403_v45 = vmul.f32 -1.442695, %v2171_v13  ;;  %v2181_v49 = vadd.f32 %v2179_v48, %v2127_v43 }
 0x941   :  { %v2129_v46 = vpop.f32.mrf.mxu0  ;;  %v4966_v47 = vpop.f32.mrf.mxu1 }
 0x942   :  { %5427 = vpow2.f32 %v4403_v45  ;;  %v4404_v51 = vmul.f32 -1.442695, %v2181_v49 }
 0x944   :  { %5429 = vpow2.f32 %v4404_v51  ;;  %v2466_v51 = vrot.slane %v2198_v11, 2 }
 0x94f   :  { %v5428_v56 = vpop.eup %5427 }
 0x950   :  { %v2175_v52 = vadd.f32 1.0, %v5428_v56 }
 0x951   :  { %v5430_v24 = vpop.eup %5429 }
 0x952   :  { %5431 = vrcp.f32 %v2175_v52  ;;  %v2185_v29 = vadd.f32 1.0, %v5430_v24 }
 0x954   :  { %5433 = vrcp.f32 %v2185_v29 }
 0x95f   :  { %v5432_v32 = vpop.eup %5431 }
 0x960   :  { %v2188_v59 = vmul.f32 %v5432_v32, %v2166_v28  ;;  %v2245_v28 = vrot.slane %v2232_v57, %v5953_v41 }
 0x961   :  { %v5434_v35 = vpop.eup %5433 }
 0x962   :  { %v2191_v34 = vadd.f32 %v2189_v33, %v2188_v59  ;;  %v2193_v36 = vsub.f32 1.0, %v5434_v35  ;;  %v2195_v37 = vmul.f32 %v5434_v35, %v6371_v38  ;;  %v5235_v38 = vld [vmem:[#allocation9 + $0xb0] ss:$12 sps:$4 sm:$0xff]   ;;  %v2476_v35 = vrot.slane %v2198_v11, 4 }
 0x964   :  { %5435 = vtanh.f32 %v2191_v34 }
 0x971   :  { %v5436_v19 = vpop.eup %5435 }
 0x972   :  { %v2194_v44 = vmul.f32 %v5436_v19, %v2193_v36 }
 0x974   :  { %v6409_v22 = vadd.f32 %v2195_v37, %v2194_v44 }
 0x976   :  { %2197 = vst [vmem:[#allocation4] sm:$0x3] %v6409_v22  ;;  %v2199_v61 = vpack.c.bf16 %v6409_v22, %v6409_v22 }
 0x978   :  { %2410 = vmatmul.mubr.bf16.vlgmr.msra.gmra.mxu0 %v2199_v61  ;;  %4984 = vmatmul.mubr.bf16.vlgmr.msra.gmra.mxu1 %v2199_v61 }
 0x979   :  { %2666 = vmatpush1.bf16.msra.mxu0 %v6312_v18  ;;  %2697 = vmatprep.mubr.bf16.mxu0 %v5616_v1 }
 0x97a   :  { %2667 = vmatprep.subr.bf16.mxu0 %v6316_v21  ;;  %5003 = vmatprep.mubr.msk.bf16.mxu1 %vm5617_vm0, %v5615_v0 }
 0x97b   :  { %4988 = vmatpush3.bf16.msra.mxu1 %v5235_v38 }
 0x97c   :  { %4989 = vmatprep.subr.bf16.mxu1 %v5615_v0 }
 0x97d   :  { %2668 = vmatpush1.bf16.msra.mxu0 %v6319_v14 }
 0x97e   :  { %2669 = vmatprep.subr.bf16.mxu0 %v6323_v23 }
 0x97f   :  { %4990 = vmatpush3.bf16.msra.mxu1 %v5236_v3 }
 0x980   :  { %4991 = vmatprep.subr.bf16.mxu1 %v5615_v0 }
 0x981   :  { %2670 = vmatpush1.bf16.msra.mxu0 %v6326_v58 }
 0x982   :  { %2671 = vmatprep.subr.bf16.mxu0 %v6332_v2 }
 0x983   :  { %4992 = vmatpush3.bf16.msra.mxu1 %v5237_v6 }
 0x984   :  { %4993 = vmatprep.subr.bf16.mxu1 %v5615_v0 }
 0x985   :  { %2672 = vmatpush1.bf16.msra.mxu0 %v6330_v63 }
 0x986   :  { %2673 = vmatprep.subr.bf16.mxu0 %v6335_v4 }
 0x987   :  { %4994 = vmatpush3.bf16.msra.mxu1 %v5238_v10 }
 0x988   :  { %4995 = vmatprep.subr.bf16.mxu1 %v5615_v0 }
 0x989   :  { %2674 = vmatpush1.bf16.msra.mxu0 %v6339_v5 }
 0x98a   :  { %2675 = vmatprep.subr.bf16.mxu0 %v6343_v7 }
 0x98b   :  { %4996 = vmatpush3.bf16.msra.mxu1 %v5239_v9 }
 0x98c   :  { %4997 = vmatprep.subr.bf16.mxu1 %v5615_v0 }
 0x98d   :  { %2676 = vmatpush1.bf16.msra.mxu0 %v6346_v8 }
 0x98e   :  { %2677 = vmatprep.subr.bf16.mxu0 %v6350_v26 }
 0x98f   :  { %4998 = vmatpush3.bf16.msra.mxu1 %v5240_v53 }
 0x990   :  { %4999 = vmatprep.subr.bf16.mxu1 %v5615_v0 }
 0x991   :  { %2678 = vmatpush1.bf16.msra.mxu0 %v6353_v31 }
 0x992   :  { %2679 = vmatprep.subr.bf16.mxu0 %v6357_v30 }
 0x995   :  { %2680 = vmatpush1.bf16.msra.mxu0 %v6360_v50 }
 0x996   :  { %2953 = vmatprep.subr.bf16.mxu0 %v6310_v17  ;;  %v5241_v17 = vld [vmem:[#allocation9 + $0x20] ss:$12 sps:$4 sm:$0xff]  }
 0x997   :  { %5000 = vmatpush3.bf16.msra.mxu1 %v5241_v17 }
 0x998   :  { %5001 = vmatprep.subr.bf16.mxu1 %v5615_v0 }
 0x99b   :  { %5002 = vmatpush3.bf16.msra.mxu1 %v5242_v54 }
 0x99c   :  { %5007 = vmatprep.subr.bf16.mxu1 %v5615_v0 }
 0xa38   :  { %v2411_v60 = vpop.f32.mrf.mxu0  ;;  %v2452_v62 = vpop.f32.mrf.mxu1 }
 0xa39   :  { %v2412_v15 = vadd.f32 %v2411_v60, %v2237_v55  ;;  %v2453_v59 = vadd.f32 %v2452_v62, %v2245_v28 }
 0xa3a   :  { %v2413_v13 = vpop.f32.mrf.mxu0  ;;  %v4985_v12 = vpop.f32.mrf.mxu1 }
 0xa3b   :  { %v2458_v40 = vadd.f32 %v2412_v15, %v2198_v11  ;;  %v2414_v47 = vadd.f32 %v2413_v13, %v2241_v16 }
 0xa3c   :  { %v2415_v45 = vpop.f32.mrf.mxu0  ;;  %v2455_v43 = vpop.f32.mrf.mxu1 }
 0xa3d   :  { %v4429_v46 = vmul.f32 -1.442695, %v2458_v40  ;;  %v2468_v56 = vadd.f32 %v2466_v51, %v2414_v47 }
 0xa3e   :  { %v2416_v48 = vpop.f32.mrf.mxu0  ;;  %v4986_v49 = vpop.f32.mrf.mxu1 }
 0xa3f   :  { %5437 = vpow2.f32 %v4429_v46  ;;  %v4430_v52 = vmul.f32 -1.442695, %v2468_v56 }
 0xa41   :  { %5439 = vpow2.f32 %v4430_v52 }
 0xa4c   :  { %v5438_v24 = vpop.eup %5437 }
 0xa4d   :  { %v2462_v25 = vadd.f32 1.0, %v5438_v24 }
 0xa4e   :  { %v5440_v29 = vpop.eup %5439 }
 0xa4f   :  { %5441 = vrcp.f32 %v2462_v25  ;;  %v2472_v32 = vadd.f32 1.0, %v5440_v29 }
 0xa51   :  { %5443 = vrcp.f32 %v2472_v32  ;;  %v6494_v32 = vld [vmem:[#allocation9 + $0xac] ss:$12 sps:$4 sm:$0xff]  }
 0xa5c   :  { %v5442_v33 = vpop.eup %5441 }
 0xa5d   :  { %v2475_v34 = vmul.f32 %v5442_v33, %v2453_v59  ;;  %v6496_v59 = vld [vmem:[#allocation9 + $0xa8] ss:$12 sps:$4 sm:$0xff]   ;;  %v5254_v33 = vld [vmem:[#allocation9 + $0xb0] ss:$12 sps:$4 sm:$0xff]  }
 0xa5e   :  { %v5444_v19 = vpop.eup %5443 }
 0xa5f   :  { %v2478_v36 = vadd.f32 %v2476_v35, %v2475_v34  ;;  %v2480_v44 = vsub.f32 1.0, %v5444_v19  ;;  %v2482_v38 = vmul.f32 %v5444_v19, %v6409_v22  ;;  %v6500_v34 = vld [vmem:[#allocation9 + $0x94] ss:$12 sps:$4 sm:$0xff]   ;;  %v6503_v35 = vld [vmem:[#allocation9 + $0x90] ss:$12 sps:$4 sm:$0xff]  }
 0xa60   :  { %v6507_v19 = vld [vmem:[#allocation9 + $0x7c] ss:$12 sps:$4 sm:$0xff]  }
 0xa61   :  { %5445 = vtanh.f32 %v2478_v36  ;;  %v5258_v36 = vld [vmem:[#allocation9 + $0x98] ss:$12 sps:$4 sm:$0xff]  }
 0xa6e   :  { %v5446_v37 = vpop.eup %5445 }
 0xa6f   :  { %v2481_v61 = vmul.f32 %v5446_v37, %v2480_v44  ;;  %v6510_v44 = vld [vmem:[#allocation9 + $0x78] ss:$12 sps:$4 sm:$0xff]   ;;  %v5262_v37 = vld [vmem:[#allocation9 + $0x80] ss:$12 sps:$4 sm:$0xff]  }
 0xa71   :  { %v6448_v3 = vadd.f32 %v2482_v38, %v2481_v61  ;;  %v6514_v61 = vld [vmem:[#allocation9 + $0x60] ss:$12 sps:$4 sm:$0xff]   ;;  %v6516_v38 = vld [vmem:[#allocation9 + $0x64] ss:$12 sps:$4 sm:$0xff]  }
 0xa73   :  { %2485 = vst [vmem:[#allocation4 + $0x2] sm:$0x3] %v6448_v3  ;;  %v2487_v6 = vpack.c.bf16 %v6448_v3, %v6448_v3 }
 0xa75   :  { %2698 = vmatmul.mubr.bf16.vlgmr.msra.gmra.mxu0 %v2487_v6  ;;  %5004 = vmatmul.mubr.bf16.vlgmr.msra.gmra.mxu1 %v2487_v6  ;;  %v6519_v6 = vld [vmem:[#allocation9 + $0x4c] ss:$12 sps:$4 sm:$0xff]  }
 0xa76   :  { %2954 = vmatpush1.bf16.msra.mxu0 %v6312_v18  ;;  %2985 = vmatprep.mubr.bf16.mxu0 %v5616_v1  ;;  %v5243_v18 = vld [vmem:[#allocation9 + $0xb0] ss:$12 sps:$4 sm:$0xff]  }
 0xa77   :  { %2955 = vmatprep.subr.bf16.mxu0 %v6316_v21  ;;  %5023 = vmatprep.mubr.msk.bf16.mxu1 %vm5617_vm0, %v5615_v0  ;;  %v5244_v21 = vld [vmem:[#allocation9 + $0x98] ss:$12 sps:$4 sm:$0xff]  }
 0xa78   :  { %5008 = vmatpush3.bf16.msra.mxu1 %v5243_v18  ;;  %v6523_v18 = vld [vmem:[#allocation9 + $0x48] ss:$12 sps:$4 sm:$0xff]  }
 0xa79   :  { %5009 = vmatprep.subr.bf16.mxu1 %v5615_v0 }
 0xa7a   :  { %2956 = vmatpush1.bf16.msra.mxu0 %v6319_v14  ;;  %v5245_v14 = vld [vmem:[#allocation9 + $0x80] ss:$12 sps:$4 sm:$0xff]  }
 0xa7b   :  { %2957 = vmatprep.subr.bf16.mxu0 %v6323_v23  ;;  %v5246_v23 = vld [vmem:[#allocation9 + $0x68] ss:$12 sps:$4 sm:$0xff]  }
 0xa7c   :  { %5010 = vmatpush3.bf16.msra.mxu1 %v5244_v21  ;;  %v5270_v21 = vld [vmem:[#allocation9 + $0x50] ss:$12 sps:$4 sm:$0xff]  }
 0xa7d   :  { %5011 = vmatprep.subr.bf16.mxu1 %v5615_v0 }
 0xa7e   :  { %2958 = vmatpush1.bf16.msra.mxu0 %v6326_v58  ;;  %v5247_v58 = vld [vmem:[#allocation9 + $0x50] ss:$12 sps:$4 sm:$0xff]  }
 0xa7f   :  { %2959 = vmatprep.subr.bf16.mxu0 %v6332_v2  ;;  %v5249_v2 = vld [vmem:[#allocation9 + $0x20] ss:$12 sps:$4 sm:$0xff]  }
 0xa80   :  { %5012 = vmatpush3.bf16.msra.mxu1 %v5245_v14  ;;  %v6527_v14 = vld [vmem:[#allocation9 + $0x34] ss:$12 sps:$4 sm:$0xff]  }
 0xa81   :  { %5013 = vmatprep.subr.bf16.mxu1 %v5615_v0 }
 0xa82   :  { %2960 = vmatpush1.bf16.msra.mxu0 %v6330_v63  ;;  %v5248_v63 = vld [vmem:[#allocation9 + $0x38] ss:$12 sps:$4 sm:$0xff]  }
 0xa83   :  { %2961 = vmatprep.subr.bf16.mxu0 %v6335_v4  ;;  %v5250_v4 = vld [vmem:[#allocation9 + $0x8] ss:$12 sps:$4 sm:$0xff]  }
 0xa84   :  { %5014 = vmatpush3.bf16.msra.mxu1 %v5246_v23  ;;  %v6530_v23 = vld [vmem:[#allocation9 + $0x30] ss:$12 sps:$4 sm:$0xff]  }
 0xa85   :  { %5015 = vmatprep.subr.bf16.mxu1 %v5615_v0 }
 0xa86   :  { %2962 = vmatpush1.bf16.msra.mxu0 %v6339_v5  ;;  %v2520_v5 = vld [vmem:[%s6690_s8] sm:$0x7] }
 0xa87   :  { %2963 = vmatprep.subr.bf16.mxu0 %v6343_v7  ;;  %v2525_v7 = vrot.slane %v2520_v5, %v5947_v39  ;;  %v2533_v40 = vrot.slane %v2520_v5, %v5953_v41 }
 0xa88   :  { %5016 = vmatpush3.bf16.msra.mxu1 %v5247_v58  ;;  %v5274_v58 = vld [vmem:[#allocation9 + $0x38] ss:$12 sps:$4 sm:$0xff]  }
 0xa89   :  { %5017 = vmatprep.subr.bf16.mxu1 %v5615_v0 }
 0xa8a   :  { %2964 = vmatpush1.bf16.msra.mxu0 %v6346_v8 }
 0xa8b   :  { %2965 = vmatprep.subr.bf16.mxu0 %v6350_v26 }
 0xa8c   :  { %5018 = vmatpush3.bf16.msra.mxu1 %v5248_v63  ;;  %v6534_v63 = vld [vmem:[#allocation9 + $0x1c] ss:$12 sps:$4 sm:$0xff]  }
 0xa8d   :  { %5019 = vmatprep.subr.bf16.mxu1 %v5615_v0 }
 0xa8e   :  { %2966 = vmatpush1.bf16.msra.mxu0 %v6353_v31 }
 0xa8f   :  { %2967 = vmatprep.subr.bf16.mxu0 %v6357_v30  ;;  %v2529_v30 = vrot.slane %v2520_v5, %v5956_v42  ;;  %v6541_v5 = vld [vmem:[#allocation9 + $0x4] ss:$12 sps:$4 sm:$0xff]  }
 0xa90   :  { %5020 = vmatpush3.bf16.msra.mxu1 %v5249_v2  ;;  %v6537_v2 = vld [vmem:[#allocation9 + $0x18] ss:$12 sps:$4 sm:$0xff]  }
 0xa91   :  { %5021 = vmatprep.subr.bf16.mxu1 %v5615_v0 }
 0xa92   :  { %2968 = vmatpush1.bf16.msra.mxu0 %v6360_v50  ;;  %v2486_v50 = vld [vmem:[#allocation3 + $0xc] sm:$0x3f] }
 0xa93   :  { %v2754_v62 = vrot.slane %v2486_v50, 2  ;;  %v2764_v48 = vrot.slane %v2486_v50, 4  ;;  %3241 = vmatprep.subr.bf16.mxu0 %v6494_v32 }
 0xa94   :  { %5022 = vmatpush3.bf16.msra.mxu1 %v5250_v4  ;;  %v5278_v4 = vld [vmem:[#allocation9 + $0x20] ss:$12 sps:$4 sm:$0xff]  }
 0xa95   :  { %5027 = vmatprep.subr.bf16.mxu1 %v5615_v0 }
 0xb35   :  { %v2699_v8 = vpop.f32.mrf.mxu0  ;;  %v2740_v26 = vpop.f32.mrf.mxu1 }
 0xb36   :  { %v2700_v31 = vadd.f32 %v2699_v8, %v2525_v7  ;;  %v2741_v43 = vadd.f32 %v2740_v26, %v2533_v40  ;;  %v6544_v7 = vld [vmem:[#allocation9] ss:$12 sps:$4 sm:$0xff]   ;;  %v5282_v8 = vld [vmem:[#allocation9 + $0x8] ss:$12 sps:$4 sm:$0xff]   ;;  %v2808_v26 = vld [vmem:[%s6690_s8] sm:$0x7] }
 0xb37   :  { %v2701_v22 = vpop.f32.mrf.mxu0  ;;  %v5005_v10 = vpop.f32.mrf.mxu1 }
 0xb38   :  { %v2746_v9 = vadd.f32 %v2700_v31, %v2486_v50  ;;  %v2702_v57 = vadd.f32 %v2701_v22, %v2529_v30  ;;  %v2813_v31 = vrot.slane %v2808_v26, %v5947_v39  ;;  %v2817_v10 = vrot.slane %v2808_v26, %v5956_v42 }
 0xb39   :  { %v2703_v53 = vpop.f32.mrf.mxu0  ;;  %v2743_v17 = vpop.f32.mrf.mxu1 }
 0xb3a   :  { %v4455_v54 = vmul.f32 -1.442695, %v2746_v9  ;;  %v2756_v15 = vadd.f32 %v2754_v62, %v2702_v57  ;;  %v2774_v9 = vld [vmem:[#allocation3 + $0x12] sm:$0x3f] }
 0xb3b   :  { %v2704_v55 = vpop.f32.mrf.mxu0  ;;  %v5006_v60 = vpop.f32.mrf.mxu1 }
 0xb3c   :  { %5447 = vpow2.f32 %v4455_v54  ;;  %v4456_v16 = vmul.f32 -1.442695, %v2756_v15 }
 0xb3e   :  { %5449 = vpow2.f32 %v4456_v16 }
 0xb49   :  { %v5448_v11 = vpop.eup %5447 }
 0xb4a   :  { %v2750_v13 = vadd.f32 1.0, %v5448_v11  ;;  %v3042_v11 = vrot.slane %v2774_v9, 2 }
 0xb4b   :  { %v5450_v12 = vpop.eup %5449 }
 0xb4c   :  { %5451 = vrcp.f32 %v2750_v13  ;;  %v2760_v45 = vadd.f32 1.0, %v5450_v12 }
 0xb4e   :  { %5453 = vrcp.f32 %v2760_v45 }
 0xb59   :  { %v5452_v46 = vpop.eup %5451 }
 0xb5a   :  { %v2763_v47 = vmul.f32 %v5452_v46, %v2741_v43  ;;  %v2821_v46 = vrot.slane %v2808_v26, %v5953_v41  ;;  %v5288_v26 = vld [vmem:[#allocation9 + $0x38] ss:$12 sps:$4 sm:$0xff]  }
 0xb5b   :  { %v5454_v51 = vpop.eup %5453 }
 0xb5c   :  { %v2766_v49 = vadd.f32 %v2764_v48, %v2763_v47  ;;  %v2768_v56 = vsub.f32 1.0, %v5454_v51  ;;  %v2770_v25 = vmul.f32 %v5454_v51, %v6448_v3  ;;  %v5266_v3 = vld [vmem:[#allocation9 + $0x68] ss:$12 sps:$4 sm:$0xff]  }
 0xb5e   :  { %5455 = vtanh.f32 %v2766_v49 }
 0xb6b   :  { %v5456_v52 = vpop.eup %5455 }
 0xb6c   :  { %v2769_v24 = vmul.f32 %v5456_v52, %v2768_v56  ;;  %v3052_v56 = vrot.slane %v2774_v9, 4 }
 0xb6e   :  { %v6486_v29 = vadd.f32 %v2770_v25, %v2769_v24 }
 0xb70   :  { %2773 = vst [vmem:[#allocation4 + $0x4] sm:$0x3] %v6486_v29  ;;  %v2775_v28 = vpack.c.bf16 %v6486_v29, %v6486_v29 }
 0xb72   :  { %2986 = vmatmul.mubr.bf16.vlgmr.msra.gmra.mxu0 %v2775_v28  ;;  %5024 = vmatmul.mubr.bf16.vlgmr.msra.gmra.mxu1 %v2775_v28 }
 0xb73   :  { %3273 = vmatprep.mubr.bf16.mxu0 %v5616_v1  ;;  %5043 = vmatprep.mubr.msk.bf16.mxu1 %vm5617_vm0, %v5615_v0 }
 0xb74   :  { %3242 = vmatpush1.bf16.msra.mxu0 %v6496_v59  ;;  %5028 = vmatpush3.bf16.msra.mxu1 %v5254_v33 }
 0xb75   :  { %5029 = vmatprep.subr.bf16.mxu1 %v5615_v0  ;;  %3243 = vmatprep.subr.bf16.mxu0 %v6500_v34 }
 0xb78   :  { %3244 = vmatpush1.bf16.msra.mxu0 %v6503_v35  ;;  %5030 = vmatpush3.bf16.msra.mxu1 %v5258_v36 }
 0xb79   :  { %5031 = vmatprep.subr.bf16.mxu1 %v5615_v0  ;;  %3245 = vmatprep.subr.bf16.mxu0 %v6507_v19 }
 0xb7c   :  { %3246 = vmatpush1.bf16.msra.mxu0 %v6510_v44  ;;  %5032 = vmatpush3.bf16.msra.mxu1 %v5262_v37 }
 0xb7d   :  { %5033 = vmatprep.subr.bf16.mxu1 %v5615_v0  ;;  %3247 = vmatprep.subr.bf16.mxu0 %v6516_v38 }
 0xb80   :  { %3248 = vmatpush1.bf16.msra.mxu0 %v6514_v61  ;;  %5034 = vmatpush3.bf16.msra.mxu1 %v5266_v3 }
 0xb81   :  { %3249 = vmatprep.subr.bf16.mxu0 %v6519_v6  ;;  %5035 = vmatprep.subr.bf16.mxu1 %v5615_v0 }
 0xb84   :  { %3250 = vmatpush1.bf16.msra.mxu0 %v6523_v18  ;;  %5036 = vmatpush3.bf16.msra.mxu1 %v5270_v21  ;;  %v5284_v21 = vld [vmem:[#allocation9 + $0x98] ss:$12 sps:$4 sm:$0xff]  }
 0xb85   :  { %3251 = vmatprep.subr.bf16.mxu0 %v6527_v14  ;;  %5037 = vmatprep.subr.bf16.mxu1 %v5615_v0 }
 0xb88   :  { %3252 = vmatpush1.bf16.msra.mxu0 %v6530_v23  ;;  %5038 = vmatpush3.bf16.msra.mxu1 %v5274_v58  ;;  %v5285_v58 = vld [vmem:[#allocation9 + $0x80] ss:$12 sps:$4 sm:$0xff]  }
 0xb89   :  { %3253 = vmatprep.subr.bf16.mxu0 %v6534_v63  ;;  %5039 = vmatprep.subr.bf16.mxu1 %v5615_v0 }
 0xb8c   :  { %3254 = vmatpush1.bf16.msra.mxu0 %v6537_v2  ;;  %5040 = vmatpush3.bf16.msra.mxu1 %v5278_v4  ;;  %v5286_v4 = vld [vmem:[#allocation9 + $0x68] ss:$12 sps:$4 sm:$0xff]  }
 0xb8d   :  { %3255 = vmatprep.subr.bf16.mxu0 %v6541_v5  ;;  %5041 = vmatprep.subr.bf16.mxu1 %v5615_v0 }
 0xb90   :  { %3256 = vmatpush1.bf16.msra.mxu0 %v6544_v7  ;;  %5042 = vmatpush3.bf16.msra.mxu1 %v5282_v8  ;;  %v5287_v8 = vld [vmem:[#allocation9 + $0x50] ss:$12 sps:$4 sm:$0xff]  }
 0xb91   :  { %3529 = vmatprep.subr.bf16.mxu0 %v6494_v32  ;;  %5047 = vmatprep.subr.bf16.mxu1 %v5615_v0 }
 0xc32   :  { %v2987_v30 = vpop.f32.mrf.mxu0  ;;  %v3028_v50 = vpop.f32.mrf.mxu1 }
 0xc33   :  { %v2988_v22 = vadd.f32 %v2987_v30, %v2813_v31  ;;  %v3029_v48 = vadd.f32 %v3028_v50, %v2821_v46  ;;  %v5290_v31 = vld [vmem:[#allocation9 + $0x8] ss:$12 sps:$4 sm:$0xff]   ;;  %v3096_v30 = vld [vmem:[%s6690_s8] sm:$0x7] }
 0xc34   :  { %v2989_v53 = vpop.f32.mrf.mxu0  ;;  %v5025_v17 = vpop.f32.mrf.mxu1  ;;  %v3101_v50 = vrot.slane %v3096_v30, %v5947_v39 }
 0xc35   :  { %v3034_v54 = vadd.f32 %v2988_v22, %v2774_v9  ;;  %v2990_v62 = vadd.f32 %v2989_v53, %v2817_v10  ;;  %v3105_v53 = vrot.slane %v3096_v30, %v5956_v42  ;;  %v3062_v17 = vld [vmem:[#allocation3 + $0x18] sm:$0x3f] }
 0xc36   :  { %v2991_v57 = vpop.f32.mrf.mxu0  ;;  %v3031_v55 = vpop.f32.mrf.mxu1 }
 0xc37   :  { %v4481_v60 = vmul.f32 -1.442695, %v3034_v54  ;;  %v3044_v13 = vadd.f32 %v3042_v11, %v2990_v62 }
 0xc38   :  { %v2992_v15 = vpop.f32.mrf.mxu0  ;;  %v5026_v16 = vpop.f32.mrf.mxu1 }
 0xc39   :  { %5457 = vpow2.f32 %v4481_v60  ;;  %v4482_v12 = vmul.f32 -1.442695, %v3044_v13 }
 0xc3b   :  { %5459 = vpow2.f32 %v4482_v12  ;;  %v3330_v12 = vrot.slane %v3062_v17, 2 }
 0xc46   :  { %v5458_v40 = vpop.eup %5457 }
 0xc47   :  { %v3038_v45 = vadd.f32 1.0, %v5458_v40 }
 0xc48   :  { %v5460_v43 = vpop.eup %5459 }
 0xc49   :  { %5461 = vrcp.f32 %v3038_v45  ;;  %v3048_v47 = vadd.f32 1.0, %v5460_v43 }
 0xc4b   :  { %5463 = vrcp.f32 %v3048_v47 }
 0xc56   :  { %v5462_v49 = vpop.eup %5461 }
 0xc57   :  { %v3051_v51 = vmul.f32 %v5462_v49, %v3029_v48  ;;  %v3109_v48 = vrot.slane %v3096_v30, %v5953_v41 }
 0xc58   :  { %v5464_v24 = vpop.eup %5463 }
 0xc59   :  { %v3054_v52 = vadd.f32 %v3052_v56, %v3051_v51  ;;  %v3056_v25 = vsub.f32 1.0, %v5464_v24  ;;  %v3058_v36 = vmul.f32 %v5464_v24, %v6486_v29  ;;  %v5283_v29 = vld [vmem:[#allocation9 + $0xb0] ss:$12 sps:$4 sm:$0xff]   ;;  %v3340_v24 = vrot.slane %v3062_v17, 4 }
 0xc5b   :  { %5465 = vtanh.f32 %v3054_v52 }
 0xc68   :  { %v5466_v28 = vpop.eup %5465 }
 0xc69   :  { %v3057_v33 = vmul.f32 %v5466_v28, %v3056_v25 }
 0xc6b   :  { %v6558_v37 = vadd.f32 %v3058_v36, %v3057_v33 }
 0xc6d   :  { %3061 = vst [vmem:[#allocation4 + $0x6] sm:$0x3] %v6558_v37  ;;  %v3063_v3 = vpack.c.bf16 %v6558_v37, %v6558_v37 }
 0xc6f   :  { %3274 = vmatmul.mubr.bf16.vlgmr.msra.gmra.mxu0 %v3063_v3  ;;  %5044 = vmatmul.mubr.bf16.vlgmr.msra.gmra.mxu1 %v3063_v3 }
 0xc70   :  { %3530 = vmatpush1.bf16.msra.mxu0 %v6496_v59  ;;  %3561 = vmatprep.mubr.bf16.mxu0 %v5616_v1 }
 0xc71   :  { %3531 = vmatprep.subr.bf16.mxu0 %v6500_v34  ;;  %5063 = vmatprep.mubr.msk.bf16.mxu1 %vm5617_vm0, %v5615_v0 }
 0xc72   :  { %5048 = vmatpush3.bf16.msra.mxu1 %v5283_v29 }
 0xc73   :  { %5049 = vmatprep.subr.bf16.mxu1 %v5615_v0 }
 0xc74   :  { %3532 = vmatpush1.bf16.msra.mxu0 %v6503_v35 }
 0xc75   :  { %3533 = vmatprep.subr.bf16.mxu0 %v6507_v19 }
 0xc76   :  { %5050 = vmatpush3.bf16.msra.mxu1 %v5284_v21 }
 0xc77   :  { %5051 = vmatprep.subr.bf16.mxu1 %v5615_v0 }
 0xc78   :  { %3534 = vmatpush1.bf16.msra.mxu0 %v6510_v44 }
 0xc79   :  { %3535 = vmatprep.subr.bf16.mxu0 %v6516_v38 }
 0xc7a   :  { %5052 = vmatpush3.bf16.msra.mxu1 %v5285_v58 }
 0xc7b   :  { %5053 = vmatprep.subr.bf16.mxu1 %v5615_v0 }
 0xc7c   :  { %3536 = vmatpush1.bf16.msra.mxu0 %v6514_v61 }
 0xc7d   :  { %3537 = vmatprep.subr.bf16.mxu0 %v6519_v6 }
 0xc7e   :  { %5054 = vmatpush3.bf16.msra.mxu1 %v5286_v4 }
 0xc7f   :  { %5055 = vmatprep.subr.bf16.mxu1 %v5615_v0 }
 0xc80   :  { %3538 = vmatpush1.bf16.msra.mxu0 %v6523_v18 }
 0xc81   :  { %3539 = vmatprep.subr.bf16.mxu0 %v6527_v14 }
 0xc82   :  { %5056 = vmatpush3.bf16.msra.mxu1 %v5287_v8 }
 0xc83   :  { %5057 = vmatprep.subr.bf16.mxu1 %v5615_v0 }
 0xc84   :  { %3540 = vmatpush1.bf16.msra.mxu0 %v6530_v23 }
 0xc85   :  { %3541 = vmatprep.subr.bf16.mxu0 %v6534_v63 }
 0xc86   :  { %5058 = vmatpush3.bf16.msra.mxu1 %v5288_v26 }
 0xc87   :  { %5059 = vmatprep.subr.bf16.mxu1 %v5615_v0 }
 0xc88   :  { %3542 = vmatpush1.bf16.msra.mxu0 %v6537_v2 }
 0xc89   :  { %3543 = vmatprep.subr.bf16.mxu0 %v6541_v5 }
 0xc8c   :  { %3544 = vmatpush1.bf16.msra.mxu0 %v6544_v7 }
 0xc8d   :  { %3817 = vmatprep.subr.bf16.mxu0 %v6494_v32  ;;  %v5289_v32 = vld [vmem:[#allocation9 + $0x20] ss:$12 sps:$4 sm:$0xff]  }
 0xc8e   :  { %5060 = vmatpush3.bf16.msra.mxu1 %v5289_v32 }
 0xc8f   :  { %5061 = vmatprep.subr.bf16.mxu1 %v5615_v0 }
 0xc92   :  { %5062 = vmatpush3.bf16.msra.mxu1 %v5290_v31 }
 0xc93   :  { %5067 = vmatprep.subr.bf16.mxu1 %v5615_v0 }
 0xd2f   :  { %v3275_v22 = vpop.f32.mrf.mxu0  ;;  %v3316_v10 = vpop.f32.mrf.mxu1 }
 0xd30   :  { %v3276_v9 = vadd.f32 %v3275_v22, %v3101_v50  ;;  %v3317_v51 = vadd.f32 %v3316_v10, %v3109_v48  ;;  %v5301_v48 = vld [vmem:[#allocation10 + $0xe4] ss:$16 sps:$4 sm:$0xff]  }
 0xd31   :  { %v3277_v54 = vpop.f32.mrf.mxu0  ;;  %v5045_v57 = vpop.f32.mrf.mxu1 }
 0xd32   :  { %v3322_v55 = vadd.f32 %v3276_v9, %v3062_v17  ;;  %v3278_v16 = vadd.f32 %v3277_v54, %v3105_v53 }
 0xd33   :  { %v3279_v60 = vpop.f32.mrf.mxu0  ;;  %v3319_v62 = vpop.f32.mrf.mxu1 }
 0xd34   :  { %v4507_v15 = vmul.f32 -1.442695, %v3322_v55  ;;  %v3332_v40 = vadd.f32 %v3330_v12, %v3278_v16 }
 0xd35   :  { %v3280_v11 = vpop.f32.mrf.mxu0  ;;  %v5046_v13 = vpop.f32.mrf.mxu1 }
 0xd36   :  { %5467 = vpow2.f32 %v4507_v15  ;;  %v4508_v45 = vmul.f32 -1.442695, %v3332_v40 }
 0xd38   :  { %5469 = vpow2.f32 %v4508_v45 }
 0xd43   :  { %v5468_v43 = vpop.eup %5467 }
 0xd44   :  { %v3326_v46 = vadd.f32 1.0, %v5468_v43 }
 0xd45   :  { %v5470_v47 = vpop.eup %5469 }
 0xd46   :  { %5471 = vrcp.f32 %v3326_v46  ;;  %v3336_v49 = vadd.f32 1.0, %v5470_v47 }
 0xd48   :  { %5473 = vrcp.f32 %v3336_v49  ;;  %v5304_v49 = vld [vmem:[#allocation10 + $0xec] ss:$16 sps:$4 sm:$0xff]  }
 0xd53   :  { %v5472_v56 = vpop.eup %5471 }
 0xd54   :  { %v3339_v52 = vmul.f32 %v5472_v56, %v3317_v51  ;;  %v5299_v51 = vld [vmem:[#allocation10 + $0xe0] ss:$16 sps:$4 sm:$0xff]   ;;  %v5302_v56 = vld [vmem:[#allocation10 + $0xe8] ss:$16 sps:$4 sm:$0xff]  }
 0xd55   :  { %v5474_v28 = vpop.eup %5473 }
 0xd56   :  { %v3342_v25 = vadd.f32 %v3340_v24, %v3339_v52  ;;  %v3344_v33 = vsub.f32 1.0, %v5474_v28  ;;  %v3346_v29 = vmul.f32 %v5474_v28, %v6558_v37  ;;  %v5307_v52 = vld [vmem:[#allocation10 + $0xc4] ss:$16 sps:$4 sm:$0xff]   ;;  %v5310_v24 = vld [vmem:[#allocation10 + $0xcc] ss:$16 sps:$4 sm:$0xff]  }
 0xd57   :  { %v5308_v28 = vld [vmem:[#allocation10 + $0xc8] ss:$16 sps:$4 sm:$0xff]  }
 0xd58   :  { %5475 = vtanh.f32 %v3342_v25  ;;  %v5305_v25 = vld [vmem:[#allocation10 + $0xc0] ss:$16 sps:$4 sm:$0xff]  }
 0xd65   :  { %v5476_v36 = vpop.eup %5475 }
 0xd66   :  { %v3345_v3 = vmul.f32 %v5476_v36, %v3344_v33  ;;  %v5313_v33 = vld [vmem:[#allocation10 + $0xa4] ss:$16 sps:$4 sm:$0xff]   ;;  %v5316_v36 = vld [vmem:[#allocation10 + $0xac] ss:$16 sps:$4 sm:$0xff]  }
 0xd68   :  { %v6597_v21 = vadd.f32 %v3346_v29, %v3345_v3  ;;  %v5311_v3 = vld [vmem:[#allocation10 + $0xa0] ss:$16 sps:$4 sm:$0xff]   ;;  %v5319_v29 = vld [vmem:[#allocation10 + $0x84] ss:$16 sps:$4 sm:$0xff]  }
 0xd6a   :  { %3349 = vst [vmem:[#allocation4 + $0x8] sm:$0x3] %v6597_v21  ;;  %v3351_v58 = vpack.c.bf16 %v6597_v21, %v6597_v21 }
 0xd6c   :  { %3562 = vmatmul.mubr.bf16.vlgmr.msra.gmra.mxu0 %v3351_v58  ;;  %5064 = vmatmul.mubr.bf16.vlgmr.msra.gmra.mxu1 %v3351_v58  ;;  %v5317_v58 = vld [vmem:[#allocation10 + $0x80] ss:$16 sps:$4 sm:$0xff]  }
 0xd6d   :  { %3818 = vmatpush1.bf16.msra.mxu0 %v6496_v59  ;;  %3849 = vmatprep.mubr.bf16.mxu0 %v5616_v1  ;;  %v5291_v59 = vld [vmem:[#allocation9 + $0xb0] ss:$12 sps:$4 sm:$0xff]  }
 0xd6e   :  { %3819 = vmatprep.subr.bf16.mxu0 %v6500_v34  ;;  %5083 = vmatprep.mubr.msk.bf16.mxu1 %vm5617_vm0, %v5615_v0  ;;  %v5292_v34 = vld [vmem:[#allocation9 + $0x98] ss:$12 sps:$4 sm:$0xff]  }
 0xd6f   :  { %5068 = vmatpush3.bf16.msra.mxu1 %v5291_v59  ;;  %v5320_v59 = vld [vmem:[#allocation10 + $0x88] ss:$16 sps:$4 sm:$0xff]  }
 0xd70   :  { %5069 = vmatprep.subr.bf16.mxu1 %v5615_v0 }
 0xd71   :  { %3820 = vmatpush1.bf16.msra.mxu0 %v6503_v35  ;;  %v5293_v35 = vld [vmem:[#allocation9 + $0x80] ss:$12 sps:$4 sm:$0xff]  }
 0xd72   :  { %3821 = vmatprep.subr.bf16.mxu0 %v6507_v19  ;;  %v5294_v19 = vld [vmem:[#allocation9 + $0x68] ss:$12 sps:$4 sm:$0xff]  }
 0xd73   :  { %5070 = vmatpush3.bf16.msra.mxu1 %v5292_v34  ;;  %v5325_v34 = vld [vmem:[#allocation10 + $0x64] ss:$16 sps:$4 sm:$0xff]  }
 0xd74   :  { %5071 = vmatprep.subr.bf16.mxu1 %v5615_v0 }
 0xd75   :  { %3822 = vmatpush1.bf16.msra.mxu0 %v6510_v44  ;;  %v5295_v44 = vld [vmem:[#allocation9 + $0x50] ss:$12 sps:$4 sm:$0xff]  }
 0xd76   :  { %3823 = vmatprep.subr.bf16.mxu0 %v6516_v38  ;;  %v5297_v38 = vld [vmem:[#allocation9 + $0x20] ss:$12 sps:$4 sm:$0xff]  }
 0xd77   :  { %5072 = vmatpush3.bf16.msra.mxu1 %v5293_v35  ;;  %v5328_v35 = vld [vmem:[#allocation10 + $0x6c] ss:$16 sps:$4 sm:$0xff]  }
 0xd78   :  { %5073 = vmatprep.subr.bf16.mxu1 %v5615_v0 }
 0xd79   :  { %3824 = vmatpush1.bf16.msra.mxu0 %v6514_v61  ;;  %v5296_v61 = vld [vmem:[#allocation9 + $0x38] ss:$12 sps:$4 sm:$0xff]  }
 0xd7a   :  { %3825 = vmatprep.subr.bf16.mxu0 %v6519_v6  ;;  %v5298_v6 = vld [vmem:[#allocation9 + $0x8] ss:$12 sps:$4 sm:$0xff]  }
 0xd7b   :  { %5074 = vmatpush3.bf16.msra.mxu1 %v5294_v19  ;;  %v5323_v19 = vld [vmem:[#allocation10 + $0x60] ss:$16 sps:$4 sm:$0xff]  }
 0xd7c   :  { %5075 = vmatprep.subr.bf16.mxu1 %v5615_v0 }
 0xd7d   :  { %3826 = vmatpush1.bf16.msra.mxu0 %v6523_v18  ;;  %v3384_v18 = vld [vmem:[%s6690_s8] sm:$0x7] }
 0xd7e   :  { %3827 = vmatprep.subr.bf16.mxu0 %v6527_v14  ;;  %v3389_v14 = vrot.slane %v3384_v18, %v5947_v39  ;;  %v3397_v57 = vrot.slane %v3384_v18, %v5953_v41 }
 0xd7f   :  { %5076 = vmatpush3.bf16.msra.mxu1 %v5295_v44  ;;  %v5326_v44 = vld [vmem:[#allocation10 + $0x68] ss:$16 sps:$4 sm:$0xff]  }
 0xd80   :  { %5077 = vmatprep.subr.bf16.mxu1 %v5615_v0 }
 0xd81   :  { %3828 = vmatpush1.bf16.msra.mxu0 %v6530_v23 }
 0xd82   :  { %3829 = vmatprep.subr.bf16.mxu0 %v6534_v63 }
 0xd83   :  { %5078 = vmatpush3.bf16.msra.mxu1 %v5296_v61  ;;  %v5329_v61 = vld [vmem:[#allocation10 + $0x40] ss:$16 sps:$4 sm:$0xff]  }
 0xd84   :  { %5079 = vmatprep.subr.bf16.mxu1 %v5615_v0 }
 0xd85   :  { %3830 = vmatpush1.bf16.msra.mxu0 %v6537_v2 }
 0xd86   :  { %3831 = vmatprep.subr.bf16.mxu0 %v6541_v5  ;;  %v3393_v5 = vrot.slane %v3384_v18, %v5956_v42  ;;  %v5334_v18 = vld [vmem:[#allocation10 + $0x4c] ss:$16 sps:$4 sm:$0xff]  }
 0xd87   :  { %5080 = vmatpush3.bf16.msra.mxu1 %v5297_v38  ;;  %v5331_v38 = vld [vmem:[#allocation10 + $0x44] ss:$16 sps:$4 sm:$0xff]  }
 0xd88   :  { %5081 = vmatprep.subr.bf16.mxu1 %v5615_v0 }
 0xd89   :  { %3832 = vmatpush1.bf16.msra.mxu0 %v6544_v7  ;;  %v3350_v7 = vld [vmem:[#allocation3 + $0x1e] sm:$0x3f] }
 0xd8a   :  { %v3618_v22 = vrot.slane %v3350_v7, 2  ;;  %v3628_v16 = vrot.slane %v3350_v7, 4  ;;  %4190 = vmatprep.subr.bf16.mxu0 %v5301_v48 }
 0xd8b   :  { %5082 = vmatpush3.bf16.msra.mxu1 %v5298_v6  ;;  %v5332_v6 = vld [vmem:[#allocation10 + $0x48] ss:$16 sps:$4 sm:$0xff]  }
 0xd8c   :  { %4233 = vmatprep.subr.bf16.mxu1 %v5304_v49 }
 0xe2c   :  { %v3563_v23 = vpop.f32.mrf.mxu0  ;;  %v3604_v63 = vpop.f32.mrf.mxu1 }
 0xe2d   :  { %v3564_v2 = vadd.f32 %v3563_v23, %v3389_v14  ;;  %v3605_v60 = vadd.f32 %v3604_v63, %v3397_v57  ;;  %v5337_v14 = vld [vmem:[#allocation10 + $0x24] ss:$16 sps:$4 sm:$0xff]   ;;  %v5340_v23 = vld [vmem:[#allocation10 + $0x2c] ss:$16 sps:$4 sm:$0xff]   ;;  %v5335_v63 = vld [vmem:[#allocation10 + $0x20] ss:$16 sps:$4 sm:$0xff]  }
 0xe2e   :  { %v3565_v37 = vpop.f32.mrf.mxu0  ;;  %v5065_v4 = vpop.f32.mrf.mxu1 }
 0xe2f   :  { %v3610_v8 = vadd.f32 %v3564_v2, %v3350_v7  ;;  %v3566_v0 = vadd.f32 %v3565_v37, %v3393_v5  ;;  %v5338_v2 = vld [vmem:[#allocation10 + $0x28] ss:$16 sps:$4 sm:$0xff]   ;;  %v5343_v5 = vld [vmem:[#allocation10 + $0x4] ss:$16 sps:$4 sm:$0xff]   ;;  %v5346_v7 = vld [vmem:[#allocation10 + $0xc] ss:$16 sps:$4 sm:$0xff]  }
 0xe30   :  { %v3567_v26 = vpop.f32.mrf.mxu0  ;;  %v3607_v32 = vpop.f32.mrf.mxu1  ;;  %v5341_v37 = vld [vmem:[#allocation10] ss:$16 sps:$4 sm:$0xff]   ;;  %v5344_v4 = vld [vmem:[#allocation10 + $0x8] ss:$16 sps:$4 sm:$0xff]  }
 0xe31   :  { %v4533_v31 = vmul.f32 -1.442695, %v3610_v8  ;;  %v3620_v10 = vadd.f32 %v3618_v22, %v3566_v0  ;;  %v3672_v8 = vld [vmem:[%s6690_s8] sm:$0x7] }
 0xe32   :  { %v3568_v30 = vpop.f32.mrf.mxu0  ;;  %v5066_v50 = vpop.f32.mrf.mxu1  ;;  %v3677_v26 = vrot.slane %v3672_v8, %v5947_v39 }
 0xe33   :  { %5477 = vpow2.f32 %v4533_v31  ;;  %v4534_v9 = vmul.f32 -1.442695, %v3620_v10  ;;  %v3681_v30 = vrot.slane %v3672_v8, %v5956_v42  ;;  %v3638_v50 = vld [vmem:[#allocation3 + $0x24] sm:$0x3f] }
 0xe34   :  { %v3916_v49 = vrot.slane %v3638_v50, 4 }
 0xe35   :  { %5479 = vpow2.f32 %v4534_v9 }
 0xe40   :  { %v5478_v53 = vpop.eup %5477 }
 0xe41   :  { %v3614_v17 = vadd.f32 1.0, %v5478_v53 }
 0xe42   :  { %v5480_v54 = vpop.eup %5479 }
 0xe43   :  { %5481 = vrcp.f32 %v3614_v17  ;;  %v3624_v55 = vadd.f32 1.0, %v5480_v54 }
 0xe45   :  { %5483 = vrcp.f32 %v3624_v55 }
 0xe50   :  { %v5482_v62 = vpop.eup %5481 }
 0xe51   :  { %v3627_v15 = vmul.f32 %v5482_v62, %v3605_v60  ;;  %v3906_v62 = vrot.slane %v3638_v50, 2 }
 0xe52   :  { %v5484_v13 = vpop.eup %5483 }
 0xe53   :  { %v3630_v11 = vadd.f32 %v3628_v16, %v3627_v15  ;;  %v3632_v12 = vsub.f32 1.0, %v5484_v13  ;;  %v3634_v43 = vmul.f32 %v5484_v13, %v6597_v21  ;;  %v5322_v21 = vld [vmem:[#allocation10 + $0x8c] ss:$16 sps:$4 sm:$0xff]  }
 0xe55   :  { %5485 = vtanh.f32 %v3630_v11 }
 0xe62   :  { %v5486_v40 = vpop.eup %5485 }
 0xe63   :  { %v3633_v45 = vmul.f32 %v5486_v40, %v3632_v12  ;;  %v3685_v40 = vrot.slane %v3672_v8, %v5953_v41 }
 0xe65   :  { %v6634_v46 = vadd.f32 %v3634_v43, %v3633_v45 }
 0xe67   :  { %3637 = vst [vmem:[#allocation4 + $0xa] sm:$0x3] %v6634_v46  ;;  %v3639_v47 = vpack.c.bf16 %v6634_v46, %v6634_v46 }
 0xe69   :  { %3850 = vmatmul.mubr.bf16.vlgmr.msra.gmra.mxu0 %v3639_v47  ;;  %5084 = vmatmul.mubr.bf16.vlgmr.msra.gmra.mxu1 %v3639_v47 }
 0xe6a   :  { %4222 = vmatprep.mubr.bf16.mxu0 %v5616_v1  ;;  %4265 = vmatprep.mubr.bf16.mxu1 %v5616_v1  ;;  %v5314_v1 = vld [vmem:[#allocation10 + $0xa8] ss:$16 sps:$4 sm:$0xff]  }
 0xe6b   :  { %4191 = vmatpush1.bf16.msra.mxu0 %v5299_v51  ;;  %4234 = vmatpush1.bf16.msra.mxu1 %v5302_v56 }
 0xe6c   :  { %4192 = vmatprep.subr.bf16.mxu0 %v5307_v52  ;;  %4235 = vmatprep.subr.bf16.mxu1 %v5310_v24 }
 0xe6f   :  { %4193 = vmatpush1.bf16.msra.mxu0 %v5305_v25  ;;  %4236 = vmatpush1.bf16.msra.mxu1 %v5308_v28 }
 0xe70   :  { %4194 = vmatprep.subr.bf16.mxu0 %v5313_v33  ;;  %4237 = vmatprep.subr.bf16.mxu1 %v5316_v36  ;;  %v3929_v33 = vld [vmem:[#allocation4 + $0x6] sm:$0x3] }
 0xe73   :  { %4195 = vmatpush1.bf16.msra.mxu0 %v5311_v3  ;;  %4238 = vmatpush1.bf16.msra.mxu1 %v5314_v1  ;;  %v3927_v3 = vld [vmem:[#allocation4 + $0x2] sm:$0x3]  ;;  %v3928_v1 = vld [vmem:[#allocation4 + $0x4] sm:$0x3] }
 0xe74   :  { %4196 = vmatprep.subr.bf16.mxu0 %v5319_v29  ;;  %4239 = vmatprep.subr.bf16.mxu1 %v5322_v21  ;;  %v3931_v29 = vld [vmem:[#allocation4 + $0xa] sm:$0x3]  ;;  %v3941_v21 = vcombine.low %v3928_v1, %v3929_v33 }
 0xe77   :  { %4197 = vmatpush1.bf16.msra.mxu0 %v5317_v58  ;;  %4240 = vmatpush1.bf16.msra.mxu1 %v5320_v59  ;;  %v3926_v58 = vld [vmem:[#allocation4] sm:$0x3]  ;;  %v3930_v59 = vld [vmem:[#allocation4 + $0x8] sm:$0x3] }
 0xe78   :  { %4198 = vmatprep.subr.bf16.mxu0 %v5325_v34  ;;  %4241 = vmatprep.subr.bf16.mxu1 %v5328_v35  ;;  %v3940_v34 = vcombine.low %v3926_v58, %v3927_v3  ;;  %v3957_v35 = vcombine.low %v3930_v59, %v3931_v29 }
 0xe7b   :  { %4199 = vmatpush1.bf16.msra.mxu0 %v5323_v19  ;;  %4242 = vmatpush1.bf16.msra.mxu1 %v5326_v44  ;;  %v3955_v19 = vrot.slane %v3941_v21, %v5762_v27  ;;  %v3948_v44 = vrot.slane %v3940_v34, %v5762_v27 }
 0xe7c   :  { %4200 = vmatprep.subr.bf16.mxu0 %v5331_v38  ;;  %4243 = vmatprep.subr.bf16.mxu1 %v5334_v18 }
 0xe7f   :  { %4201 = vmatpush1.bf16.msra.mxu0 %v5329_v61  ;;  %4244 = vmatpush1.bf16.msra.mxu1 %v5332_v6  ;;  %v3964_v61 = vrot.slane %v3957_v35, %v5762_v27  ;;  %v3956_v6 = vcombine.low %v3948_v44, %v3955_v19 }
 0xe80   :  { %4202 = vmatprep.subr.bf16.mxu0 %v5337_v14  ;;  %4245 = vmatprep.subr.bf16.mxu1 %v5340_v23  ;;  %v4008_v14 = vld [vmem:[%s6692_s10] sm:$0xf]  ;;  %v4024_v23 = vsub.s32 3, %v5740_v20 }
 0xe83   :  { %4203 = vmatpush1.bf16.msra.mxu0 %v5335_v63  ;;  %4246 = vmatpush1.bf16.msra.mxu1 %v5338_v2  ;;  %v4013_v63 = vrot.slane %v4008_v14, %v5947_v39  ;;  %v4021_v2 = vrot.slane %v4008_v14, %v5953_v41 }
 0xe84   :  { %4204 = vmatprep.subr.bf16.mxu0 %v5343_v5  ;;  %4247 = vmatprep.subr.bf16.mxu1 %v5346_v7  ;;  %v4017_v5 = vrot.slane %v4008_v14, %v5956_v42  ;;  %v4025_v7 = vrot.slane %v4008_v14, %v4024_v23 }
 0xe87   :  { %4205 = vmatpush1.bf16.msra.mxu0 %v5341_v37  ;;  %4248 = vmatpush1.bf16.msra.mxu1 %v5344_v4 }
 0xf29   :  { %v3851_v32 = vpop.f32.mrf.mxu0  ;;  %v3892_v31 = vpop.f32.mrf.mxu1 }
 0xf2a   :  { %v3852_v0 = vadd.f32 %v3851_v32, %v3677_v26  ;;  %v3893_v43 = vadd.f32 %v3892_v31, %v3685_v40 }
 0xf2b   :  { %v3853_v22 = vpop.f32.mrf.mxu0  ;;  %v5085_v10 = vpop.f32.mrf.mxu1 }
 0xf2c   :  { %v3898_v9 = vadd.f32 %v3852_v0, %v3638_v50  ;;  %v3854_v57 = vadd.f32 %v3853_v22, %v3681_v30 }
 0xf2d   :  { %v3855_v53 = vpop.f32.mrf.mxu0  ;;  %v3895_v17 = vpop.f32.mrf.mxu1 }
 0xf2e   :  { %v4559_v54 = vmul.f32 -1.442695, %v3898_v9  ;;  %v3908_v15 = vadd.f32 %v3906_v62, %v3854_v57 }
 0xf2f   :  { %v3856_v55 = vpop.f32.mrf.mxu0  ;;  %v5086_v60 = vpop.f32.mrf.mxu1 }
 0xf30   :  { %5487 = vpow2.f32 %v4559_v54  ;;  %v4560_v16 = vmul.f32 -1.442695, %v3908_v15 }
 0xf32   :  { %5489 = vpow2.f32 %v4560_v16 }
 0xf3d   :  { %v5488_v11 = vpop.eup %5487 }
 0xf3e   :  { %v3902_v13 = vadd.f32 1.0, %v5488_v11 }
 0xf3f   :  { %v5490_v12 = vpop.eup %5489 }
 0xf40   :  { %5491 = vrcp.f32 %v3902_v13  ;;  %v3912_v45 = vadd.f32 1.0, %v5490_v12 }
 0xf42   :  { %5493 = vrcp.f32 %v3912_v45 }
 0xf4d   :  { %v5492_v47 = vpop.eup %5491 }
 0xf4e   :  { %v3915_v48 = vmul.f32 %v5492_v47, %v3893_v43 }
 0xf4f   :  { %v5494_v56 = vpop.eup %5493 }
 0xf50   :  { %v3918_v51 = vadd.f32 %v3916_v49, %v3915_v48  ;;  %v3920_v52 = vsub.f32 1.0, %v5494_v56  ;;  %v3922_v28 = vmul.f32 %v5494_v56, %v6634_v46 }
 0xf52   :  { %5495 = vtanh.f32 %v3918_v51 }
 0xf5f   :  { %v5496_v24 = vpop.eup %5495 }
 0xf60   :  { %v3921_v25 = vmul.f32 %v5496_v24, %v3920_v52 }
 0xf62   :  { %v3923_v36 = vadd.f32 %v3922_v28, %v3921_v25 }
 0xf64   :  { %3925 = vst [vmem:[#allocation4 + $0xc] sm:$0x3] %v3923_v36 }
 0xf6b   :  { %v4561_v38 = vld.sshfl [vmem:[#allocation4 + $0xc] sm:$0x3 pattern:$0x76325410] }
 0xf6c   :  { %v3972_v46 = vcombine.low %v3964_v61, %v4561_v38 }
 0xf6e   :  { %v3975_v18 = vpack.c.bf16 %v3972_v46, %v3956_v6 }
 0xf70   :  { %4223 = vmatmul.mubr.bf16.vlgmr.msra.gmra.mxu0 %v3975_v18  ;;  %4266 = vmatmul.mubr.bf16.vlgmr.msra.gmra.mxu1 %v3975_v18 }
0x1030   :  { %v4224_v27 = vpop.f32.mrf.mxu0  ;;  %v4267_v37 = vpop.f32.mrf.mxu1 }
0x1031   :  { %v4225_v4 = vadd.f32 %v4224_v27, %v4013_v63  ;;  %v4268_v8 = vadd.f32 %v4267_v37, %v4021_v2 }
0x1032   :  { %v4226_v26 = vpop.f32.mrf.mxu0  ;;  %v4269_v32 = vpop.f32.mrf.mxu1 }
0x1033   :  { %4276 = vst [vmem:[%s6693_s11] sm:$0xff] %v4225_v4  ;;  %4278 = vst [vmem:[%s6693_s11 + $0x10] sm:$0xff] %v4268_v8  ;;  %v4227_v20 = vadd.f32 %v4226_v26, %v4017_v5  ;;  %v4270_v39 = vadd.f32 %v4269_v32, %v4025_v7 }
0x1034   :  { %v4228_v41 = vpop.f32.mrf.mxu0  ;;  %v4271_v31 = vpop.f32.mrf.mxu1 }
0x1035   :  { %4277 = vst [vmem:[%s6693_s11 + $0x8] sm:$0xff] %v4227_v20  ;;  %4279 = vst [vmem:[%s6693_s11 + $0x18] sm:$0xff] %v4270_v39  ;;  %v4229_v42 = vadd.f32 %v4228_v41, %v4013_v63  ;;  %v4272_v0 = vadd.f32 %v4271_v31, %v4021_v2 }
0x1036   :  { %v4230_v30 = vpop.f32.mrf.mxu0  ;;  %v4273_v50 = vpop.f32.mrf.mxu1 }
0x1037   :  { %4280 = vst [vmem:[%s6693_s11 + $0x20] sm:$0x3f] %v4229_v42  ;;  %4282 = vst [vmem:[%s6693_s11 + $0x30] sm:$0x3f] %v4272_v0  ;;  %v4231_v22 = vadd.f32 %v4230_v30, %v4017_v5  ;;  %v4274_v10 = vadd.f32 %v4273_v50, %v4025_v7 }
0x1039   :  { %4281 = vst [vmem:[%s6693_s11 + $0x28] sm:$0x3f] %v4231_v22  ;;  %4283 = vst [vmem:[%s6693_s11 + $0x38] sm:$0x3f] %v4274_v10 }
0x103a   :  { %4288 = vsyncpa [#allocation6], 1 }
0x103b   :  { %4289 = vsyncpa [#allocation8], 1 }
0x103c   :  { %4290 = vsyncpa [#allocation11], 1 }

</bundles_post_ra>
